<compile_context>
chip_gen: v5e
topology: v5e:2x2
jax: 0.10.0
libtpu: 0.0.40
codegen_flags: <defaults>
</compile_context>

<pallas_src>
import jax
import jax.numpy as jnp
from jax import lax
from jax.experimental import pallas as pl
from jax.experimental.pallas import tpu as pltpu


def _conv1x1_kernel(x_ref, w_ref, b_ref, o_ref):
    # x_ref: [M, Cin]      activations (f32; cast to bf16 in-body, free VPU work)
    # w_ref: [Cin, Cout]   weight, pre-transposed once at init (bf16)
    # b_ref: [1, Cout]     bias (f32)
    # o_ref: [M, Cout]     output (f32)
    x = x_ref[...].astype(w_ref.dtype)
    acc = jnp.dot(x, w_ref[...], preferred_element_type=jnp.float32)
    o_ref[...] = (acc + b_ref[...]).astype(o_ref.dtype)


def prepare_weight(weight_oihw):
    """One-time (init-time) weight prep: [Cout, Cin, 1, 1] -> [Cin, Cout] bf16.

    Doing the transpose + bf16 cast once outside the hot path means the kernel
    reads the dominant tensor from HBM exactly once, at half width, in the
    natural [K, N] stationary layout for the MXU (no in-kernel relayout).
    """
    cout, cin = weight_oihw.shape[0], weight_oihw.shape[1]
    return jnp.transpose(weight_oihw.reshape(cout, cin), (1, 0)).astype(jnp.bfloat16)


def conv2d_1x1(x_nchw, w_cin_cout, bias):
    """1x1 conv, stride 1, no padding.

    x_nchw:     [N, Cin, H, W]  (f32; cast to bf16 inside the kernel)
    w_cin_cout: [Cin, Cout]     (bf16; see prepare_weight)
    bias:       [Cout]
    returns     [N, Cout, H, W] float32
    """
    N, Cin, H, W = x_nchw.shape
    Cin_w, Cout = w_cin_cout.shape
    assert Cin_w == Cin, (Cin_w, Cin)
    M = N * H * W

    # Defensive dtype guard: a caller passing f32 weights would silently double
    # the dominant HBM weight DMA that this design relies on.
    if w_cin_cout.dtype != jnp.bfloat16:
        w_cin_cout = w_cin_cout.astype(jnp.bfloat16)

    # Activations: rows = (n, h, w) positions. For the 1x1 spatial case this is
    # a pure reshape (no data movement) and needs no padding; keep f32 here —
    # the bf16 cast happens inside the kernel (removes a separate convert op).
    if H == 1 and W == 1:
        x_rows = x_nchw.reshape(N, Cin)
    else:
        x_rows = jnp.transpose(x_nchw, (0, 2, 3, 1)).reshape(M, Cin)

    b = bias.astype(jnp.float32).reshape(1, Cout)

    # Advisory cost estimate so XLA can overlap neighbouring ops around the
    # custom call when this layer runs inside a full model.
    bytes_accessed = (
        M * Cin * x_rows.dtype.itemsize      # activations (f32, ~15 KB)
        + Cin * Cout * 2                     # bf16 weight (~1.23 MB, dominant)
        + Cout * 4                           # bias
        + M * Cout * 4                       # f32 output
    )
    cost = pl.CostEstimate(
        flops=2 * M * Cin * Cout,
        transcendentals=0,
        bytes_accessed=bytes_accessed,
    )

    out = pl.pallas_call(
        _conv1x1_kernel,
        out_shape=jax.ShapeDtypeStruct((M, Cout), jnp.float32),
        grid_spec=pltpu.PrefetchScalarGridSpec(
            num_scalar_prefetch=0,
            grid=(1,),
            in_specs=[
                pl.BlockSpec((M, Cin), lambda i: (0, 0)),      # full array
                pl.BlockSpec((Cin, Cout), lambda i: (0, 0)),   # full array
                pl.BlockSpec((1, Cout), lambda i: (0, 0)),     # full array
            ],
            out_specs=pl.BlockSpec((M, Cout), lambda i: (0, 0)),
        ),
        compiler_params=pltpu.CompilerParams(
            dimension_semantics=("arbitrary",),
        ),
        cost_estimate=cost,
    )(x_rows, w_cin_cout, b)

    if H == 1 and W == 1:
        return out.reshape(N, Cout, 1, 1)
    return out.reshape(N, H, W, Cout).transpose(0, 3, 1, 2)


if __name__ == "__main__":
    key = jax.random.PRNGKey(0)
    k_x, k_w, k_b = jax.random.split(key, 3)

    N, Cin, H, W = 1, 3840, 1, 1
    Cout = 160

    # Deterministic synthetic parameters (PyTorch-like uniform init scale).
    x = jax.random.normal(k_x, (N, Cin, H, W), dtype=jnp.float32)
    bound = 1.0 / (Cin ** 0.5)  # fan_in = Cin for a 1x1 kernel
    weight_f32 = jax.random.uniform(
        k_w, (Cout, Cin, 1, 1), minval=-bound, maxval=bound, dtype=jnp.float32)
    bias = jax.random.uniform(
        k_b, (Cout,), minval=-bound, maxval=bound, dtype=jnp.float32)

    # One-time weight prep (transpose to [Cin, Cout] + bf16 cast) OUTSIDE the
    # hot path: halves the dominant HBM weight read and avoids any in-kernel
    # relayout, while the MXU still accumulates in f32.
    w_prepped = jax.block_until_ready(prepare_weight(weight_f32))

    conv = jax.jit(conv2d_1x1)
    y = jax.block_until_ready(conv(x, w_prepped, bias))
    assert y.shape == (N, Cout, H, W), y.shape

    # Reference 1: identical mixed precision (bf16 operands, f32 accumulate)
    # in plain JAX -> tight tolerance validates the kernel's math.
    xb = x.reshape(N, Cin).astype(jnp.bfloat16)
    wb = weight_f32.reshape(Cout, Cin).astype(jnp.bfloat16)
    y_ref = (lax.dot_general(xb, wb, (((1,), (1,)), ((), ())),
                             preferred_element_type=jnp.float32)
             + bias).reshape(N, Cout, H, W)
    assert jnp.allclose(y, y_ref, atol=2e-3, rtol=2e-3), \
        float(jnp.max(jnp.abs(y - y_ref)))

    # Reference 2: full-f32 conv math -> loose tolerance bounds the bf16
    # quantization error of the weight/activation cast.
    y_f32 = (x.reshape(N, Cin) @ weight_f32.reshape(Cout, Cin).T + bias
             ).reshape(N, Cout, H, W)
    assert jnp.allclose(y, y_f32, atol=5e-2, rtol=5e-2), \
        float(jnp.max(jnp.abs(y - y_f32)))

    print("KERNEL_OK")
</pallas_src>

<mosaic_0001>
module attributes {stable_mosaic.version = 11 : i64} {
  func.func @_conv1x1_kernel(%arg0: i32, %arg1: memref<1x3840xf32, #tpu.memory_space<vmem>>, %arg2: memref<3840x160xbf16, #tpu.memory_space<vmem>>, %arg3: memref<1x160xf32, #tpu.memory_space<vmem>>, %arg4: memref<1x160xf32, #tpu.memory_space<vmem>>) attributes {dimension_semantics = [#tpu.dimension_semantics<arbitrary>], iteration_bounds = array<i64: 1>, scalar_prefetch = 0 : i64, scratch_operands = 0 : i64, tpu.core_type = #tpu.core_type<tc>, window_params = [{pipeline_mode = #tpu.pipeline_mode<synchronous>, transform_indices = @transform_0, window_bounds = array<i64: 1, 3840>}, {pipeline_mode = #tpu.pipeline_mode<synchronous>, transform_indices = @transform_1, window_bounds = array<i64: 3840, 160>}, {pipeline_mode = #tpu.pipeline_mode<synchronous>, transform_indices = @transform_2, window_bounds = array<i64: 1, 160>}, {pipeline_mode = #tpu.pipeline_mode<synchronous>, transform_indices = @transform_3, window_bounds = array<i64: 1, 160>}]} {
    %c0 = arith.constant 0 : index
    %c0_0 = arith.constant 0 : index
    %0 = vector.load %arg1[%c0, %c0_0] : memref<1x3840xf32, #tpu.memory_space<vmem>>, vector<1x3840xf32>
    %1 = arith.truncf %0 : vector<1x3840xf32> to vector<1x3840xbf16>
    %c0_1 = arith.constant 0 : index
    %c0_2 = arith.constant 0 : index
    %2 = vector.load %arg2[%c0_1, %c0_2] : memref<3840x160xbf16, #tpu.memory_space<vmem>>, vector<3840x160xbf16>
    %cst = arith.constant dense<0.000000e+00> : vector<1x160xf32>
    %3 = tpu.matmul %1, %2, %cst {dimension_numbers = #tpu.dot_dimension_numbers<[1], [0], [0], [1], [0, 0, 1, 1], [], []>} : vector<1x3840xbf16>, vector<3840x160xbf16>, vector<1x160xf32> -> vector<1x160xf32>
    %c0_3 = arith.constant 0 : index
    %c0_4 = arith.constant 0 : index
    %4 = vector.load %arg3[%c0_3, %c0_4] : memref<1x160xf32, #tpu.memory_space<vmem>>, vector<1x160xf32>
    %5 = arith.addf %3, %4 : vector<1x160xf32>
    %c0_5 = arith.constant 0 : index
    %c0_6 = arith.constant 0 : index
    %6 = vector.load %arg4[%c0_5, %c0_6] : memref<1x160xf32, #tpu.memory_space<vmem>>, vector<1x160xf32>
    tpu.vector_store %arg4[%c0_5, %c0_6], %5 {strides = array<i32>} : memref<1x160xf32, #tpu.memory_space<vmem>>, vector<1x160xf32>,
    return
  }
  func.func @transform_0(%arg0: i32) -> (i32, i32) {
    %c0_i32 = arith.constant 0 : i32
    %c0_i32_0 = arith.constant 0 : i32
    %c0_i32_1 = arith.constant 0 : i32
    return %c0_i32, %c0_i32_0 : i32, i32
  }
  func.func @transform_1(%arg0: i32) -> (i32, i32) {
    %c0_i32 = arith.constant 0 : i32
    %c0_i32_0 = arith.constant 0 : i32
    %c0_i32_1 = arith.constant 0 : i32
    return %c0_i32, %c0_i32_0 : i32, i32
  }
  func.func @transform_2(%arg0: i32) -> (i32, i32) {
    %c0_i32 = arith.constant 0 : i32
    %c0_i32_0 = arith.constant 0 : i32
    %c0_i32_1 = arith.constant 0 : i32
    return %c0_i32, %c0_i32_0 : i32, i32
  }
  func.func @transform_3(%arg0: i32) -> (i32, i32) {
    %c0_i32 = arith.constant 0 : i32
    %c0_i32_0 = arith.constant 0 : i32
    %c0_i32_1 = arith.constant 0 : i32
    return %c0_i32, %c0_i32_0 : i32, i32
  }
}

</mosaic_0001>

<bundles_post_ra>
// kernel: conv2d_1x1.1
= control target key start
LH: loop header
LB: loop body
LE: loop exit
PB: predicated region body
PF: predicated region fallthrough
CT: control target
= control target key end

     0   :  { %s9344_s0 = inlined_call_operand.vmem [shape: f32[1,3840], index: 0, kind: input, shape index: {}]   ;;  %s9345_s1 = inlined_call_operand.vmem [shape: bf16[3840,160], index: 1, kind: input, shape index: {}]   ;;  %s9346_s2 = inlined_call_operand.vmem [shape: f32[1,160], index: 2, kind: input, shape index: {}]   ;;  %s9347_s3 = inlined_call_operand.hbm [shape: f32[1,160], index: 3, kind: output, shape index: {}]  }
   0x1   :  { %v3864_v0 = vld [vmem:[%s9345_s1 + $0x70] sm:$0xf]  ;;  %v5741_v1 = vld [vmem:[%s9345_s1 + $0x74] sm:$0xf0]  ;;  %v3856_v11 = vld [vmem:[%s9345_s1 + $0x60] sm:$0xf] }
   0x2   :  { %v3928_v2 = vld [vmem:[%s9345_s1 + $0xf0] sm:$0xf]  ;;  %v3865_v3 = vor.u32 %v5741_v1, %v3864_v0  ;;  %v5757_v4 = vld [vmem:[%s9345_s1 + $0xf4] sm:$0xf0]  ;;  %v5739_v13 = vld [vmem:[%s9345_s1 + $0x64] sm:$0xf0] }
   0x3   :  { %v3992_v5 = vld [vmem:[%s9345_s1 + $0x170] sm:$0xf]  ;;  %v5773_v6 = vld [vmem:[%s9345_s1 + $0x174] sm:$0xf0]  ;;  %v3929_v7 = vor.u32 %v5757_v4, %v3928_v2  ;;  %v3920_v14 = vld [vmem:[%s9345_s1 + $0xe0] sm:$0xf]  ;;  %v3857_v16 = vor.u32 %v5739_v13, %v3856_v11 }
   0x4   :  { %v3993_v8 = vor.u32 %v5773_v6, %v3992_v5  ;;  %v4056_v9 = vld [vmem:[%s9345_s1 + $0x1f0] sm:$0xf]  ;;  %v5789_v10 = vld [vmem:[%s9345_s1 + $0x1f4] sm:$0xf0]  ;;  %2999 = vmatpush.bf16.msra.mxu0 %v3865_v3  ;;  %v5755_v15 = vld [vmem:[%s9345_s1 + $0xe4] sm:$0xf0] }
   0x5   :  { %v4057_v12 = vor.u32 %v5789_v10, %v4056_v9  ;;  %3012 = vmatpush.bf16.msra.mxu1 %v3929_v7  ;;  %v3921_v17 = vor.u32 %v5755_v15, %v3920_v14  ;;  %v3984_v18 = vld [vmem:[%s9345_s1 + $0x160] sm:$0xf]  ;;  %v5771_v19 = vld [vmem:[%s9345_s1 + $0x164] sm:$0xf0]  ;;  %v3848_v23 = vld [vmem:[%s9345_s1 + $0x50] sm:$0xf] }
   0x6   :  { %3025 = vmatpush.bf16.msra.mxu2 %v3993_v8  ;;  %v4048_v20 = vld [vmem:[%s9345_s1 + $0x1e0] sm:$0xf]  ;;  %v3985_v21 = vor.u32 %v5771_v19, %v3984_v18  ;;  %v5787_v22 = vld [vmem:[%s9345_s1 + $0x1e4] sm:$0xf0]  ;;  %v5737_v24 = vld [vmem:[%s9345_s1 + $0x54] sm:$0xf0] }
   0x7   :  { %3038 = vmatpush.bf16.msra.mxu3 %v4057_v12  ;;  %v4049_v25 = vor.u32 %v5787_v22, %v4048_v20  ;;  %v3912_v26 = vld [vmem:[%s9345_s1 + $0xd0] sm:$0xf]  ;;  %v5753_v27 = vld [vmem:[%s9345_s1 + $0xd4] sm:$0xf0]  ;;  %v3849_v29 = vor.u32 %v5737_v24, %v3848_v23  ;;  %v3840_v35 = vld [vmem:[%s9345_s1 + $0x40] sm:$0xf] }
   0x8   :  { %v3976_v28 = vld [vmem:[%s9345_s1 + $0x150] sm:$0xf]  ;;  %3000 = vmatpush.bf16.msra.mxu0 %v3857_v16  ;;  %v5769_v30 = vld [vmem:[%s9345_s1 + $0x154] sm:$0xf0]  ;;  %v3913_v33 = vor.u32 %v5753_v27, %v3912_v26  ;;  %v5735_v36 = vld [vmem:[%s9345_s1 + $0x44] sm:$0xf0] }
   0x9   :  { %v4040_v31 = vld [vmem:[%s9345_s1 + $0x1d0] sm:$0xf]  ;;  %v5785_v32 = vld [vmem:[%s9345_s1 + $0x1d4] sm:$0xf0]  ;;  %3013 = vmatpush.bf16.msra.mxu1 %v3921_v17  ;;  %v3977_v34 = vor.u32 %v5769_v30, %v3976_v28  ;;  %v3904_v37 = vld [vmem:[%s9345_s1 + $0xc0] sm:$0xf]  ;;  %v3841_v44 = vor.u32 %v5735_v36, %v3840_v35 }
   0xa   :  { %3026 = vmatpush.bf16.msra.mxu2 %v3985_v21  ;;  %v4041_v38 = vor.u32 %v5785_v32, %v4040_v31  ;;  %v5751_v39 = vld [vmem:[%s9345_s1 + $0xc4] sm:$0xf0]  ;;  %v3968_v40 = vld [vmem:[%s9345_s1 + $0x140] sm:$0xf]  ;;  %v3832_v47 = vld [vmem:[%s9345_s1 + $0x30] sm:$0xf] }
   0xb   :  { %3039 = vmatpush.bf16.msra.mxu3 %v4049_v25  ;;  %v5767_v41 = vld [vmem:[%s9345_s1 + $0x144] sm:$0xf0]  ;;  %v4032_v42 = vld [vmem:[%s9345_s1 + $0x1c0] sm:$0xf]  ;;  %v3905_v45 = vor.u32 %v5751_v39, %v3904_v37  ;;  %v5733_v48 = vld [vmem:[%s9345_s1 + $0x34] sm:$0xf0] }
   0xc   :  { %v5783_v43 = vld [vmem:[%s9345_s1 + $0x1c4] sm:$0xf0]  ;;  %3001 = vmatpush.bf16.msra.mxu0 %v3849_v29  ;;  %v3969_v46 = vor.u32 %v5767_v41, %v3968_v40  ;;  %v3896_v49 = vld [vmem:[%s9345_s1 + $0xb0] sm:$0xf]  ;;  %v5749_v51 = vld [vmem:[%s9345_s1 + $0xb4] sm:$0xf0]  ;;  %v3833_v56 = vor.u32 %v5733_v48, %v3832_v47 }
   0xd   :  { %3014 = vmatpush.bf16.msra.mxu1 %v3913_v33  ;;  %v4033_v50 = vor.u32 %v5783_v43, %v4032_v42  ;;  %v3960_v52 = vld [vmem:[%s9345_s1 + $0x130] sm:$0xf]  ;;  %v5765_v53 = vld [vmem:[%s9345_s1 + $0x134] sm:$0xf0]  ;;  %v3897_v57 = vor.u32 %v5749_v51, %v3896_v49  ;;  %v3824_v59 = vld [vmem:[%s9345_s1 + $0x20] sm:$0xf] }
   0xe   :  { %3027 = vmatpush.bf16.msra.mxu2 %v3977_v34  ;;  %v4024_v54 = vld [vmem:[%s9345_s1 + $0x1b0] sm:$0xf]  ;;  %v5781_v55 = vld [vmem:[%s9345_s1 + $0x1b4] sm:$0xf0]  ;;  %v3961_v58 = vor.u32 %v5765_v53, %v3960_v52  ;;  %v5731_v60 = vld [vmem:[%s9345_s1 + $0x24] sm:$0xf0] }
   0xf   :  { %3040 = vmatpush.bf16.msra.mxu3 %v4041_v38  ;;  %v3888_v61 = vld [vmem:[%s9345_s1 + $0xa0] sm:$0xf]  ;;  %v4025_v62 = vor.u32 %v5781_v55, %v4024_v54  ;;  %v5747_v63 = vld [vmem:[%s9345_s1 + $0xa4] sm:$0xf0]  ;;  %v3825_v4 = vor.u32 %v5731_v60, %v3824_v59  ;;  %v3816_v7 = vld [vmem:[%s9345_s1 + $0x10] sm:$0xf] }
  0x10   :  { %3002 = vmatpush.bf16.msra.mxu0 %v3841_v44  ;;  %v3952_v0 = vld [vmem:[%s9345_s1 + $0x120] sm:$0xf]  ;;  %v5763_v1 = vld [vmem:[%s9345_s1 + $0x124] sm:$0xf0]  ;;  %v3889_v5 = vor.u32 %v5747_v63, %v3888_v61  ;;  %v5729_v8 = vld [vmem:[%s9345_s1 + $0x14] sm:$0xf0] }
  0x11   :  { %3015 = vmatpush.bf16.msra.mxu1 %v3905_v45  ;;  %v4016_v2 = vld [vmem:[%s9345_s1 + $0x1a0] sm:$0xf]  ;;  %v5779_v3 = vld [vmem:[%s9345_s1 + $0x1a4] sm:$0xf0]  ;;  %v3953_v6 = vor.u32 %v5763_v1, %v3952_v0  ;;  %v3880_v9 = vld [vmem:[%s9345_s1 + $0x90] sm:$0xf]  ;;  %v3817_v16 = vor.u32 %v5729_v8, %v3816_v7 }
  0x12   :  { %3028 = vmatpush.bf16.msra.mxu2 %v3969_v46  ;;  %v4017_v10 = vor.u32 %v5779_v3, %v4016_v2  ;;  %v5745_v11 = vld [vmem:[%s9345_s1 + $0x94] sm:$0xf0]  ;;  %v3944_v12 = vld [vmem:[%s9345_s1 + $0x110] sm:$0xf]  ;;  %v3808_v17 = vld [vmem:[%s9345_s1] sm:$0xf] }
  0x13   :  { %3041 = vmatpush.bf16.msra.mxu3 %v4033_v50  ;;  %v5761_v13 = vld [vmem:[%s9345_s1 + $0x114] sm:$0xf0]  ;;  %v4008_v14 = vld [vmem:[%s9345_s1 + $0x190] sm:$0xf]  ;;  %v5727_v18 = vld [vmem:[%s9345_s1 + $0x4] sm:$0xf0]  ;;  %v3881_v19 = vor.u32 %v5745_v11, %v3880_v9 }
  0x14   :  { %3003 = vmatpush.bf16.msra.mxu0 %v3833_v56  ;;  %v5777_v15 = vld [vmem:[%s9345_s1 + $0x194] sm:$0xf0]  ;;  %v3945_v20 = vor.u32 %v5761_v13, %v3944_v12  ;;  %v3872_v21 = vld [vmem:[%s9345_s1 + $0x80] sm:$0xf]  ;;  %v5743_v22 = vld [vmem:[%s9345_s1 + $0x84] sm:$0xf0]  ;;  %v3809_v31 = vor.u32 %v5727_v18, %v3808_v17 }
  0x15   :  { %3016 = vmatpush.bf16.msra.mxu1 %v3897_v57  ;;  %v3936_v23 = vld [vmem:[%s9345_s1 + $0x100] sm:$0xf]  ;;  %v4009_v24 = vor.u32 %v5777_v15, %v4008_v14  ;;  %v5759_v25 = vld [vmem:[%s9345_s1 + $0x104] sm:$0xf0]  ;;  %v4120_v28 = vld [vmem:[%s9345_s1 + $0x270] sm:$0xf]  ;;  %v3873_v35 = vor.u32 %v5743_v22, %v3872_v21 }
  0x16   :  { %3029 = vmatpush.bf16.msra.mxu2 %v3961_v58  ;;  %v4000_v26 = vld [vmem:[%s9345_s1 + $0x180] sm:$0xf]  ;;  %v5775_v27 = vld [vmem:[%s9345_s1 + $0x184] sm:$0xf0]  ;;  %v5805_v29 = vld [vmem:[%s9345_s1 + $0x274] sm:$0xf0]  ;;  %v3937_v36 = vor.u32 %v5759_v25, %v3936_v23 }
  0x17   :  { %3042 = vmatpush.bf16.msra.mxu3 %v4025_v62  ;;  %v4184_v30 = vld [vmem:[%s9345_s1 + $0x2f0] sm:$0xf]  ;;  %v5821_v32 = vld [vmem:[%s9345_s1 + $0x2f4] sm:$0xf0]  ;;  %v4001_v39 = vor.u32 %v5775_v27, %v4000_v26  ;;  %v4121_v40 = vor.u32 %v5805_v29, %v4120_v28  ;;  %v4112_v43 = vld [vmem:[%s9345_s1 + $0x260] sm:$0xf] }
  0x18   :  { %3004 = vmatpush.bf16.msra.mxu0 %v3825_v4  ;;  %v4248_v33 = vld [vmem:[%s9345_s1 + $0x370] sm:$0xf]  ;;  %v5837_v34 = vld [vmem:[%s9345_s1 + $0x374] sm:$0xf0]  ;;  %v4185_v41 = vor.u32 %v5821_v32, %v4184_v30  ;;  %v5803_v44 = vld [vmem:[%s9345_s1 + $0x264] sm:$0xf0] }
  0x19   :  { %3017 = vmatpush.bf16.msra.mxu1 %v3889_v5  ;;  %v4312_v37 = vld [vmem:[%s9345_s1 + $0x3f0] sm:$0xf]  ;;  %v5853_v38 = vld [vmem:[%s9345_s1 + $0x3f4] sm:$0xf0]  ;;  %v4249_v42 = vor.u32 %v5837_v34, %v4248_v33  ;;  %v4176_v45 = vld [vmem:[%s9345_s1 + $0x2e0] sm:$0xf]  ;;  %v4113_v52 = vor.u32 %v5803_v44, %v4112_v43 }
  0x1a   :  { %3030 = vmatpush.bf16.msra.mxu2 %v3953_v6  ;;  %v4313_v46 = vor.u32 %v5853_v38, %v4312_v37  ;;  %v5819_v47 = vld [vmem:[%s9345_s1 + $0x2e4] sm:$0xf0]  ;;  %v4240_v48 = vld [vmem:[%s9345_s1 + $0x360] sm:$0xf]  ;;  %v4104_v53 = vld [vmem:[%s9345_s1 + $0x250] sm:$0xf] }
  0x1b   :  { %3043 = vmatpush.bf16.msra.mxu3 %v4017_v10  ;;  %v5835_v49 = vld [vmem:[%s9345_s1 + $0x364] sm:$0xf0]  ;;  %v4304_v50 = vld [vmem:[%s9345_s1 + $0x3e0] sm:$0xf]  ;;  %v5801_v54 = vld [vmem:[%s9345_s1 + $0x254] sm:$0xf0]  ;;  %v4177_v55 = vor.u32 %v5819_v47, %v4176_v45 }
  0x1c   :  { %3005 = vmatpush.bf16.msra.mxu0 %v3817_v16  ;;  %v5851_v51 = vld [vmem:[%s9345_s1 + $0x3e4] sm:$0xf0]  ;;  %v4241_v56 = vor.u32 %v5835_v49, %v4240_v48  ;;  %v4168_v57 = vld [vmem:[%s9345_s1 + $0x2d0] sm:$0xf]  ;;  %v5817_v58 = vld [vmem:[%s9345_s1 + $0x2d4] sm:$0xf0]  ;;  %v4105_v3 = vor.u32 %v5801_v54, %v4104_v53 }
  0x1d   :  { %3018 = vmatpush.bf16.msra.mxu1 %v3881_v19  ;;  %v6510_v59 = vld [vmem:[%s9344_s0] sm:$0xff]  ;;  %v4305_v60 = vor.u32 %v5851_v51, %v4304_v50  ;;  %v4232_v61 = vld [vmem:[%s9345_s1 + $0x350] sm:$0xf]  ;;  %v5833_v62 = vld [vmem:[%s9345_s1 + $0x354] sm:$0xf0]  ;;  %v4169_v7 = vor.u32 %v5817_v58, %v4168_v57 }
  0x1e   :  { %3031 = vmatpush.bf16.msra.mxu2 %v3945_v20  ;;  %v25_v63 = vperm.slane %v6510_v59, 2  ;;  %v23_v0 = vperm.slane %v6510_v59, 0  ;;  %v4296_v1 = vld [vmem:[%s9345_s1 + $0x3d0] sm:$0xf]  ;;  %v5849_v2 = vld [vmem:[%s9345_s1 + $0x3d4] sm:$0xf0]  ;;  %v4233_v8 = vor.u32 %v5833_v62, %v4232_v61 }
  0x1f   :  { %3044 = vmatpush.bf16.msra.mxu3 %v4009_v24  ;;  %v4096_v4 = vld [vmem:[%s9345_s1 + $0x240] sm:$0xf]  ;;  %v5799_v9 = vld [vmem:[%s9345_s1 + $0x244] sm:$0xf0]  ;;  %v26_v11 = vperm.slane %v6510_v59, 3  ;;  %v24_v12 = vperm.slane %v6510_v59, 1  ;;  %v4297_v13 = vor.u32 %v5849_v2, %v4296_v1 }
  0x20   :  { %3006 = vmatpush.bf16.msra.mxu0 %v3809_v31  ;;  %v6529_v5 = vpack.c.bf16 %v25_v63, %v25_v63  ;;  %v6531_v6 = vpack.c.bf16 %v23_v0, %v23_v0  ;;  %v4160_v10 = vld [vmem:[%s9345_s1 + $0x2c0] sm:$0xf]  ;;  %v5815_v14 = vld [vmem:[%s9345_s1 + $0x2c4] sm:$0xf0]  ;;  %v4097_v21 = vor.u32 %v5799_v9, %v4096_v4  ;;  %v4088_v24 = vld [vmem:[%s9345_s1 + $0x230] sm:$0xf] }
  0x21   :  { %3019 = vmatpush.bf16.msra.mxu1 %v3873_v35  ;;  %v4224_v15 = vld [vmem:[%s9345_s1 + $0x340] sm:$0xf]  ;;  %v5831_v16 = vld [vmem:[%s9345_s1 + $0x344] sm:$0xf0]  ;;  %v6558_v19 = vpack.c.bf16 %v26_v11, %v26_v11  ;;  %v6560_v20 = vpack.c.bf16 %v24_v12, %v24_v12  ;;  %v4161_v22 = vor.u32 %v5815_v14, %v4160_v10  ;;  %v5797_v25 = vld [vmem:[%s9345_s1 + $0x234] sm:$0xf0] }
  0x22   :  { %3032 = vmatpush.bf16.msra.mxu2 %v3937_v36  ;;  %v4288_v17 = vld [vmem:[%s9345_s1 + $0x3c0] sm:$0xf]  ;;  %v5847_v18 = vld [vmem:[%s9345_s1 + $0x3c4] sm:$0xf0]  ;;  %v4225_v23 = vor.u32 %v5831_v16, %v4224_v15  ;;  %v4152_v26 = vld [vmem:[%s9345_s1 + $0x2b0] sm:$0xf]  ;;  %v4089_v33 = vor.u32 %v5797_v25, %v4088_v24 }
  0x23   :  { %3045 = vmatpush.bf16.msra.mxu3 %v4001_v39  ;;  %3007 = vmatmul.bf16.vlgmr.msra.gmra.mxu0 %v6531_v6  ;;  %v4289_v27 = vor.u32 %v5847_v18, %v4288_v17  ;;  %v5813_v28 = vld [vmem:[%s9345_s1 + $0x2b4] sm:$0xf0]  ;;  %v4216_v29 = vld [vmem:[%s9345_s1 + $0x330] sm:$0xf]  ;;  %v4080_v36 = vld [vmem:[%s9345_s1 + $0x220] sm:$0xf] }
  0x24   :  { %3051 = vmatpush.bf16.msrb.mxu0 %v4121_v40  ;;  %v5829_v30 = vld [vmem:[%s9345_s1 + $0x334] sm:$0xf0]  ;;  %3020 = vmatmul.bf16.vlgmr.msra.gmra.mxu1 %v6560_v20  ;;  %v4280_v31 = vld [vmem:[%s9345_s1 + $0x3b0] sm:$0xf]  ;;  %v4153_v34 = vor.u32 %v5813_v28, %v4152_v26  ;;  %v5795_v37 = vld [vmem:[%s9345_s1 + $0x224] sm:$0xf0] }
  0x25   :  { %3064 = vmatpush.bf16.msrb.mxu1 %v4185_v41  ;;  %3033 = vmatmul.bf16.vlgmr.msra.gmra.mxu2 %v6529_v5  ;;  %v5845_v32 = vld [vmem:[%s9345_s1 + $0x3b4] sm:$0xf0]  ;;  %v4217_v35 = vor.u32 %v5829_v30, %v4216_v29  ;;  %v4144_v38 = vld [vmem:[%s9345_s1 + $0x2a0] sm:$0xf]  ;;  %v5811_v40 = vld [vmem:[%s9345_s1 + $0x2a4] sm:$0xf0]  ;;  %v4081_v45 = vor.u32 %v5795_v37, %v4080_v36 }
  0x26   :  { %3077 = vmatpush.bf16.msrb.mxu2 %v4249_v42  ;;  %3046 = vmatmul.bf16.vlgmr.msra.gmra.mxu3 %v6558_v19  ;;  %v4281_v39 = vor.u32 %v5845_v32, %v4280_v31  ;;  %v4208_v41 = vld [vmem:[%s9345_s1 + $0x320] sm:$0xf]  ;;  %v5827_v42 = vld [vmem:[%s9345_s1 + $0x324] sm:$0xf0]  ;;  %v4072_v48 = vld [vmem:[%s9345_s1 + $0x210] sm:$0xf] }
  0x27   :  { %3090 = vmatpush.bf16.msrb.mxu3 %v4313_v46  ;;  %v4272_v43 = vld [vmem:[%s9345_s1 + $0x3a0] sm:$0xf]  ;;  %v5843_v44 = vld [vmem:[%s9345_s1 + $0x3a4] sm:$0xf0]  ;;  %v4145_v46 = vor.u32 %v5811_v40, %v4144_v38  ;;  %v4209_v47 = vor.u32 %v5827_v42, %v4208_v41  ;;  %v5793_v49 = vld [vmem:[%s9345_s1 + $0x214] sm:$0xf0] }
  0x28   :  { %3052 = vmatpush.bf16.msrb.mxu0 %v4113_v52  ;;  %v4136_v50 = vld [vmem:[%s9345_s1 + $0x290] sm:$0xf]  ;;  %v4273_v51 = vor.u32 %v5843_v44, %v4272_v43  ;;  %v5809_v52 = vld [vmem:[%s9345_s1 + $0x294] sm:$0xf0]  ;;  %v4073_v57 = vor.u32 %v5793_v49, %v4072_v48  ;;  %v4064_v58 = vld [vmem:[%s9345_s1 + $0x200] sm:$0xf] }
  0x29   :  { %3065 = vmatpush.bf16.msrb.mxu1 %v4177_v55  ;;  %v4200_v53 = vld [vmem:[%s9345_s1 + $0x310] sm:$0xf]  ;;  %v5825_v54 = vld [vmem:[%s9345_s1 + $0x314] sm:$0xf0]  ;;  %v4128_v61 = vld [vmem:[%s9345_s1 + $0x280] sm:$0xf]  ;;  %v4137_v62 = vor.u32 %v5809_v52, %v4136_v50 }
  0x2a   :  { %3078 = vmatpush.bf16.msrb.mxu2 %v4241_v56  ;;  %v4264_v55 = vld [vmem:[%s9345_s1 + $0x390] sm:$0xf]  ;;  %v5841_v56 = vld [vmem:[%s9345_s1 + $0x394] sm:$0xf0]  ;;  %v4201_v63 = vor.u32 %v5825_v54, %v4200_v53  ;;  %v5807_v0 = vld [vmem:[%s9345_s1 + $0x284] sm:$0xf0] }
  0x2b   :  { %3091 = vmatpush.bf16.msrb.mxu3 %v4305_v60  ;;  %v5791_v60 = vld [vmem:[%s9345_s1 + $0x204] sm:$0xf0]  ;;  %v4192_v1 = vld [vmem:[%s9345_s1 + $0x300] sm:$0xf]  ;;  %v5869_v9 = vld [vmem:[%s9345_s1 + $0x474] sm:$0xf0]  ;;  %v4129_v16 = vor.u32 %v5807_v0, %v4128_v61 }
  0x2c   :  { %3053 = vmatpush.bf16.msrb.mxu0 %v4105_v3  ;;  %v5823_v2 = vld [vmem:[%s9345_s1 + $0x304] sm:$0xf0]  ;;  %v4265_v3 = vor.u32 %v5841_v56, %v4264_v55  ;;  %v4256_v4 = vld [vmem:[%s9345_s1 + $0x380] sm:$0xf]  ;;  %v4440_v10 = vld [vmem:[%s9345_s1 + $0x4f0] sm:$0xf]  ;;  %v4065_v12 = vor.u32 %v5791_v60, %v4064_v58 }
  0x2d   :  { %3066 = vmatpush.bf16.msrb.mxu1 %v4169_v7  ;;  %v5839_v7 = vld [vmem:[%s9345_s1 + $0x384] sm:$0xf0]  ;;  %v5885_v11 = vld [vmem:[%s9345_s1 + $0x4f4] sm:$0xf0]  ;;  %v29_v15 = vperm.slane %v6510_v59, 6  ;;  %v4193_v17 = vor.u32 %v5823_v2, %v4192_v1  ;;  %v28_v26 = vperm.slane %v6510_v59, 5 }
  0x2e   :  { %3079 = vmatpush.bf16.msrb.mxu2 %v4233_v8  ;;  %v4376_v8 = vld [vmem:[%s9345_s1 + $0x470] sm:$0xf]  ;;  %v5901_v14 = vld [vmem:[%s9345_s1 + $0x574] sm:$0xf0]  ;;  %v4257_v24 = vor.u32 %v5839_v7, %v4256_v4  ;;  %v4368_v29 = vld [vmem:[%s9345_s1 + $0x460] sm:$0xf] }
  0x2f   :  { %3092 = vmatpush.bf16.msrb.mxu3 %v4297_v13  ;;  %v4504_v13 = vld [vmem:[%s9345_s1 + $0x570] sm:$0xf]  ;;  %v4377_v25 = vor.u32 %v5869_v9, %v4376_v8  ;;  %v5867_v30 = vld [vmem:[%s9345_s1 + $0x464] sm:$0xf0]  ;;  %v4432_v31 = vld [vmem:[%s9345_s1 + $0x4e0] sm:$0xf]  ;;  %v6718_v41 = vpack.c.bf16 %v28_v26, %v28_v26 }
  0x30   :  { %3054 = vmatpush.bf16.msrb.mxu0 %v4097_v21  ;;  %v4568_v18 = vld [vmem:[%s9345_s1 + $0x5f0] sm:$0xf]  ;;  %v5917_v21 = vld [vmem:[%s9345_s1 + $0x5f4] sm:$0xf0]  ;;  %v4505_v28 = vor.u32 %v5901_v14, %v4504_v13  ;;  %v4560_v36 = vld [vmem:[%s9345_s1 + $0x5e0] sm:$0xf]  ;;  %v4369_v40 = vor.u32 %v5867_v30, %v4368_v29 }
  0x31   :  { %3067 = vmatpush.bf16.msrb.mxu1 %v4161_v22  ;;  %v27_v22 = vperm.slane %v6510_v59, 4  ;;  %v4569_v32 = vor.u32 %v5917_v21, %v4568_v18  ;;  %v5915_v37 = vld [vmem:[%s9345_s1 + $0x5e4] sm:$0xf0]  ;;  %v4360_v44 = vld [vmem:[%s9345_s1 + $0x450] sm:$0xf] }
  0x32   :  { %3080 = vmatpush.bf16.msrb.mxu2 %v4225_v23  ;;  %v30_v23 = vperm.slane %v6510_v59, 7  ;;  %v5883_v59 = vld [vmem:[%s9345_s1 + $0x4e4] sm:$0xf0]  ;;  %v5881_v48 = vld [vmem:[%s9345_s1 + $0x4d4] sm:$0xf0] }
  0x33   :  { %3093 = vmatpush.bf16.msrb.mxu3 %v4289_v27  ;;  %v4441_v27 = vor.u32 %v5885_v11, %v4440_v10  ;;  %v6714_v38 = vpack.c.bf16 %v27_v22, %v27_v22  ;;  %v4433_v42 = vor.u32 %v5883_v59, %v4432_v31  ;;  %v4488_v49 = vld [vmem:[%s9345_s1 + $0x550] sm:$0xf]  ;;  %v5897_v50 = vld [vmem:[%s9345_s1 + $0x554] sm:$0xf0]  ;;  %v4352_v56 = vld [vmem:[%s9345_s1 + $0x440] sm:$0xf] }
  0x34   :  { %3055 = vmatpush.bf16.msrb.mxu0 %v4089_v33  ;;  %v4496_v33 = vld [vmem:[%s9345_s1 + $0x560] sm:$0xf]  ;;  %v5913_v52 = vld [vmem:[%s9345_s1 + $0x5d4] sm:$0xf0]  ;;  %v4489_v55 = vor.u32 %v5897_v50, %v4488_v49  ;;  %v5879_v61 = vld [vmem:[%s9345_s1 + $0x4c4] sm:$0xf0] }
  0x35   :  { %3068 = vmatpush.bf16.msrb.mxu1 %v4153_v34  ;;  %v5899_v34 = vld [vmem:[%s9345_s1 + $0x564] sm:$0xf0]  ;;  %v4416_v58 = vld [vmem:[%s9345_s1 + $0x4c0] sm:$0xf]  ;;  %v4344_v7 = vld [vmem:[%s9345_s1 + $0x430] sm:$0xf] }
  0x36   :  { %3081 = vmatpush.bf16.msrb.mxu2 %v4217_v35  ;;  %v6706_v35 = vpack.c.bf16 %v29_v15, %v29_v15  ;;  %v4497_v43 = vor.u32 %v5899_v34, %v4496_v33  ;;  %v4544_v0 = vld [vmem:[%s9345_s1 + $0x5c0] sm:$0xf]  ;;  %v5911_v1 = vld [vmem:[%s9345_s1 + $0x5c4] sm:$0xf0]  ;;  %v5861_v8 = vld [vmem:[%s9345_s1 + $0x434] sm:$0xf0] }
  0x37   :  { %3094 = vmatpush.bf16.msrb.mxu3 %v4281_v39  ;;  %v6716_v39 = vpack.c.bf16 %v30_v23, %v30_v23  ;;  %v4408_v9 = vld [vmem:[%s9345_s1 + $0x4b0] sm:$0xf]  ;;  %v4545_v10 = vor.u32 %v5911_v1, %v4544_v0  ;;  %v5877_v11 = vld [vmem:[%s9345_s1 + $0x4b4] sm:$0xf0]  ;;  %v4336_v21 = vld [vmem:[%s9345_s1 + $0x420] sm:$0xf] }
  0x38   :  { %3056 = vmatpush.bf16.msrb.mxu0 %v4081_v45  ;;  %v5865_v45 = vld [vmem:[%s9345_s1 + $0x454] sm:$0xf0]  ;;  %v4536_v14 = vld [vmem:[%s9345_s1 + $0x5b0] sm:$0xf]  ;;  %v5859_v22 = vld [vmem:[%s9345_s1 + $0x424] sm:$0xf0] }
  0x39   :  { %3069 = vmatpush.bf16.msrb.mxu1 %v4145_v46  ;;  %v4424_v46 = vld [vmem:[%s9345_s1 + $0x4d0] sm:$0xf]  ;;  %v4361_v53 = vor.u32 %v5865_v45, %v4360_v44  ;;  %v5893_v13 = vld [vmem:[%s9345_s1 + $0x534] sm:$0xf0]  ;;  %v4400_v23 = vld [vmem:[%s9345_s1 + $0x4a0] sm:$0xf]  ;;  %v4337_v30 = vor.u32 %v5859_v22, %v4336_v21 }
  0x3a   :  { %3082 = vmatpush.bf16.msrb.mxu2 %v4209_v47  ;;  %v4561_v47 = vor.u32 %v5915_v37, %v4560_v36  ;;  %v4425_v54 = vor.u32 %v5881_v48, %v4424_v46  ;;  %v5909_v15 = vld [vmem:[%s9345_s1 + $0x5b4] sm:$0xf0]  ;;  %v4464_v26 = vld [vmem:[%s9345_s1 + $0x520] sm:$0xf]  ;;  %v5907_v29 = vld [vmem:[%s9345_s1 + $0x5a4] sm:$0xf0] }
  0x3b   :  { %3095 = vmatpush.bf16.msrb.mxu3 %v4273_v51  ;;  %v4552_v51 = vld [vmem:[%s9345_s1 + $0x5d0] sm:$0xf]  ;;  %v5857_v33 = vld [vmem:[%s9345_s1 + $0x414] sm:$0xf0]  ;;  %v4320_v45 = vld [vmem:[%s9345_s1 + $0x400] sm:$0xf] }
  0x3c   :  { %3057 = vmatpush.bf16.msrb.mxu0 %v4073_v57  ;;  %v5863_v57 = vld [vmem:[%s9345_s1 + $0x444] sm:$0xf0]  ;;  %v4553_v60 = vor.u32 %v5913_v52, %v4552_v51  ;;  %v4328_v31 = vld [vmem:[%s9345_s1 + $0x410] sm:$0xf]  ;;  %v5873_v36 = vld [vmem:[%s9345_s1 + $0x494] sm:$0xf0] }
  0x3d   :  { %3070 = vmatpush.bf16.msrb.mxu1 %v4137_v62  ;;  %v4480_v62 = vld [vmem:[%s9345_s1 + $0x540] sm:$0xf]  ;;  %v4353_v2 = vor.u32 %v5863_v57, %v4352_v56  ;;  %v4392_v34 = vld [vmem:[%s9345_s1 + $0x490] sm:$0xf]  ;;  %v5905_v44 = vld [vmem:[%s9345_s1 + $0x594] sm:$0xf0] }
  0x3e   :  { %3083 = vmatpush.bf16.msrb.mxu2 %v4201_v63  ;;  %v5895_v63 = vld [vmem:[%s9345_s1 + $0x544] sm:$0xf0]  ;;  %v4384_v48 = vld [vmem:[%s9345_s1 + $0x480] sm:$0xf] }
  0x3f   :  { %3096 = vmatpush.bf16.msrb.mxu3 %v4265_v3  ;;  %v4417_v3 = vor.u32 %v5879_v61, %v4416_v58  ;;  %v4481_v4 = vor.u32 %v5895_v63, %v4480_v62  ;;  %v5855_v46 = vld [vmem:[%s9345_s1 + $0x404] sm:$0xf0] }
  0x40   :  { %3058 = vmatpush.bf16.msrb.mxu0 %v4065_v12  ;;  %v4472_v12 = vld [vmem:[%s9345_s1 + $0x530] sm:$0xf]  ;;  %v5871_v49 = vld [vmem:[%s9345_s1 + $0x484] sm:$0xf0] }
  0x41   :  { %3071 = vmatpush.bf16.msrb.mxu1 %v4129_v16  ;;  %v4345_v16 = vor.u32 %v5861_v8, %v4344_v7  ;;  %v4473_v18 = vor.u32 %v5893_v13, %v4472_v12 }
  0x42   :  { %3084 = vmatpush.bf16.msrb.mxu2 %v4193_v17  ;;  %v4409_v17 = vor.u32 %v5877_v11, %v4408_v9 }
  0x43   :  { %3097 = vmatpush.bf16.msrb.mxu3 %v4257_v24  ;;  %3059 = vmatmul.bf16.vlgmr.msrb.gmra.mxu0 %v6714_v38  ;;  %v4537_v24 = vor.u32 %v5909_v15, %v4536_v14 }
  0x44   :  { %3103 = vmatpush.bf16.msra.mxu0 %v4377_v25  ;;  %3072 = vmatmul.bf16.vlgmr.msrb.gmra.mxu1 %v6718_v41  ;;  %v5875_v25 = vld [vmem:[%s9345_s1 + $0x4a4] sm:$0xf0] }
  0x45   :  { %3116 = vmatpush.bf16.msra.mxu1 %v4441_v27  ;;  %3085 = vmatmul.bf16.vlgmr.msrb.gmra.mxu2 %v6706_v35  ;;  %v5891_v27 = vld [vmem:[%s9345_s1 + $0x524] sm:$0xf0] }
  0x46   :  { %3129 = vmatpush.bf16.msra.mxu2 %v4505_v28  ;;  %3098 = vmatmul.bf16.vlgmr.msrb.gmra.mxu3 %v6716_v39  ;;  %v4528_v28 = vld [vmem:[%s9345_s1 + $0x5a0] sm:$0xf]  ;;  %v4465_v59 = vor.u32 %v5891_v27, %v4464_v26 }
  0x47   :  { %3142 = vmatpush.bf16.msra.mxu3 %v4569_v32  ;;  %v4401_v32 = vor.u32 %v5875_v25, %v4400_v23  ;;  %v4529_v37 = vor.u32 %v5907_v29, %v4528_v28 }
  0x48   :  { %3104 = vmatpush.bf16.msra.mxu0 %v4369_v40  ;;  %v4456_v40 = vld [vmem:[%s9345_s1 + $0x510] sm:$0xf] }
  0x49   :  { %3117 = vmatpush.bf16.msra.mxu1 %v4433_v42  ;;  %v5889_v42 = vld [vmem:[%s9345_s1 + $0x514] sm:$0xf0] }
  0x4a   :  { %3130 = vmatpush.bf16.msra.mxu2 %v4497_v43  ;;  %v4520_v43 = vld [vmem:[%s9345_s1 + $0x590] sm:$0xf] }
  0x4b   :  { %3143 = vmatpush.bf16.msra.mxu3 %v4561_v47  ;;  %v4329_v47 = vor.u32 %v5857_v33, %v4328_v31 }
  0x4c   :  { %3105 = vmatpush.bf16.msra.mxu0 %v4361_v53 }
  0x4d   :  { %3118 = vmatpush.bf16.msra.mxu1 %v4425_v54 }
  0x4e   :  { %3131 = vmatpush.bf16.msra.mxu2 %v4489_v55 }
  0x4f   :  { %3144 = vmatpush.bf16.msra.mxu3 %v4553_v60 }
  0x50   :  { %3106 = vmatpush.bf16.msra.mxu0 %v4353_v2 }
  0x51   :  { %3119 = vmatpush.bf16.msra.mxu1 %v4417_v3 }
  0x52   :  { %3132 = vmatpush.bf16.msra.mxu2 %v4481_v4 }
  0x53   :  { %3145 = vmatpush.bf16.msra.mxu3 %v4545_v10 }
  0x54   :  { %3107 = vmatpush.bf16.msra.mxu0 %v4345_v16 }
  0x55   :  { %3120 = vmatpush.bf16.msra.mxu1 %v4409_v17 }
  0x56   :  { %3133 = vmatpush.bf16.msra.mxu2 %v4473_v18 }
  0x57   :  { %3146 = vmatpush.bf16.msra.mxu3 %v4537_v24 }
  0x58   :  { %3108 = vmatpush.bf16.msra.mxu0 %v4337_v30 }
  0x59   :  { %8 = vsyncpa [#allocation3], 0  ;;  %3121 = vmatpush.bf16.msra.mxu1 %v4401_v32  ;;  %v4393_v50 = vor.u32 %v5873_v36, %v4392_v34  ;;  %v4457_v51 = vor.u32 %v5889_v42, %v4456_v40  ;;  %v4448_v52 = vld [vmem:[%s9345_s1 + $0x500] sm:$0xf]  ;;  %v5887_v53 = vld [vmem:[%s9345_s1 + $0x504] sm:$0xf0]  ;;  %v4521_v55 = vor.u32 %v5905_v44, %v4520_v43  ;;  %v4321_v63 = vor.u32 %v5855_v46, %v4320_v45 }
  0x5a   :  { %3134 = vmatpush.bf16.msra.mxu2 %v4465_v59  ;;  %v6865_v54 = vld [vmem:[%s9344_s0 + $0x8] sm:$0xff]  ;;  %v4512_v56 = vld [vmem:[%s9345_s1 + $0x580] sm:$0xf]  ;;  %v4632_v58 = vld [vmem:[%s9345_s1 + $0x670] sm:$0xf]  ;;  %v4385_v3 = vor.u32 %v5871_v49, %v4384_v48  ;;  %v4449_v4 = vor.u32 %v5887_v53, %v4448_v52  ;;  %s3797_s9 = sshll.u32 %s9347_s3, 4  ;;  %s3798_s9 = int_to_ptr.hbm [resolvable:$true] %s3797_s9 }
  0x5b   :  { %3147 = vmatpush.bf16.msra.mxu3 %v4529_v37  ;;  %v5903_v57 = vld [vmem:[%s9345_s1 + $0x584] sm:$0xf0]  ;;  %v5933_v60 = vld [vmem:[%s9345_s1 + $0x674] sm:$0xf0]  ;;  %v4696_v61 = vld [vmem:[%s9345_s1 + $0x6f0] sm:$0xf] }
  0x5c   :  { %v5949_v62 = vld [vmem:[%s9345_s1 + $0x6f4] sm:$0xf0]  ;;  %3109 = vmatpush.bf16.msra.mxu0 %v4329_v47  ;;  %v4760_v0 = vld [vmem:[%s9345_s1 + $0x770] sm:$0xf]  ;;  %v31_v2 = vperm.slane %v6865_v54, 0  ;;  %v33_v9 = vperm.slane %v6865_v54, 2  ;;  %v4513_v11 = vor.u32 %v5903_v57, %v4512_v56  ;;  %v4633_v12 = vor.u32 %v5933_v60, %v4632_v58 }
  0x5d   :  { %v5965_v1 = vld [vmem:[%s9345_s1 + $0x774] sm:$0xf0]  ;;  %3122 = vmatpush.bf16.msra.mxu1 %v4393_v50  ;;  %v4824_v7 = vld [vmem:[%s9345_s1 + $0x7f0] sm:$0xf]  ;;  %v32_v10 = vperm.slane %v6865_v54, 1  ;;  %v34_v13 = vperm.slane %v6865_v54, 3  ;;  %v4697_v14 = vor.u32 %v5949_v62, %v4696_v61 }
  0x5e   :  { %3135 = vmatpush.bf16.msra.mxu2 %v4457_v51  ;;  %v5981_v8 = vld [vmem:[%s9345_s1 + $0x7f4] sm:$0xf0]  ;;  %v4761_v15 = vor.u32 %v5965_v1, %v4760_v0  ;;  %v4624_v16 = vld [vmem:[%s9345_s1 + $0x660] sm:$0xf]  ;;  %v5931_v17 = vld [vmem:[%s9345_s1 + $0x664] sm:$0xf0]  ;;  %v6910_v22 = vpack.c.bf16 %v31_v2, %v31_v2  ;;  %v6921_v26 = vpack.c.bf16 %v33_v9, %v33_v9 }
  0x5f   :  { %3148 = vmatpush.bf16.msra.mxu3 %v4521_v55  ;;  %v4688_v18 = vld [vmem:[%s9345_s1 + $0x6e0] sm:$0xf]  ;;  %v4825_v21 = vor.u32 %v5981_v8, %v4824_v7  ;;  %v5947_v23 = vld [vmem:[%s9345_s1 + $0x6e4] sm:$0xf0]  ;;  %v6923_v27 = vpack.c.bf16 %v32_v10, %v32_v10  ;;  %v6931_v30 = vpack.c.bf16 %v34_v13, %v34_v13  ;;  %v4625_v31 = vor.u32 %v5931_v17, %v4624_v16  ;;  %v4616_v33 = vld [vmem:[%s9345_s1 + $0x650] sm:$0xf] }
  0x60   :  { %3110 = vmatpush.bf16.msra.mxu0 %v4321_v63  ;;  %v4752_v24 = vld [vmem:[%s9345_s1 + $0x760] sm:$0xf]  ;;  %v5963_v25 = vld [vmem:[%s9345_s1 + $0x764] sm:$0xf0]  ;;  %v4689_v32 = vor.u32 %v5947_v23, %v4688_v18  ;;  %v5929_v34 = vld [vmem:[%s9345_s1 + $0x654] sm:$0xf0] }
  0x61   :  { %3123 = vmatpush.bf16.msra.mxu1 %v4385_v3  ;;  %v4816_v28 = vld [vmem:[%s9345_s1 + $0x7e0] sm:$0xf]  ;;  %v5979_v29 = vld [vmem:[%s9345_s1 + $0x7e4] sm:$0xf0]  ;;  %v4753_v59 = vor.u32 %v5963_v25, %v4752_v24  ;;  %v4680_v36 = vld [vmem:[%s9345_s1 + $0x6d0] sm:$0xf]  ;;  %v4617_v46 = vor.u32 %v5929_v34, %v4616_v33 }
  0x62   :  { %3136 = vmatpush.bf16.msra.mxu2 %v4449_v4  ;;  %v4817_v37 = vor.u32 %v5979_v29, %v4816_v28  ;;  %v5945_v40 = vld [vmem:[%s9345_s1 + $0x6d4] sm:$0xf0]  ;;  %v4744_v42 = vld [vmem:[%s9345_s1 + $0x750] sm:$0xf]  ;;  %v4608_v49 = vld [vmem:[%s9345_s1 + $0x640] sm:$0xf] }
  0x63   :  { %3149 = vmatpush.bf16.msra.mxu3 %v4513_v11  ;;  %3111 = vmatmul.bf16.vlgmr.msra.gmra.mxu0 %v6910_v22  ;;  %v5961_v43 = vld [vmem:[%s9345_s1 + $0x754] sm:$0xf0]  ;;  %v4808_v44 = vld [vmem:[%s9345_s1 + $0x7d0] sm:$0xf]  ;;  %v4681_v47 = vor.u32 %v5945_v40, %v4680_v36  ;;  %v5927_v50 = vld [vmem:[%s9345_s1 + $0x644] sm:$0xf0] }
  0x64   :  { %3155 = vmatpush.bf16.msrb.mxu0 %v4633_v12  ;;  %3124 = vmatmul.bf16.vlgmr.msra.gmra.mxu1 %v6923_v27  ;;  %v5977_v45 = vld [vmem:[%s9345_s1 + $0x7d4] sm:$0xf0]  ;;  %v4745_v48 = vor.u32 %v5961_v43, %v4744_v42  ;;  %v4672_v51 = vld [vmem:[%s9345_s1 + $0x6c0] sm:$0xf]  ;;  %v5943_v53 = vld [vmem:[%s9345_s1 + $0x6c4] sm:$0xf0]  ;;  %v4609_v60 = vor.u32 %v5927_v50, %v4608_v49 }
  0x65   :  { %3168 = vmatpush.bf16.msrb.mxu1 %v4697_v14  ;;  %3137 = vmatmul.bf16.vlgmr.msra.gmra.mxu2 %v6921_v26  ;;  %v4809_v52 = vor.u32 %v5977_v45, %v4808_v44  ;;  %v4736_v55 = vld [vmem:[%s9345_s1 + $0x740] sm:$0xf]  ;;  %v5959_v56 = vld [vmem:[%s9345_s1 + $0x744] sm:$0xf0]  ;;  %v4673_v61 = vor.u32 %v5943_v53, %v4672_v51  ;;  %v4600_v63 = vld [vmem:[%s9345_s1 + $0x630] sm:$0xf] }
  0x66   :  { %3181 = vmatpush.bf16.msrb.mxu2 %v4761_v15  ;;  %3150 = vmatmul.bf16.vlgmr.msra.gmra.mxu3 %v6931_v30  ;;  %v4800_v57 = vld [vmem:[%s9345_s1 + $0x7c0] sm:$0xf]  ;;  %v5975_v58 = vld [vmem:[%s9345_s1 + $0x7c4] sm:$0xf0]  ;;  %v4737_v62 = vor.u32 %v5959_v56, %v4736_v55  ;;  %v5925_v0 = vld [vmem:[%s9345_s1 + $0x634] sm:$0xf0] }
  0x67   :  { %3194 = vmatpush.bf16.msrb.mxu3 %v4825_v21  ;;  %v4664_v1 = vld [vmem:[%s9345_s1 + $0x6b0] sm:$0xf]  ;;  %v4801_v2 = vor.u32 %v5975_v58, %v4800_v57  ;;  %v5941_v3 = vld [vmem:[%s9345_s1 + $0x6b4] sm:$0xf0]  ;;  %v4601_v10 = vor.u32 %v5925_v0, %v4600_v63  ;;  %v4592_v13 = vld [vmem:[%s9345_s1 + $0x620] sm:$0xf] }
  0x68   :  { %3156 = vmatpush.bf16.msrb.mxu0 %v4625_v31  ;;  %v4728_v4 = vld [vmem:[%s9345_s1 + $0x730] sm:$0xf]  ;;  %v5957_v7 = vld [vmem:[%s9345_s1 + $0x734] sm:$0xf0]  ;;  %v4665_v11 = vor.u32 %v5941_v3, %v4664_v1  ;;  %v5923_v14 = vld [vmem:[%s9345_s1 + $0x624] sm:$0xf0] }
  0x69   :  { %3169 = vmatpush.bf16.msrb.mxu1 %v4689_v32  ;;  %v4792_v8 = vld [vmem:[%s9345_s1 + $0x7b0] sm:$0xf]  ;;  %v5973_v9 = vld [vmem:[%s9345_s1 + $0x7b4] sm:$0xf0]  ;;  %v4729_v12 = vor.u32 %v5957_v7, %v4728_v4  ;;  %v4656_v15 = vld [vmem:[%s9345_s1 + $0x6a0] sm:$0xf]  ;;  %v4593_v25 = vor.u32 %v5923_v14, %v4592_v13 }
  0x6a   :  { %3182 = vmatpush.bf16.msrb.mxu2 %v4753_v59  ;;  %v4793_v16 = vor.u32 %v5973_v9, %v4792_v8  ;;  %v5939_v17 = vld [vmem:[%s9345_s1 + $0x6a4] sm:$0xf0]  ;;  %v4720_v18 = vld [vmem:[%s9345_s1 + $0x720] sm:$0xf]  ;;  %v4584_v31 = vld [vmem:[%s9345_s1 + $0x610] sm:$0xf] }
  0x6b   :  { %3195 = vmatpush.bf16.msrb.mxu3 %v4817_v37  ;;  %v5955_v21 = vld [vmem:[%s9345_s1 + $0x724] sm:$0xf0]  ;;  %v4784_v23 = vld [vmem:[%s9345_s1 + $0x7a0] sm:$0xf]  ;;  %v4657_v28 = vor.u32 %v5939_v17, %v4656_v15  ;;  %v5921_v32 = vld [vmem:[%s9345_s1 + $0x614] sm:$0xf0] }
  0x6c   :  { %3157 = vmatpush.bf16.msrb.mxu0 %v4617_v46  ;;  %v5971_v24 = vld [vmem:[%s9345_s1 + $0x7a4] sm:$0xf0]  ;;  %v4721_v29 = vor.u32 %v5955_v21, %v4720_v18  ;;  %v4648_v59 = vld [vmem:[%s9345_s1 + $0x690] sm:$0xf]  ;;  %v5937_v34 = vld [vmem:[%s9345_s1 + $0x694] sm:$0xf0]  ;;  %v4585_v43 = vor.u32 %v5921_v32, %v4584_v31 }
  0x6d   :  { %3170 = vmatpush.bf16.msrb.mxu1 %v4681_v47  ;;  %v4785_v33 = vor.u32 %v5971_v24, %v4784_v23  ;;  %v4712_v36 = vld [vmem:[%s9345_s1 + $0x710] sm:$0xf]  ;;  %v5953_v37 = vld [vmem:[%s9345_s1 + $0x714] sm:$0xf0]  ;;  %v4576_v44 = vld [vmem:[%s9345_s1 + $0x600] sm:$0xf]  ;;  %v4649_v47 = vor.u32 %v5937_v34, %v4648_v59 }
  0x6e   :  { %3183 = vmatpush.bf16.msrb.mxu2 %v4745_v48  ;;  %v4776_v40 = vld [vmem:[%s9345_s1 + $0x790] sm:$0xf]  ;;  %v5969_v42 = vld [vmem:[%s9345_s1 + $0x794] sm:$0xf0]  ;;  %v5919_v45 = vld [vmem:[%s9345_s1 + $0x604] sm:$0xf0]  ;;  %v4713_v48 = vor.u32 %v5953_v37, %v4712_v36 }
  0x6f   :  { %3196 = vmatpush.bf16.msrb.mxu3 %v4809_v52  ;;  %v4640_v46 = vld [vmem:[%s9345_s1 + $0x680] sm:$0xf]  ;;  %v5935_v49 = vld [vmem:[%s9345_s1 + $0x684] sm:$0xf0]  ;;  %v4777_v52 = vor.u32 %v5969_v42, %v4776_v40  ;;  %v4888_v56 = vld [vmem:[%s9345_s1 + $0x870] sm:$0xf] }
  0x70   :  { %3158 = vmatpush.bf16.msrb.mxu0 %v4609_v60  ;;  %v4704_v50 = vld [vmem:[%s9345_s1 + $0x700] sm:$0xf]  ;;  %v5951_v51 = vld [vmem:[%s9345_s1 + $0x704] sm:$0xf0]  ;;  %v5997_v57 = vld [vmem:[%s9345_s1 + $0x874] sm:$0xf0]  ;;  %v4641_v1 = vor.u32 %v5935_v49, %v4640_v46 }
  0x71   :  { %3171 = vmatpush.bf16.msrb.mxu1 %v4673_v61  ;;  %v4768_v53 = vld [vmem:[%s9345_s1 + $0x780] sm:$0xf]  ;;  %v5967_v55 = vld [vmem:[%s9345_s1 + $0x784] sm:$0xf0]  ;;  %v4952_v58 = vld [vmem:[%s9345_s1 + $0x8f0] sm:$0xf]  ;;  %v4577_v61 = vor.u32 %v5919_v45, %v4576_v44 }
  0x72   :  { %3184 = vmatpush.bf16.msrb.mxu2 %v4737_v62  ;;  %v6013_v60 = vld [vmem:[%s9345_s1 + $0x8f4] sm:$0xf0]  ;;  %v5016_v62 = vld [vmem:[%s9345_s1 + $0x970] sm:$0xf]  ;;  %v35_v0 = vperm.slane %v6865_v54, 4  ;;  %v37_v7 = vperm.slane %v6865_v54, 6  ;;  %v4769_v9 = vor.u32 %v5967_v55, %v4768_v53 }
  0x73   :  { %3197 = vmatpush.bf16.msrb.mxu3 %v4801_v2  ;;  %v6029_v63 = vld [vmem:[%s9345_s1 + $0x974] sm:$0xf0]  ;;  %v4705_v2 = vor.u32 %v5951_v51, %v4704_v50  ;;  %v5080_v3 = vld [vmem:[%s9345_s1 + $0x9f0] sm:$0xf]  ;;  %v36_v8 = vperm.slane %v6865_v54, 5  ;;  %vm3782_vm0 = vcmask 1040384  }
  0x74   :  { %3159 = vmatpush.bf16.msrb.mxu0 %v4601_v10  ;;  %v6045_v4 = vld [vmem:[%s9345_s1 + $0x9f4] sm:$0xf0]  ;;  %v4889_v10 = vor.u32 %v5997_v57, %v4888_v56  ;;  %v5017_v13 = vor.u32 %v6029_v63, %v5016_v62  ;;  %v4880_v14 = vld [vmem:[%s9345_s1 + $0x860] sm:$0xf]  ;;  %v5995_v15 = vld [vmem:[%s9345_s1 + $0x864] sm:$0xf0]  ;;  %v7118_v18 = vpack.c.bf16 %v35_v0, %v35_v0  ;;  %v7129_v24 = vpack.c.bf16 %v37_v7, %v37_v7 }
  0x75   :  { %3172 = vmatpush.bf16.msrb.mxu1 %v4665_v11  ;;  %v38_v11 = vperm.slane %v6865_v54, 7  ;;  %v5081_v17 = vor.u32 %v6045_v4, %v5080_v3  ;;  %v6011_v54 = vld [vmem:[%s9345_s1 + $0x8e4] sm:$0xf0]  ;;  %v5008_v21 = vld [vmem:[%s9345_s1 + $0x960] sm:$0xf]  ;;  %v4881_v32 = vor.u32 %v5995_v15, %v4880_v14 }
  0x76   :  { %3185 = vmatpush.bf16.msrb.mxu2 %v4729_v12  ;;  %v4953_v12 = vor.u32 %v6013_v60, %v4952_v58  ;;  %v6027_v23 = vld [vmem:[%s9345_s1 + $0x964] sm:$0xf0]  ;;  %v4872_v34 = vld [vmem:[%s9345_s1 + $0x850] sm:$0xf]  ;;  %v5993_v36 = vld [vmem:[%s9345_s1 + $0x854] sm:$0xf0] }
  0x77   :  { %3198 = vmatpush.bf16.msrb.mxu3 %v4793_v16  ;;  %v4944_v16 = vld [vmem:[%s9345_s1 + $0x8e0] sm:$0xf]  ;;  %v7139_v31 = vpack.c.bf16 %v38_v11, %v38_v11  ;;  %v4936_v37 = vld [vmem:[%s9345_s1 + $0x8d0] sm:$0xf]  ;;  %v6009_v42 = vld [vmem:[%s9345_s1 + $0x8d4] sm:$0xf0] }
  0x78   :  { %3160 = vmatpush.bf16.msrb.mxu0 %v4593_v25  ;;  %v7131_v25 = vpack.c.bf16 %v36_v8, %v36_v8  ;;  %v4945_v59 = vor.u32 %v6011_v54, %v4944_v16  ;;  %v6025_v44 = vld [vmem:[%s9345_s1 + $0x954] sm:$0xf0]  ;;  %v5064_v45 = vld [vmem:[%s9345_s1 + $0x9d0] sm:$0xf]  ;;  %v4864_v50 = vld [vmem:[%s9345_s1 + $0x840] sm:$0xf] }
  0x79   :  { %3173 = vmatpush.bf16.msrb.mxu1 %v4657_v28  ;;  %v5072_v28 = vld [vmem:[%s9345_s1 + $0x9e0] sm:$0xf]  ;;  %v6041_v46 = vld [vmem:[%s9345_s1 + $0x9d4] sm:$0xf0]  ;;  %v5991_v51 = vld [vmem:[%s9345_s1 + $0x844] sm:$0xf0] }
  0x7a   :  { %3186 = vmatpush.bf16.msrb.mxu2 %v4721_v29  ;;  %v6043_v29 = vld [vmem:[%s9345_s1 + $0x9e4] sm:$0xf0]  ;;  %v5065_v53 = vor.u32 %v6041_v46, %v5064_v45  ;;  %v4992_v56 = vld [vmem:[%s9345_s1 + $0x940] sm:$0xf]  ;;  %v4856_v0 = vld [vmem:[%s9345_s1 + $0x830] sm:$0xf] }
  0x7b   :  { %3199 = vmatpush.bf16.msrb.mxu3 %v4785_v33  ;;  %v5009_v33 = vor.u32 %v6027_v23, %v5008_v21  ;;  %v5073_v40 = vor.u32 %v6043_v29, %v5072_v28  ;;  %v6007_v55 = vld [vmem:[%s9345_s1 + $0x8c4] sm:$0xf0]  ;;  %v5056_v58 = vld [vmem:[%s9345_s1 + $0x9c0] sm:$0xf]  ;;  %v6005_v4 = vld [vmem:[%s9345_s1 + $0x8b4] sm:$0xf0] }
  0x7c   :  { %3161 = vmatpush.bf16.msrb.mxu0 %v4585_v43  ;;  %v5000_v43 = vld [vmem:[%s9345_s1 + $0x950] sm:$0xf]  ;;  %v6023_v57 = vld [vmem:[%s9345_s1 + $0x944] sm:$0xf0]  ;;  %v6021_v8 = vld [vmem:[%s9345_s1 + $0x934] sm:$0xf0] }
  0x7d   :  { %3174 = vmatpush.bf16.msrb.mxu1 %v4649_v47  ;;  %v4873_v47 = vor.u32 %v5993_v36, %v4872_v34  ;;  %v5001_v49 = vor.u32 %v6025_v44, %v5000_v43  ;;  %v6039_v60 = vld [vmem:[%s9345_s1 + $0x9c4] sm:$0xf0]  ;;  %v4993_v63 = vor.u32 %v6023_v57, %v4992_v56  ;;  %v4984_v7 = vld [vmem:[%s9345_s1 + $0x930] sm:$0xf]  ;;  %v4848_v14 = vld [vmem:[%s9345_s1 + $0x820] sm:$0xf] }
  0x7e   :  { %3187 = vmatpush.bf16.msrb.mxu2 %v4713_v48  ;;  %v4937_v48 = vor.u32 %v6009_v42, %v4936_v37  ;;  %v5057_v3 = vor.u32 %v6039_v60, %v5056_v58  ;;  %v5987_v15 = vld [vmem:[%s9345_s1 + $0x824] sm:$0xf0]  ;;  %v4912_v16 = vld [vmem:[%s9345_s1 + $0x8a0] sm:$0xf]  ;;  %v4840_v34 = vld [vmem:[%s9345_s1 + $0x810] sm:$0xf] }
  0x7f   :  { %3200 = vmatpush.bf16.msrb.mxu3 %v4777_v52  ;;  %v4928_v52 = vld [vmem:[%s9345_s1 + $0x8c0] sm:$0xf]  ;;  %v6003_v54 = vld [vmem:[%s9345_s1 + $0x8a4] sm:$0xf0]  ;;  %v5985_v36 = vld [vmem:[%s9345_s1 + $0x814] sm:$0xf0] }
  0x80   :  { %3162 = vmatpush.bf16.msrb.mxu0 %v4577_v61  ;;  %v4865_v61 = vor.u32 %v5991_v51, %v4864_v50  ;;  %v4929_v62 = vor.u32 %v6007_v55, %v4928_v52  ;;  %v4976_v21 = vld [vmem:[%s9345_s1 + $0x920] sm:$0xf]  ;;  %v6019_v23 = vld [vmem:[%s9345_s1 + $0x924] sm:$0xf0]  ;;  %v4904_v37 = vld [vmem:[%s9345_s1 + $0x890] sm:$0xf] }
  0x81   :  { %3175 = vmatpush.bf16.msrb.mxu1 %v4641_v1  ;;  %v5989_v1 = vld [vmem:[%s9345_s1 + $0x834] sm:$0xf0]  ;;  %v5040_v28 = vld [vmem:[%s9345_s1 + $0x9a0] sm:$0xf]  ;;  %v6035_v29 = vld [vmem:[%s9345_s1 + $0x9a4] sm:$0xf0] }
  0x82   :  { %3188 = vmatpush.bf16.msrb.mxu2 %v4705_v2  ;;  %v4920_v2 = vld [vmem:[%s9345_s1 + $0x8b0] sm:$0xf]  ;;  %v4857_v11 = vor.u32 %v5989_v1, %v4856_v0  ;;  %v6001_v42 = vld [vmem:[%s9345_s1 + $0x894] sm:$0xf0]  ;;  %v4896_v50 = vld [vmem:[%s9345_s1 + $0x880] sm:$0xf] }
  0x83   :  { %3201 = vmatpush.bf16.msrb.mxu3 %v4769_v9  ;;  %3163 = vmatmul.bf16.vlgmr.msrb.gmra.mxu0 %v7118_v18  ;;  %v5048_v9 = vld [vmem:[%s9345_s1 + $0x9b0] sm:$0xf]  ;;  %v6017_v44 = vld [vmem:[%s9345_s1 + $0x914] sm:$0xf0]  ;;  %v5999_v51 = vld [vmem:[%s9345_s1 + $0x884] sm:$0xf0]  ;;  %v4905_v52 = vor.u32 %v6001_v42, %v4904_v37 }
  0x84   :  { %3207 = vmatpush.bf16.msra.mxu0 %v4889_v10  ;;  %3176 = vmatmul.bf16.vlgmr.msrb.gmra.mxu1 %v7131_v25  ;;  %v6037_v10 = vld [vmem:[%s9345_s1 + $0x9b4] sm:$0xf0]  ;;  %v4968_v43 = vld [vmem:[%s9345_s1 + $0x910] sm:$0xf]  ;;  %v4960_v55 = vld [vmem:[%s9345_s1 + $0x900] sm:$0xf] }
  0x85   :  { %3220 = vmatpush.bf16.msra.mxu1 %v4953_v12  ;;  %3189 = vmatmul.bf16.vlgmr.msrb.gmra.mxu2 %v7129_v24  ;;  %v4921_v12 = vor.u32 %v6005_v4, %v4920_v2  ;;  %v5032_v45 = vld [vmem:[%s9345_s1 + $0x990] sm:$0xf]  ;;  %v6033_v46 = vld [vmem:[%s9345_s1 + $0x994] sm:$0xf0]  ;;  %v6015_v56 = vld [vmem:[%s9345_s1 + $0x904] sm:$0xf0] }
  0x86   :  { %3233 = vmatpush.bf16.msra.mxu2 %v5017_v13  ;;  %3202 = vmatmul.bf16.vlgmr.msrb.gmra.mxu3 %v7139_v31  ;;  %v4985_v13 = vor.u32 %v6021_v8, %v4984_v7  ;;  %v7286_v57 = vld [vmem:[%s9344_s0 + $0x10] sm:$0xff]  ;;  %v5033_v58 = vor.u32 %v6033_v46, %v5032_v45  ;;  %v5024_v60 = vld [vmem:[%s9345_s1 + $0x980] sm:$0xf]  ;;  %v6077_v1 = vld [vmem:[%s9345_s1 + $0xaf4] sm:$0xf0]  ;;  %v4897_v8 = vor.u32 %v5999_v51, %v4896_v50 }
  0x87   :  { %3246 = vmatpush.bf16.msra.mxu3 %v5081_v17  ;;  %v5049_v17 = vor.u32 %v6037_v10, %v5048_v9  ;;  %v5208_v0 = vld [vmem:[%s9345_s1 + $0xaf0] sm:$0xf]  ;;  %v6093_v4 = vld [vmem:[%s9345_s1 + $0xb74] sm:$0xf0]  ;;  %v39_v7 = vperm.slane %v7286_v57, 0  ;;  %v4961_v9 = vor.u32 %v6015_v56, %v4960_v55 }
  0x88   :  { %3208 = vmatpush.bf16.msra.mxu0 %v4881_v32  ;;  %v4849_v32 = vor.u32 %v5987_v15, %v4848_v14  ;;  %v5336_v10 = vld [vmem:[%s9345_s1 + $0xbf0] sm:$0xf]  ;;  %v6107_v42 = vld [vmem:[%s9345_s1 + $0xbe4] sm:$0xf0]  ;;  %v6073_v51 = vld [vmem:[%s9345_s1 + $0xad4] sm:$0xf0] }
  0x89   :  { %3221 = vmatpush.bf16.msra.mxu1 %v4945_v59  ;;  %v4913_v59 = vor.u32 %v6003_v54, %v4912_v16  ;;  %v42_v16 = vperm.slane %v7286_v57, 3  ;;  %v5320_v55 = vld [vmem:[%s9345_s1 + $0xbd0] sm:$0xf]  ;;  %v6105_v56 = vld [vmem:[%s9345_s1 + $0xbd4] sm:$0xf0] }
  0x8a   :  { %3234 = vmatpush.bf16.msra.mxu2 %v5009_v33  ;;  %v4977_v33 = vor.u32 %v6019_v23, %v4976_v21  ;;  %v5136_v21 = vld [vmem:[%s9345_s1 + $0xa60] sm:$0xf]  ;;  %v6059_v23 = vld [vmem:[%s9345_s1 + $0xa64] sm:$0xf0] }
  0x8b   :  { %3247 = vmatpush.bf16.msra.mxu3 %v5073_v40  ;;  %v5041_v40 = vor.u32 %v6035_v29, %v5040_v28  ;;  %v5200_v28 = vld [vmem:[%s9345_s1 + $0xae0] sm:$0xf] }
  0x8c   :  { %3209 = vmatpush.bf16.msra.mxu0 %v4873_v47  ;;  %v4832_v47 = vld [vmem:[%s9345_s1 + $0x800] sm:$0xf] }
  0x8d   :  { %3222 = vmatpush.bf16.msra.mxu1 %v4937_v48  ;;  %v4841_v48 = vor.u32 %v5985_v36, %v4840_v34  ;;  %v6091_v34 = vld [vmem:[%s9345_s1 + $0xb64] sm:$0xf0] }
  0x8e   :  { %3235 = vmatpush.bf16.msra.mxu2 %v5001_v49  ;;  %v5983_v49 = vld [vmem:[%s9345_s1 + $0x804] sm:$0xf0] }
  0x8f   :  { %3248 = vmatpush.bf16.msra.mxu3 %v5065_v53  ;;  %v4969_v53 = vor.u32 %v6017_v44, %v4968_v43  ;;  %v4833_v2 = vor.u32 %v5983_v49, %v4832_v47  ;;  %v7352_v43 = vpack.c.bf16 %v42_v16, %v42_v16  ;;  %v5137_v44 = vor.u32 %v6059_v23, %v5136_v21  ;;  %v5128_v47 = vld [vmem:[%s9345_s1 + $0xa50] sm:$0xf]  ;;  %v6085_v23 = vld [vmem:[%s9345_s1 + $0xb34] sm:$0xf0] }
  0x90   :  { %3210 = vmatpush.bf16.msra.mxu0 %v4865_v61  ;;  %v6031_v61 = vld [vmem:[%s9345_s1 + $0x984] sm:$0xf0]  ;;  %v5192_v49 = vld [vmem:[%s9345_s1 + $0xad0] sm:$0xf] }
  0x91   :  { %3223 = vmatpush.bf16.msra.mxu1 %v4929_v62  ;;  %v5144_v62 = vld [vmem:[%s9345_s1 + $0xa70] sm:$0xf]  ;;  %v5025_v14 = vor.u32 %v6031_v61, %v5024_v60  ;;  %v5120_v60 = vld [vmem:[%s9345_s1 + $0xa40] sm:$0xf]  ;;  %v5193_v61 = vor.u32 %v6073_v51, %v5192_v49 }
  0x92   :  { %3236 = vmatpush.bf16.msra.mxu2 %v4993_v63  ;;  %v6061_v63 = vld [vmem:[%s9345_s1 + $0xa74] sm:$0xf0]  ;;  %v5240_v21 = vld [vmem:[%s9345_s1 + $0xb30] sm:$0xf]  ;;  %v5232_v49 = vld [vmem:[%s9345_s1 + $0xb20] sm:$0xf] }
  0x93   :  { %3249 = vmatpush.bf16.msra.mxu3 %v5057_v3  ;;  %v5272_v3 = vld [vmem:[%s9345_s1 + $0xb70] sm:$0xf]  ;;  %v5145_v15 = vor.u32 %v6061_v63, %v5144_v62  ;;  %v6055_v63 = vld [vmem:[%s9345_s1 + $0xa44] sm:$0xf0]  ;;  %v5296_v51 = vld [vmem:[%s9345_s1 + $0xba0] sm:$0xf] }
  0x94   :  { %3211 = vmatpush.bf16.msra.mxu0 %v4857_v11  ;;  %v6109_v11 = vld [vmem:[%s9345_s1 + $0xbf4] sm:$0xf0]  ;;  %v5273_v54 = vor.u32 %v6093_v4, %v5272_v3  ;;  %v5248_v3 = vld [vmem:[%s9345_s1 + $0xb40] sm:$0xf]  ;;  %v6087_v4 = vld [vmem:[%s9345_s1 + $0xb44] sm:$0xf0] }
  0x95   :  { %3224 = vmatpush.bf16.msra.mxu1 %v4921_v12  ;;  %v41_v12 = vperm.slane %v7286_v57, 2  ;;  %v5337_v29 = vor.u32 %v6109_v11, %v5336_v10  ;;  %v5121_v10 = vor.u32 %v6055_v63, %v5120_v60  ;;  %v5112_v11 = vld [vmem:[%s9345_s1 + $0xa30] sm:$0xf] }
  0x96   :  { %3237 = vmatpush.bf16.msra.mxu2 %v4985_v13  ;;  %v40_v13 = vperm.slane %v7286_v57, 1  ;;  %v5160_v63 = vld [vmem:[%s9345_s1 + $0xa90] sm:$0xf] }
  0x97   :  { %3250 = vmatpush.bf16.msra.mxu3 %v5049_v17  ;;  %v5209_v17 = vor.u32 %v6077_v1, %v5208_v0  ;;  %v7342_v36 = vpack.c.bf16 %v41_v12, %v41_v12  ;;  %v5184_v0 = vld [vmem:[%s9345_s1 + $0xac0] sm:$0xf]  ;;  %v6071_v1 = vld [vmem:[%s9345_s1 + $0xac4] sm:$0xf0] }
  0x98   :  { %3212 = vmatpush.bf16.msra.mxu0 %v4849_v32  ;;  %v7331_v32 = vpack.c.bf16 %v39_v7, %v39_v7  ;;  %v7344_v37 = vpack.c.bf16 %v40_v13, %v40_v13  ;;  %v593_v7 = vld [vmem:[%s9346_s2] sm:$0x3]  ;;  %v5185_v12 = vor.u32 %v6071_v1, %v5184_v0  ;;  %v5249_v13 = vor.u32 %v6087_v4, %v5248_v3  ;;  %v5224_v3 = vld [vmem:[%s9345_s1 + $0xb10] sm:$0xf]  ;;  %v6081_v4 = vld [vmem:[%s9345_s1 + $0xb14] sm:$0xf0] }
  0x99   :  { %3225 = vmatpush.bf16.msra.mxu1 %v4913_v59  ;;  %v6075_v59 = vld [vmem:[%s9345_s1 + $0xae4] sm:$0xf0]  ;;  %v2995_v16 = vperm.slane %v593_v7, 0 }
  0x9a   :  { %3238 = vmatpush.bf16.msra.mxu2 %v4977_v33  ;;  %v5264_v33 = vld [vmem:[%s9345_s1 + $0xb60] sm:$0xf]  ;;  %v5201_v45 = vor.u32 %v6075_v59, %v5200_v28  ;;  %v5304_v28 = vld [vmem:[%s9345_s1 + $0xbb0] sm:$0xf] }
  0x9b   :  { %3251 = vmatpush.bf16.msra.mxu3 %v5041_v40  ;;  %v5328_v40 = vld [vmem:[%s9345_s1 + $0xbe0] sm:$0xf]  ;;  %v5265_v46 = vor.u32 %v6091_v34, %v5264_v33 }
  0x9c   :  { %3213 = vmatpush.bf16.msra.mxu0 %v4841_v48  ;;  %v6057_v48 = vld [vmem:[%s9345_s1 + $0xa54] sm:$0xf0]  ;;  %v5329_v50 = vor.u32 %v6107_v42, %v5328_v40  ;;  %v5241_v40 = vor.u32 %v6085_v23, %v5240_v21  ;;  %v5104_v42 = vld [vmem:[%s9345_s1 + $0xa20] sm:$0xf]  ;;  %v6079_v21 = vld [vmem:[%s9345_s1 + $0xb04] sm:$0xf0] }
  0x9d   :  { %3226 = vmatpush.bf16.msra.mxu1 %v4905_v52  ;;  %v5256_v52 = vld [vmem:[%s9345_s1 + $0xb50] sm:$0xf] }
  0x9e   :  { %3239 = vmatpush.bf16.msra.mxu2 %v4969_v53  ;;  %v6089_v53 = vld [vmem:[%s9345_s1 + $0xb54] sm:$0xf0] }
  0x9f   :  { %3252 = vmatpush.bf16.msra.mxu3 %v5033_v58  ;;  %v5129_v58 = vor.u32 %v6057_v48, %v5128_v47  ;;  %v5257_v62 = vor.u32 %v6089_v53, %v5256_v52  ;;  %v6067_v48 = vld [vmem:[%s9345_s1 + $0xaa4] sm:$0xf0] }
  0xa0   :  { %3214 = vmatpush.bf16.msra.mxu0 %v4833_v2  ;;  %v5321_v2 = vor.u32 %v6105_v56, %v5320_v55  ;;  %v3008_v33 = vpop.f32.mrf.mxu0  ;;  %v6099_v52 = vld [vmem:[%s9345_s1 + $0xba4] sm:$0xf0] }
  0xa1   :  { %3227 = vmatpush.bf16.msra.mxu1 %v4897_v8  ;;  %v5312_v8 = vld [vmem:[%s9345_s1 + $0xbc0] sm:$0xf]  ;;  %v3021_v53 = vpop.f32.mrf.mxu1  ;;  %v5297_v1 = vor.u32 %v6099_v52, %v5296_v51  ;;  %v5592_v52 = vld [vmem:[%s9345_s1 + $0xdf0] sm:$0xf] }
  0xa2   :  { %3240 = vmatpush.bf16.msra.mxu2 %v4961_v9  ;;  %v6103_v9 = vld [vmem:[%s9345_s1 + $0xbc4] sm:$0xf0] }
  0xa3   :  { %3253 = vmatpush.bf16.msra.mxu3 %v5025_v14  ;;  %3215 = vmatmul.bf16.vlgmr.msra.gmra.mxu0 %v7331_v32  ;;  %v6053_v14 = vld [vmem:[%s9345_s1 + $0xa34] sm:$0xf0] }
  0xa4   :  { %3259 = vmatpush.bf16.msrb.mxu0 %v5145_v15  ;;  %3228 = vmatmul.bf16.vlgmr.msra.gmra.mxu1 %v7344_v37  ;;  %v5176_v15 = vld [vmem:[%s9345_s1 + $0xab0] sm:$0xf]  ;;  %v5113_v59 = vor.u32 %v6053_v14, %v5112_v11  ;;  %v5088_v11 = vld [vmem:[%s9345_s1 + $0xa00] sm:$0xf] }
  0xa5   :  { %3272 = vmatpush.bf16.msrb.mxu1 %v5209_v17  ;;  %3241 = vmatmul.bf16.vlgmr.msra.gmra.mxu2 %v7342_v36  ;;  %v5313_v17 = vor.u32 %v6103_v9, %v5312_v8  ;;  %v5288_v8 = vld [vmem:[%s9345_s1 + $0xb90] sm:$0xf]  ;;  %v6097_v9 = vld [vmem:[%s9345_s1 + $0xb94] sm:$0xf0] }
  0xa6   :  { %3285 = vmatpush.bf16.msrb.mxu2 %v5273_v54  ;;  %3254 = vmatmul.bf16.vlgmr.msra.gmra.mxu3 %v7352_v43  ;;  %v6069_v54 = vld [vmem:[%s9345_s1 + $0xab4] sm:$0xf0]  ;;  %v5289_v23 = vor.u32 %v6097_v9, %v5288_v8  ;;  %v5520_v8 = vld [vmem:[%s9345_s1 + $0xd60] sm:$0xf]  ;;  %v6155_v9 = vld [vmem:[%s9345_s1 + $0xd64] sm:$0xf0] }
  0xa7   :  { %3298 = vmatpush.bf16.msrb.mxu3 %v5337_v29  ;;  %v6101_v29 = vld [vmem:[%s9345_s1 + $0xbb4] sm:$0xf0]  ;;  %v5177_v34 = vor.u32 %v6069_v54, %v5176_v15  ;;  %v5216_v54 = vld [vmem:[%s9345_s1 + $0xb00] sm:$0xf] }
  0xa8   :  { %3260 = vmatpush.bf16.msrb.mxu0 %v5137_v44  ;;  %v6051_v44 = vld [vmem:[%s9345_s1 + $0xa24] sm:$0xf0]  ;;  %v5305_v47 = vor.u32 %v6101_v29, %v5304_v28  ;;  %v3034_v0 = vpop.f32.mrf.mxu2  ;;  %v3010_v14 = vpop.f32.mrf.mxu0  ;;  %v5280_v28 = vld [vmem:[%s9345_s1 + $0xb80] sm:$0xf]  ;;  %v5217_v51 = vor.u32 %v6079_v21, %v5216_v54  ;;  %v5521_v54 = vor.u32 %v6155_v9, %v5520_v8  ;;  %v5384_v21 = vld [vmem:[%s9345_s1 + $0xc50] sm:$0xf] }
  0xa9   :  { %3273 = vmatpush.bf16.msrb.mxu1 %v5201_v45  ;;  %v5168_v45 = vld [vmem:[%s9345_s1 + $0xaa0] sm:$0xf]  ;;  %v5105_v55 = vor.u32 %v6051_v44, %v5104_v42  ;;  %v6095_v29 = vld [vmem:[%s9345_s1 + $0xb84] sm:$0xf0]  ;;  %v6141_v42 = vld [vmem:[%s9345_s1 + $0xcf4] sm:$0xf0] }
  0xaa   :  { %3286 = vmatpush.bf16.msrb.mxu2 %v5265_v46  ;;  %v3009_v46 = vadd.f32 %v3008_v33, %v2995_v16  ;;  %v5225_v16 = vor.u32 %v6081_v4, %v5224_v3  ;;  %v3047_v33 = vpop.f32.mrf.mxu3  ;;  %v5456_v3 = vld [vmem:[%s9345_s1 + $0xce0] sm:$0xf]  ;;  %v6133_v8 = vld [vmem:[%s9345_s1 + $0xcb4] sm:$0xf0]  ;;  %v5496_v9 = vld [vmem:[%s9345_s1 + $0xd30] sm:$0xf] }
  0xab   :  { %3299 = vmatpush.bf16.msrb.mxu3 %v5329_v50  ;;  %v6083_v50 = vld [vmem:[%s9345_s1 + $0xb24] sm:$0xf0] }
  0xac   :  { %3261 = vmatpush.bf16.msrb.mxu0 %v5129_v58  ;;  %v3022_v56 = vadd.f32 %v3021_v53, %v3009_v46  ;;  %v5169_v58 = vor.u32 %v6067_v48, %v5168_v45  ;;  %v5233_v60 = vor.u32 %v6083_v50, %v5232_v49  ;;  %v3023_v45 = vpop.f32.mrf.mxu1  ;;  %v6157_v48 = vld [vmem:[%s9345_s1 + $0xd74] sm:$0xf0]  ;;  %v43_v49 = vperm.slane %v7286_v57, 4 }
  0xad   :  { %3274 = vmatpush.bf16.msrb.mxu1 %v5193_v61  ;;  %v5096_v61 = vld [vmem:[%s9345_s1 + $0xa10] sm:$0xf]  ;;  %v6173_v53 = vld [vmem:[%s9345_s1 + $0xdf4] sm:$0xf0] }
  0xae   :  { %3287 = vmatpush.bf16.msrb.mxu2 %v5257_v62  ;;  %v6049_v62 = vld [vmem:[%s9345_s1 + $0xa14] sm:$0xf0]  ;;  %v3035_v7 = vadd.f32 %v3034_v0, %v3022_v56  ;;  %v44_v56 = vperm.slane %v7286_v57, 5  ;;  %v5593_v4 = vor.u32 %v6173_v53, %v5592_v52  ;;  %v6135_v52 = vld [vmem:[%s9345_s1 + $0xcc4] sm:$0xf0] }
  0xaf   :  { %3300 = vmatpush.bf16.msrb.mxu3 %v5321_v2  ;;  %v6065_v2 = vld [vmem:[%s9345_s1 + $0xa94] sm:$0xf0]  ;;  %v5504_v53 = vld [vmem:[%s9345_s1 + $0xd40] sm:$0xf] }
  0xb0   :  { %3262 = vmatpush.bf16.msrb.mxu0 %v5121_v10  ;;  %v5097_v10 = vor.u32 %v6049_v62, %v5096_v61  ;;  %v5161_v15 = vor.u32 %v6065_v2, %v5160_v63  ;;  %v7517_v44 = vadd.f32 %v3047_v33, %v3035_v7  ;;  %v46_v62 = vperm.slane %v7286_v57, 7  ;;  %v6123_v2 = vld [vmem:[%s9345_s1 + $0xc64] sm:$0xf0]  ;;  %v5512_v33 = vld [vmem:[%s9345_s1 + $0xd50] sm:$0xf] }
  0xb1   :  { %3275 = vmatpush.bf16.msrb.mxu1 %v5185_v12  ;;  %v6047_v12 = vld [vmem:[%s9345_s1 + $0xa04] sm:$0xf0]  ;;  %v7544_v7 = vpack.c.bf16 %v43_v49, %v43_v49 }
  0xb2   :  { %3288 = vmatpush.bf16.msrb.mxu2 %v5249_v13  ;;  %v5152_v13 = vld [vmem:[%s9345_s1 + $0xa80] sm:$0xf]  ;;  %v5089_v46 = vor.u32 %v6047_v12, %v5088_v11  ;;  %v7557_v11 = vpack.c.bf16 %v44_v56, %v44_v56  ;;  %v7565_v14 = vpack.c.bf16 %v46_v62, %v46_v62  ;;  %v6119_v49 = vld [vmem:[%s9345_s1 + $0xc44] sm:$0xf0] }
  0xb3   :  { %3301 = vmatpush.bf16.msrb.mxu3 %v5313_v17  ;;  %v6063_v17 = vld [vmem:[%s9345_s1 + $0xa84] sm:$0xf0]  ;;  %v5584_v12 = vld [vmem:[%s9345_s1 + $0xde0] sm:$0xf] }
  0xb4   :  { %3263 = vmatpush.bf16.msrb.mxu0 %v5113_v59  ;;  %v5400_v59 = vld [vmem:[%s9345_s1 + $0xc70] sm:$0xf]  ;;  %v5153_v50 = vor.u32 %v6063_v17, %v5152_v13  ;;  %v6171_v13 = vld [vmem:[%s9345_s1 + $0xde4] sm:$0xf0]  ;;  %v5568_v56 = vld [vmem:[%s9345_s1 + $0xdc0] sm:$0xf] }
  0xb5   :  { %3276 = vmatpush.bf16.msrb.mxu1 %v5177_v34  ;;  %v6125_v34 = vld [vmem:[%s9345_s1 + $0xc74] sm:$0xf0] }
  0xb6   :  { %3289 = vmatpush.bf16.msrb.mxu2 %v5241_v40  ;;  %v5464_v40 = vld [vmem:[%s9345_s1 + $0xcf0] sm:$0xf]  ;;  %v5401_v61 = vor.u32 %v6125_v34, %v5400_v59  ;;  %v6137_v59 = vld [vmem:[%s9345_s1 + $0xcd4] sm:$0xf0] }
  0xb7   :  { %3302 = vmatpush.bf16.msrb.mxu3 %v5305_v47  ;;  %v5528_v47 = vld [vmem:[%s9345_s1 + $0xd70] sm:$0xf]  ;;  %v5465_v63 = vor.u32 %v6141_v42, %v5464_v40  ;;  %v6153_v34 = vld [vmem:[%s9345_s1 + $0xd54] sm:$0xf0] }
  0xb8   :  { %3264 = vmatpush.bf16.msrb.mxu0 %v5105_v55  ;;  %v45_v55 = vperm.slane %v7286_v57, 6  ;;  %v5529_v0 = vor.u32 %v6157_v48, %v5528_v47  ;;  %v6139_v57 = vld [vmem:[%s9345_s1 + $0xce4] sm:$0xf0]  ;;  %v5576_v40 = vld [vmem:[%s9345_s1 + $0xdd0] sm:$0xf]  ;;  %v5513_v47 = vor.u32 %v6153_v34, %v5512_v33 }
  0xb9   :  { %3277 = vmatpush.bf16.msrb.mxu1 %v5169_v58  ;;  %v3036_v58 = vpop.f32.mrf.mxu2  ;;  %v5457_v17 = vor.u32 %v6139_v57, %v5456_v3  ;;  %v6169_v42 = vld [vmem:[%s9345_s1 + $0xdd4] sm:$0xf0]  ;;  %v5376_v48 = vld [vmem:[%s9345_s1 + $0xc40] sm:$0xf]  ;;  %v6131_v33 = vld [vmem:[%s9345_s1 + $0xca4] sm:$0xf0] }
  0xba   :  { %3290 = vmatpush.bf16.msrb.mxu2 %v5233_v60  ;;  %v5281_v60 = vor.u32 %v6095_v29, %v5280_v28  ;;  %v5448_v28 = vld [vmem:[%s9345_s1 + $0xcd0] sm:$0xf]  ;;  %v5585_v29 = vor.u32 %v6171_v13, %v5584_v12  ;;  %v6167_v58 = vld [vmem:[%s9345_s1 + $0xdc4] sm:$0xf0]  ;;  %v6149_v12 = vld [vmem:[%s9345_s1 + $0xd34] sm:$0xf0] }
  0xbb   :  { %3303 = vmatpush.bf16.msrb.mxu3 %v5297_v1  ;;  %v5392_v1 = vld [vmem:[%s9345_s1 + $0xc60] sm:$0xf]  ;;  %v5569_v57 = vor.u32 %v6167_v58, %v5568_v56  ;;  %v5560_v13 = vld [vmem:[%s9345_s1 + $0xdb0] sm:$0xf] }
  0xbc   :  { %3265 = vmatpush.bf16.msrb.mxu0 %v5097_v10  ;;  %v7555_v10 = vpack.c.bf16 %v45_v55, %v45_v55  ;;  %v6151_v55 = vld [vmem:[%s9345_s1 + $0xd44] sm:$0xf0]  ;;  %v5488_v34 = vld [vmem:[%s9345_s1 + $0xd20] sm:$0xf]  ;;  %v5416_v56 = vld [vmem:[%s9345_s1 + $0xc90] sm:$0xf] }
  0xbd   :  { %3278 = vmatpush.bf16.msrb.mxu1 %v5161_v15  ;;  %v5393_v15 = vor.u32 %v6123_v2, %v5392_v1  ;;  %v6117_v1 = vld [vmem:[%s9345_s1 + $0xc34] sm:$0xf0]  ;;  %v5432_v2 = vld [vmem:[%s9345_s1 + $0xcb0] sm:$0xf] }
  0xbe   :  { %3291 = vmatpush.bf16.msrb.mxu2 %v5225_v16  ;;  %v3049_v16 = vpop.f32.mrf.mxu3 }
  0xbf   :  { %3304 = vmatpush.bf16.msrb.mxu3 %v5289_v23  ;;  %v6121_v23 = vld [vmem:[%s9345_s1 + $0xc54] sm:$0xf0] }
  0xc0   :  { %3266 = vmatpush.bf16.msrb.mxu0 %v5089_v46  ;;  %v5385_v45 = vor.u32 %v6121_v23, %v5384_v21  ;;  %v5449_v46 = vor.u32 %v6137_v59, %v5448_v28  ;;  %v5360_v21 = vld [vmem:[%s9345_s1 + $0xc20] sm:$0xf]  ;;  %v6115_v23 = vld [vmem:[%s9345_s1 + $0xc24] sm:$0xf0] }
  0xc1   :  { %3279 = vmatpush.bf16.msrb.mxu1 %v5153_v50  ;;  %v5440_v50 = vld [vmem:[%s9345_s1 + $0xcc0] sm:$0xf] }
  0xc2   :  { %3292 = vmatpush.bf16.msrb.mxu2 %v5217_v51  ;;  %v5577_v51 = vor.u32 %v6169_v42, %v5576_v40  ;;  %v5441_v62 = vor.u32 %v6135_v52, %v5440_v50  ;;  %v5424_v28 = vld [vmem:[%s9345_s1 + $0xca0] sm:$0xf]  ;;  %v6147_v40 = vld [vmem:[%s9345_s1 + $0xd24] sm:$0xf0] }
  0xc3   :  { %3305 = vmatpush.bf16.msrb.mxu3 %v5281_v60  ;;  %3267 = vmatmul.bf16.vlgmr.msrb.gmra.mxu0 %v7544_v7  ;;  %v5377_v60 = vor.u32 %v6119_v49, %v5376_v48  ;;  %v5361_v48 = vor.u32 %v6115_v23, %v5360_v21  ;;  %v5489_v52 = vor.u32 %v6147_v40, %v5488_v34  ;;  %v6159_v21 = vld [vmem:[%s9345_s1 + $0xd84] sm:$0xf0]  ;;  %v5656_v23 = vld [vmem:[%s9345_s1 + $0xe70] sm:$0xf]  ;;  %v5740_v40 = vld [vmem:[%s9345_s1 + $0x74] sm:$0xf] }
  0xc4   :  { %3311 = vmatpush.bf16.msra.mxu0 %v5401_v61  ;;  %3280 = vmatmul.bf16.vlgmr.msrb.gmra.mxu1 %v7557_v11  ;;  %v3060_v61 = vpop.f32.mrf.mxu0 }
  0xc5   :  { %3324 = vmatpush.bf16.msra.mxu1 %v5465_v63  ;;  %3293 = vmatmul.bf16.vlgmr.msrb.gmra.mxu2 %v7555_v10  ;;  %v5505_v63 = vor.u32 %v6151_v55, %v5504_v53  ;;  %v3061_v3 = vadd.f32 %v3060_v61, %v7517_v44  ;;  %v6165_v44 = vld [vmem:[%s9345_s1 + $0xdb4] sm:$0xf0]  ;;  %v5352_v53 = vld [vmem:[%s9345_s1 + $0xc10] sm:$0xf] }
  0xc6   :  { %3337 = vmatpush.bf16.msra.mxu2 %v5529_v0  ;;  %3306 = vmatmul.bf16.vlgmr.msrb.gmra.mxu3 %v7565_v14  ;;  %v5368_v0 = vld [vmem:[%s9345_s1 + $0xc30] sm:$0xf]  ;;  %v5561_v59 = vor.u32 %v6165_v44, %v5560_v13  ;;  %v6113_v55 = vld [vmem:[%s9345_s1 + $0xc14] sm:$0xf0]  ;;  %v5472_v13 = vld [vmem:[%s9345_s1 + $0xd00] sm:$0xf] }
  0xc7   :  { %3350 = vmatpush.bf16.msra.mxu3 %v5593_v4  ;;  %v3073_v4 = vpop.f32.mrf.mxu1  ;;  %v5369_v16 = vor.u32 %v6117_v1, %v5368_v0  ;;  %v6129_v61 = vld [vmem:[%s9345_s1 + $0xc94] sm:$0xf0]  ;;  %v5544_v0 = vld [vmem:[%s9345_s1 + $0xd90] sm:$0xf]  ;;  %v6143_v44 = vld [vmem:[%s9345_s1 + $0xd04] sm:$0xf0] }
  0xc8   :  { %3312 = vmatpush.bf16.msra.mxu0 %v5393_v15  ;;  %v3074_v15 = vadd.f32 %v3073_v4, %v3061_v3  ;;  %v6161_v1 = vld [vmem:[%s9345_s1 + $0xd94] sm:$0xf0]  ;;  %v5353_v3 = vor.u32 %v6113_v55, %v5352_v53  ;;  %v6111_v4 = vld [vmem:[%s9345_s1 + $0xc04] sm:$0xf0] }
  0xc9   :  { %3325 = vmatpush.bf16.msra.mxu1 %v5457_v17  ;;  %v5433_v17 = vor.u32 %v6133_v8, %v5432_v2  ;;  %v5344_v2 = vld [vmem:[%s9345_s1 + $0xc00] sm:$0xf]  ;;  %v6127_v8 = vld [vmem:[%s9345_s1 + $0xc84] sm:$0xf0] }
  0xca   :  { %3338 = vmatpush.bf16.msra.mxu2 %v5521_v54  ;;  %v5497_v54 = vor.u32 %v6149_v12, %v5496_v9  ;;  %v5417_v9 = vor.u32 %v6129_v61, %v5416_v56  ;;  %v5345_v34 = vor.u32 %v6111_v4, %v5344_v2  ;;  %v5648_v61 = vld [vmem:[%s9345_s1 + $0xe60] sm:$0xf]  ;;  %v6203_v2 = vld [vmem:[%s9345_s1 + $0xee4] sm:$0xf0]  ;;  %v3858_v4 = vld [vmem:[%s9345_s1 + $0x68] sm:$0xf0] }
  0xcb   :  { %3351 = vmatpush.bf16.msra.mxu3 %v5585_v29  ;;  %v3086_v29 = vpop.f32.mrf.mxu2 }
  0xcc   :  { %3313 = vmatpush.bf16.msra.mxu0 %v5385_v45  ;;  %v3087_v42 = vadd.f32 %v3086_v29, %v3074_v15  ;;  %v3099_v45 = vpop.f32.mrf.mxu3  ;;  %v3062_v50 = vpop.f32.mrf.mxu0  ;;  %v7715_v15 = vld [vmem:[%s9344_s0 + $0x18] sm:$0x3f] }
  0xcd   :  { %3326 = vmatpush.bf16.msra.mxu1 %v5449_v46  ;;  %v5552_v46 = vld [vmem:[%s9345_s1 + $0xda0] sm:$0xf]  ;;  %v6189_v29 = vld [vmem:[%s9345_s1 + $0xe74] sm:$0xf0]  ;;  %v3930_v50 = vld [vmem:[%s9345_s1 + $0xf8] sm:$0xf0] }
  0xce   :  { %3339 = vmatpush.bf16.msra.mxu2 %v5513_v47  ;;  %v6163_v47 = vld [vmem:[%s9345_s1 + $0xda4] sm:$0xf0]  ;;  %v7668_v49 = vadd.f32 %v3099_v45, %v3087_v42  ;;  %v3866_v42 = vld [vmem:[%s9345_s1 + $0x78] sm:$0xf0]  ;;  %v47_v45 = vperm.slane %v7715_v15, 0  ;;  %v5657_v55 = vor.u32 %v6189_v29, %v5656_v23  ;;  %v50_v56 = vperm.slane %v7715_v15, 3 }
  0xcf   :  { %3352 = vmatpush.bf16.msra.mxu3 %v5577_v51  ;;  %v5425_v51 = vor.u32 %v6131_v33, %v5424_v28  ;;  %v3075_v58 = vpop.f32.mrf.mxu1  ;;  %v6205_v33 = vld [vmem:[%s9345_s1 + $0xef4] sm:$0xf0]  ;;  %v5704_v23 = vld [vmem:[%s9345_s1 + $0xed0] sm:$0xf] }
  0xd0   :  { %3314 = vmatpush.bf16.msra.mxu0 %v5377_v60  ;;  %v5553_v60 = vor.u32 %v6163_v47, %v5552_v46  ;;  %v5473_v47 = vor.u32 %v6143_v44, %v5472_v13  ;;  %v7781_v13 = vpack.c.bf16 %v50_v56, %v50_v56  ;;  %v6201_v29 = vld [vmem:[%s9345_s1 + $0xed4] sm:$0xf0] }
  0xd1   :  { %3327 = vmatpush.bf16.msra.mxu1 %v5441_v62  ;;  %v5480_v62 = vld [vmem:[%s9345_s1 + $0xd10] sm:$0xf] }
  0xd2   :  { %3340 = vmatpush.bf16.msra.mxu2 %v5505_v63  ;;  %v6145_v63 = vld [vmem:[%s9345_s1 + $0xd14] sm:$0xf0] }
  0xd3   :  { %3353 = vmatpush.bf16.msra.mxu3 %v5569_v57  ;;  %v5408_v57 = vld [vmem:[%s9345_s1 + $0xc80] sm:$0xf]  ;;  %v5481_v12 = vor.u32 %v6145_v63, %v5480_v62  ;;  %v6187_v62 = vld [vmem:[%s9345_s1 + $0xe64] sm:$0xf0] }
  0xd4   :  { %3315 = vmatpush.bf16.msra.mxu0 %v5369_v16  ;;  %v3088_v16 = vpop.f32.mrf.mxu2  ;;  %v3101_v28 = vpop.f32.mrf.mxu3  ;;  %v5409_v46 = vor.u32 %v6127_v8, %v5408_v57  ;;  %v5712_v63 = vld [vmem:[%s9345_s1 + $0xee0] sm:$0xf]  ;;  %v5649_v44 = vor.u32 %v6187_v62, %v5648_v61 }
  0xd5   :  { %3328 = vmatpush.bf16.msra.mxu1 %v5433_v17  ;;  %v5545_v17 = vor.u32 %v6161_v1, %v5544_v0  ;;  %v7760_v1 = vpack.c.bf16 %v47_v45, %v47_v45  ;;  %v5713_v16 = vor.u32 %v6203_v2, %v5712_v63  ;;  %v5705_v45 = vor.u32 %v6201_v29, %v5704_v23 }
  0xd6   :  { %3341 = vmatpush.bf16.msra.mxu2 %v5497_v54  ;;  %v5536_v54 = vld [vmem:[%s9345_s1 + $0xd80] sm:$0xf] }
  0xd7   :  { %3354 = vmatpush.bf16.msra.mxu3 %v5561_v59  ;;  %v5720_v59 = vld [vmem:[%s9345_s1 + $0xef0] sm:$0xf]  ;;  %v5537_v53 = vor.u32 %v6159_v21, %v5536_v54  ;;  %v6185_v21 = vld [vmem:[%s9345_s1 + $0xe54] sm:$0xf0] }
  0xd8   :  { %3316 = vmatpush.bf16.msra.mxu0 %v5361_v48  ;;  %v5756_v48 = vld [vmem:[%s9345_s1 + $0xf4] sm:$0xf]  ;;  %v5721_v58 = vor.u32 %v6205_v33, %v5720_v59  ;;  %v5640_v54 = vld [vmem:[%s9345_s1 + $0xe50] sm:$0xf]  ;;  %v3850_v33 = vld [vmem:[%s9345_s1 + $0x58] sm:$0xf0] }
  0xd9   :  { %3329 = vmatpush.bf16.msra.mxu1 %v5425_v51  ;;  %v49_v51 = vperm.slane %v7715_v15, 2  ;;  %v3933_v0 = vor.u32 %v5756_v48, %v3930_v50  ;;  %v5736_v59 = vld [vmem:[%s9345_s1 + $0x54] sm:$0xf]  ;;  %v6183_v48 = vld [vmem:[%s9345_s1 + $0xe44] sm:$0xf0] }
  0xda   :  { %3342 = vmatpush.bf16.msra.mxu2 %v5489_v52  ;;  %v48_v52 = vperm.slane %v7715_v15, 1  ;;  %v5696_v50 = vld [vmem:[%s9345_s1 + $0xec0] sm:$0xf] }
  0xdb   :  { %3355 = vmatpush.bf16.msra.mxu3 %v5553_v60  ;;  %v3869_v60 = vor.u32 %v5740_v40, %v3866_v42  ;;  %v7771_v57 = vpack.c.bf16 %v49_v51, %v49_v51  ;;  %v3914_v40 = vld [vmem:[%s9345_s1 + $0xd8] sm:$0xf0]  ;;  %v5641_v42 = vor.u32 %v6185_v21, %v5640_v54  ;;  %v5748_v54 = vld [vmem:[%s9345_s1 + $0xb4] sm:$0xf] }
  0xdc   :  { %3317 = vmatpush.bf16.msra.mxu0 %v5353_v3  ;;  %v5738_v3 = vld [vmem:[%s9345_s1 + $0x64] sm:$0xf]  ;;  %v7773_v8 = vpack.c.bf16 %v48_v52, %v48_v52  ;;  %v6199_v52 = vld [vmem:[%s9345_s1 + $0xec4] sm:$0xf0]  ;;  %v3898_v21 = vld [vmem:[%s9345_s1 + $0xb8] sm:$0xf0] }
  0xdd   :  { %3330 = vmatpush.bf16.msra.mxu1 %v5417_v9  ;;  %v5754_v9 = vld [vmem:[%s9345_s1 + $0xe4] sm:$0xf] }
  0xde   :  { %3343 = vmatpush.bf16.msra.mxu2 %v5481_v12  ;;  %v3922_v12 = vld [vmem:[%s9345_s1 + $0xe8] sm:$0xf0] }
  0xdf   :  { %3356 = vmatpush.bf16.msra.mxu3 %v5545_v17  ;;  %v3861_v17 = vor.u32 %v5738_v3, %v3858_v4  ;;  %v3925_v28 = vor.u32 %v5754_v9, %v3922_v12  ;;  %v5624_v3 = vld [vmem:[%s9345_s1 + $0xe30] sm:$0xf]  ;;  %v6181_v4 = vld [vmem:[%s9345_s1 + $0xe34] sm:$0xf0] }
  0xe0   :  { %3318 = vmatpush.bf16.msra.mxu0 %v5345_v34  ;;  %v5752_v34 = vld [vmem:[%s9345_s1 + $0xd4] sm:$0xf]  ;;  %v3112_v56 = vpop.f32.mrf.mxu0  ;;  %v5688_v9 = vld [vmem:[%s9345_s1 + $0xeb0] sm:$0xf]  ;;  %v5625_v23 = vor.u32 %v6181_v4, %v5624_v3  ;;  %v6193_v3 = vld [vmem:[%s9345_s1 + $0xe94] sm:$0xf0] }
  0xe1   :  { %3331 = vmatpush.bf16.msra.mxu1 %v5409_v46  ;;  %v3853_v46 = vor.u32 %v5736_v59, %v3850_v33  ;;  %v3917_v51 = vor.u32 %v5752_v34, %v3914_v40  ;;  %v3113_v61 = vadd.f32 %v3112_v56, %v7668_v49  ;;  %v3125_v63 = vpop.f32.mrf.mxu1  ;;  %v5616_v59 = vld [vmem:[%s9345_s1 + $0xe20] sm:$0xf]  ;;  %v6179_v33 = vld [vmem:[%s9345_s1 + $0xe24] sm:$0xf0]  ;;  %v3901_v40 = vor.u32 %v5748_v54, %v3898_v21  ;;  %v5728_v4 = vld [vmem:[%s9345_s1 + $0x14] sm:$0xf] }
  0xe2   :  { %3344 = vmatpush.bf16.msra.mxu2 %v5473_v47  ;;  %v5632_v47 = vld [vmem:[%s9345_s1 + $0xe40] sm:$0xf] }
  0xe3   :  { %3357 = vmatpush.bf16.msra.mxu3 %v5537_v53  ;;  %3319 = vmatmul.bf16.vlgmr.msra.gmra.mxu0 %v7760_v1  ;;  %v5734_v53 = vld [vmem:[%s9345_s1 + $0x44] sm:$0xf]  ;;  %v5633_v62 = vor.u32 %v6183_v48, %v5632_v47  ;;  %v3126_v12 = vadd.f32 %v3125_v63, %v3113_v61  ;;  %v5680_v34 = vld [vmem:[%s9345_s1 + $0xea0] sm:$0xf]  ;;  %v3826_v47 = vld [vmem:[%s9345_s1 + $0x28] sm:$0xf0] }
  0xe4   :  { %3363 = vmatpush.bf16.msrb.mxu0 %v5657_v55  ;;  %3332 = vmatmul.bf16.vlgmr.msra.gmra.mxu1 %v7773_v8  ;;  %v3842_v55 = vld [vmem:[%s9345_s1 + $0x48] sm:$0xf0]  ;;  %v6177_v63 = vld [vmem:[%s9345_s1 + $0xe14] sm:$0xf0]  ;;  %v5664_v54 = vld [vmem:[%s9345_s1 + $0xe80] sm:$0xf] }
  0xe5   :  { %3376 = vmatpush.bf16.msrb.mxu1 %v5721_v58  ;;  %3345 = vmatmul.bf16.vlgmr.msra.gmra.mxu2 %v7771_v57  ;;  %v5750_v58 = vld [vmem:[%s9345_s1 + $0xc4] sm:$0xf]  ;;  %v3845_v2 = vor.u32 %v5734_v53, %v3842_v55  ;;  %v5617_v55 = vor.u32 %v6179_v33, %v5616_v59  ;;  %v3810_v59 = vld [vmem:[%s9345_s1 + $0x8] sm:$0xf0] }
  0xe6   :  { %3389 = vmatpush.bf16.msrb.mxu2 %v3869_v60  ;;  %3358 = vmatmul.bf16.vlgmr.msra.gmra.mxu3 %v7781_v13  ;;  %v3906_v60 = vld [vmem:[%s9345_s1 + $0xc8] sm:$0xf0] }
  0xe7   :  { %3402 = vmatpush.bf16.msrb.mxu3 %v3933_v0  ;;  %v5697_v0 = vor.u32 %v6199_v52, %v5696_v50  ;;  %v3909_v49 = vor.u32 %v5750_v58, %v3906_v60  ;;  %v3890_v52 = vld [vmem:[%s9345_s1 + $0xa8] sm:$0xf0] }
  0xe8   :  { %3364 = vmatpush.bf16.msrb.mxu0 %v5649_v44  ;;  %v6197_v44 = vld [vmem:[%s9345_s1 + $0xeb4] sm:$0xf0]  ;;  %v3114_v53 = vpop.f32.mrf.mxu0 }
  0xe9   :  { %3377 = vmatpush.bf16.msrb.mxu1 %v5713_v16  ;;  %v5732_v16 = vld [vmem:[%s9345_s1 + $0x34] sm:$0xf]  ;;  %v3151_v50 = vpop.f32.mrf.mxu3  ;;  %v3127_v56 = vpop.f32.mrf.mxu1  ;;  %v4122_v53 = vld [vmem:[%s9345_s1 + $0x278] sm:$0xf0] }
  0xea   :  { %3390 = vmatpush.bf16.msrb.mxu2 %v3861_v17  ;;  %v3834_v17 = vld [vmem:[%s9345_s1 + $0x38] sm:$0xf0] }
  0xeb   :  { %3403 = vmatpush.bf16.msrb.mxu3 %v3925_v28  ;;  %v5689_v28 = vor.u32 %v6197_v44, %v5688_v9  ;;  %v3837_v29 = vor.u32 %v5732_v16, %v3834_v17  ;;  %v3818_v9 = vld [vmem:[%s9345_s1 + $0x18] sm:$0xf0]  ;;  %v5600_v16 = vld [vmem:[%s9345_s1 + $0xe00] sm:$0xf]  ;;  %v6175_v17 = vld [vmem:[%s9345_s1 + $0xe04] sm:$0xf0] }
  0xec   :  { %3365 = vmatpush.bf16.msrb.mxu0 %v5641_v42  ;;  %v3138_v42 = vpop.f32.mrf.mxu2 }
  0xed   :  { %3378 = vmatpush.bf16.msrb.mxu1 %v5705_v45  ;;  %v6195_v45 = vld [vmem:[%s9345_s1 + $0xea4] sm:$0xf0]  ;;  %v3139_v48 = vadd.f32 %v3138_v42, %v3126_v12  ;;  %v3882_v12 = vld [vmem:[%s9345_s1 + $0x98] sm:$0xf0]  ;;  %v5772_v42 = vld [vmem:[%s9345_s1 + $0x174] sm:$0xf] }
  0xee   :  { %3391 = vmatpush.bf16.msrb.mxu2 %v3853_v46  ;;  %v5730_v46 = vld [vmem:[%s9345_s1 + $0x24] sm:$0xf]  ;;  %v5681_v60 = vor.u32 %v6195_v45, %v5680_v34 }
  0xef   :  { %3404 = vmatpush.bf16.msrb.mxu3 %v3917_v51  ;;  %v5746_v51 = vld [vmem:[%s9345_s1 + $0xa4] sm:$0xf]  ;;  %v7884_v58 = vadd.f32 %v3151_v50, %v3139_v48  ;;  %v3829_v61 = vor.u32 %v5730_v46, %v3826_v47  ;;  %v3994_v46 = vld [vmem:[%s9345_s1 + $0x178] sm:$0xf0]  ;;  %v5788_v47 = vld [vmem:[%s9345_s1 + $0x1f4] sm:$0xf] }
  0xf0   :  { %3366 = vmatpush.bf16.msrb.mxu0 %v5633_v62  ;;  %v5608_v62 = vld [vmem:[%s9345_s1 + $0xe10] sm:$0xf]  ;;  %v5742_v34 = vld [vmem:[%s9345_s1 + $0x84] sm:$0xf]  ;;  %v4058_v48 = vld [vmem:[%s9345_s1 + $0x1f8] sm:$0xf0] }
  0xf1   :  { %3379 = vmatpush.bf16.msrb.mxu1 %v5697_v0  ;;  %v5672_v0 = vld [vmem:[%s9345_s1 + $0xe90] sm:$0xf]  ;;  %v5609_v44 = vor.u32 %v6177_v63, %v5608_v62  ;;  %v3153_v50 = vpop.f32.mrf.mxu3  ;;  %v4186_v62 = vld [vmem:[%s9345_s1 + $0x2f8] sm:$0xf0]  ;;  %v52_v63 = vperm.slane %v7715_v15, 5 }
  0xf2   :  { %3392 = vmatpush.bf16.msrb.mxu2 %v3845_v2  ;;  %v3893_v2 = vor.u32 %v5746_v51, %v3890_v52  ;;  %v5673_v21 = vor.u32 %v6193_v3, %v5672_v0  ;;  %v5601_v51 = vor.u32 %v6175_v17, %v5600_v16  ;;  %v5804_v52 = vld [vmem:[%s9345_s1 + $0x274] sm:$0xf]  ;;  %v4061_v3 = vor.u32 %v5788_v47, %v4058_v48  ;;  %v4050_v16 = vld [vmem:[%s9345_s1 + $0x1e8] sm:$0xf0]  ;;  %v5802_v17 = vld [vmem:[%s9345_s1 + $0x264] sm:$0xf] }
  0xf3   :  { %3405 = vmatpush.bf16.msrb.mxu3 %v3909_v49  ;;  %v5744_v49 = vld [vmem:[%s9345_s1 + $0x94] sm:$0xf]  ;;  %v4106_v48 = vld [vmem:[%s9345_s1 + $0x258] sm:$0xf0] }
  0xf4   :  { %3367 = vmatpush.bf16.msrb.mxu0 %v5625_v23  ;;  %v3821_v23 = vor.u32 %v5728_v4, %v3818_v9  ;;  %v3885_v33 = vor.u32 %v5744_v49, %v3882_v12  ;;  %v3140_v45 = vpop.f32.mrf.mxu2  ;;  %v4125_v4 = vor.u32 %v5804_v52, %v4122_v53  ;;  %v5770_v9 = vld [vmem:[%s9345_s1 + $0x164] sm:$0xf]  ;;  %v3986_v49 = vld [vmem:[%s9345_s1 + $0x168] sm:$0xf0]  ;;  %v5800_v47 = vld [vmem:[%s9345_s1 + $0x254] sm:$0xf] }
  0xf5   :  { %3380 = vmatpush.bf16.msrb.mxu1 %v5689_v28  ;;  %v6191_v28 = vld [vmem:[%s9345_s1 + $0xe84] sm:$0xf0]  ;;  %v5786_v12 = vld [vmem:[%s9345_s1 + $0x1e4] sm:$0xf]  ;;  %v5816_v50 = vld [vmem:[%s9345_s1 + $0x2d4] sm:$0xf] }
  0xf6   :  { %3393 = vmatpush.bf16.msrb.mxu2 %v3837_v29  ;;  %v5726_v29 = vld [vmem:[%s9345_s1 + $0x4] sm:$0xf]  ;;  %v5665_v56 = vor.u32 %v6191_v28, %v5664_v54  ;;  %v4114_v54 = vld [vmem:[%s9345_s1 + $0x268] sm:$0xf0] }
  0xf7   :  { %3406 = vmatpush.bf16.msrb.mxu3 %v3901_v40  ;;  %v3874_v40 = vld [vmem:[%s9345_s1 + $0x88] sm:$0xf0] }
  0xf8   :  { %3368 = vmatpush.bf16.msrb.mxu0 %v5617_v55  ;;  %v51_v55 = vperm.slane %v7715_v15, 4  ;;  %v3877_v0 = vor.u32 %v5742_v34, %v3874_v40  ;;  %v4178_v28 = vld [vmem:[%s9345_s1 + $0x2e8] sm:$0xf0]  ;;  %v5768_v34 = vld [vmem:[%s9345_s1 + $0x154] sm:$0xf] }
  0xf9   :  { %3381 = vmatpush.bf16.msrb.mxu1 %v5681_v60  ;;  %v3813_v60 = vor.u32 %v5726_v29, %v3810_v59  ;;  %v3989_v29 = vor.u32 %v5770_v9, %v3986_v49  ;;  %v4053_v59 = vor.u32 %v5786_v12, %v4050_v16  ;;  %v3978_v40 = vld [vmem:[%s9345_s1 + $0x158] sm:$0xf0]  ;;  %v5764_v16 = vld [vmem:[%s9345_s1 + $0x134] sm:$0xf] }
  0xfa   :  { %3394 = vmatpush.bf16.msrb.mxu2 %v3829_v61  ;;  %v5820_v61 = vld [vmem:[%s9345_s1 + $0x2f4] sm:$0xf]  ;;  %v7969_v15 = vpack.c.bf16 %v51_v55, %v51_v55  ;;  %v3981_v52 = vor.u32 %v5768_v34, %v3978_v40  ;;  %v4109_v55 = vor.u32 %v5800_v47, %v4106_v48  ;;  %v4154_v34 = vld [vmem:[%s9345_s1 + $0x2b8] sm:$0xf0]  ;;  %v3954_v47 = vld [vmem:[%s9345_s1 + $0x128] sm:$0xf0] }
  0xfb   :  { %3407 = vmatpush.bf16.msrb.mxu3 %v3893_v2  ;;  %v3997_v2 = vor.u32 %v5772_v42, %v3994_v46  ;;  %v5784_v42 = vld [vmem:[%s9345_s1 + $0x1d4] sm:$0xf]  ;;  %v4042_v46 = vld [vmem:[%s9345_s1 + $0x1d8] sm:$0xf0]  ;;  %v5778_v48 = vld [vmem:[%s9345_s1 + $0x1a4] sm:$0xf] }
  0xfc   :  { %3369 = vmatpush.bf16.msrb.mxu0 %v5609_v44  ;;  %v4189_v44 = vor.u32 %v5820_v61, %v4186_v62  ;;  %v4045_v53 = vor.u32 %v5784_v42, %v4042_v46  ;;  %v5798_v62 = vld [vmem:[%s9345_s1 + $0x244] sm:$0xf] }
  0xfd   :  { %3382 = vmatpush.bf16.msrb.mxu1 %v5673_v21  ;;  %v7980_v21 = vpack.c.bf16 %v52_v63, %v52_v63  ;;  %v4098_v63 = vld [vmem:[%s9345_s1 + $0x248] sm:$0xf0]  ;;  %v5762_v46 = vld [vmem:[%s9345_s1 + $0x124] sm:$0xf] }
  0xfe   :  { %3395 = vmatpush.bf16.msrb.mxu2 %v3821_v23  ;;  %v5818_v23 = vld [vmem:[%s9345_s1 + $0x2e4] sm:$0xf] }
  0xff   :  { %3408 = vmatpush.bf16.msrb.mxu3 %v3885_v33  ;;  %v4117_v33 = vor.u32 %v5802_v17, %v4114_v54  ;;  %v4181_v45 = vor.u32 %v5818_v23, %v4178_v28  ;;  %v3962_v17 = vld [vmem:[%s9345_s1 + $0x138] sm:$0xf0]  ;;  %v5780_v54 = vld [vmem:[%s9345_s1 + $0x1b4] sm:$0xf] }
 0x100   :  { %3370 = vmatpush.bf16.msrb.mxu0 %v5601_v51  ;;  %v4170_v51 = vld [vmem:[%s9345_s1 + $0x2d8] sm:$0xf0]  ;;  %v3965_v40 = vor.u32 %v5764_v16, %v3962_v17  ;;  %v5792_v16 = vld [vmem:[%s9345_s1 + $0x214] sm:$0xf] }
 0x101   :  { %3383 = vmatpush.bf16.msrb.mxu1 %v5665_v56  ;;  %v5766_v56 = vld [vmem:[%s9345_s1 + $0x144] sm:$0xf]  ;;  %v4173_v61 = vor.u32 %v5816_v50, %v4170_v51  ;;  %v3177_v49 = vpop.f32.mrf.mxu1  ;;  %v4026_v28 = vld [vmem:[%s9345_s1 + $0x1b8] sm:$0xf0] }
 0x102   :  { %3396 = vmatpush.bf16.msrb.mxu2 %v3813_v60  ;;  %v3970_v60 = vld [vmem:[%s9345_s1 + $0x148] sm:$0xf0]  ;;  %v4029_v42 = vor.u32 %v5780_v54, %v4026_v28  ;;  %v4074_v17 = vld [vmem:[%s9345_s1 + $0x218] sm:$0xf0]  ;;  %v5808_v54 = vld [vmem:[%s9345_s1 + $0x294] sm:$0xf] }
 0x103   :  { %3409 = vmatpush.bf16.msrb.mxu3 %v3877_v0  ;;  %3371 = vmatmul.bf16.vlgmr.msrb.gmra.mxu0 %v7969_v15  ;;  %v3164_v0 = vpop.f32.mrf.mxu0  ;;  %v3973_v9 = vor.u32 %v5766_v56, %v3970_v60  ;;  %v5758_v28 = vld [vmem:[%s9345_s1 + $0x104] sm:$0xf] }
 0x104   :  { %3415 = vmatpush.bf16.msra.mxu0 %v3997_v2  ;;  %3384 = vmatmul.bf16.vlgmr.msrb.gmra.mxu1 %v7980_v21  ;;  %v5814_v2 = vld [vmem:[%s9345_s1 + $0x2c4] sm:$0xf] }
 0x105   :  { %3428 = vmatpush.bf16.msra.mxu1 %v4061_v3  ;;  %3397 = vmatmul.bf16.vlgmr.msrb.gmra.mxu2 %v6531_v6  ;;  %v5782_v6 = vld [vmem:[%s9345_s1 + $0x1c4] sm:$0xf]  ;;  %v4162_v3 = vld [vmem:[%s9345_s1 + $0x2c8] sm:$0xf0] }
 0x106   :  { %3441 = vmatpush.bf16.msra.mxu2 %v4125_v4  ;;  %3410 = vmatmul.bf16.vlgmr.msrb.gmra.mxu3 %v6560_v20  ;;  %v4034_v20 = vld [vmem:[%s9345_s1 + $0x1c8] sm:$0xf0]  ;;  %v3165_v4 = vadd.f32 %v3164_v0, %v7884_v58  ;;  %v4165_v58 = vor.u32 %v5814_v2, %v4162_v3 }
 0x107   :  { %3454 = vmatpush.bf16.msra.mxu3 %v4189_v44  ;;  %v4037_v12 = vor.u32 %v5782_v6, %v4034_v20  ;;  %v4101_v44 = vor.u32 %v5798_v62, %v4098_v63  ;;  %v5810_v6 = vld [vmem:[%s9345_s1 + $0x2a4] sm:$0xf]  ;;  %v3957_v62 = vor.u32 %v5762_v46, %v3954_v47  ;;  %v4066_v46 = vld [vmem:[%s9345_s1 + $0x208] sm:$0xf0] }
 0x108   :  { %3416 = vmatpush.bf16.msra.mxu0 %v3989_v29  ;;  %v3178_v23 = vadd.f32 %v3177_v49, %v3165_v4  ;;  %v5796_v29 = vld [vmem:[%s9345_s1 + $0x234] sm:$0xf]  ;;  %v3190_v51 = vpop.f32.mrf.mxu2  ;;  %v5806_v47 = vld [vmem:[%s9345_s1 + $0x284] sm:$0xf] }
 0x109   :  { %3429 = vmatpush.bf16.msra.mxu1 %v4053_v59  ;;  %v4090_v59 = vld [vmem:[%s9345_s1 + $0x238] sm:$0xf0]  ;;  %v3203_v60 = vpop.f32.mrf.mxu3  ;;  %v3179_v63 = vpop.f32.mrf.mxu1  ;;  %v5760_v4 = vld [vmem:[%s9345_s1 + $0x114] sm:$0xf] }
 0x10a   :  { %3442 = vmatpush.bf16.msra.mxu2 %v4117_v33  ;;  %v5812_v33 = vld [vmem:[%s9345_s1 + $0x2b4] sm:$0xf]  ;;  %v3191_v56 = vadd.f32 %v3190_v51, %v3178_v23 }
 0x10b   :  { %3455 = vmatpush.bf16.msra.mxu3 %v4181_v45  ;;  %v4093_v45 = vor.u32 %v5796_v29, %v4090_v59  ;;  %v4157_v50 = vor.u32 %v5812_v33, %v4154_v34  ;;  %v3166_v20 = vpop.f32.mrf.mxu0  ;;  %v5776_v49 = vld [vmem:[%s9345_s1 + $0x194] sm:$0xf]  ;;  %v3938_v29 = vld [vmem:[%s9345_s1 + $0x108] sm:$0xf0]  ;;  %v4077_v33 = vor.u32 %v5792_v16, %v4074_v17  ;;  %v5774_v34 = vld [vmem:[%s9345_s1 + $0x184] sm:$0xf] }
 0x10c   :  { %3417 = vmatpush.bf16.msra.mxu0 %v3981_v52  ;;  %v4018_v52 = vld [vmem:[%s9345_s1 + $0x1a8] sm:$0xf0]  ;;  %v8089_v0 = vadd.f32 %v3203_v60, %v3191_v56  ;;  %v5836_v51 = vld [vmem:[%s9345_s1 + $0x374] sm:$0xf]  ;;  %v3941_v56 = vor.u32 %v5758_v28, %v3938_v29  ;;  %v4314_v60 = vld [vmem:[%s9345_s1 + $0x3f8] sm:$0xf0] }
 0x10d   :  { %3430 = vmatpush.bf16.msra.mxu1 %v4045_v53  ;;  %v5794_v53 = vld [vmem:[%s9345_s1 + $0x224] sm:$0xf]  ;;  %v4021_v2 = vor.u32 %v5778_v48, %v4018_v52  ;;  %v4130_v48 = vld [vmem:[%s9345_s1 + $0x288] sm:$0xf0]  ;;  %v4250_v52 = vld [vmem:[%s9345_s1 + $0x378] sm:$0xf0] }
 0x10e   :  { %3443 = vmatpush.bf16.msra.mxu2 %v4109_v55  ;;  %v4082_v55 = vld [vmem:[%s9345_s1 + $0x228] sm:$0xf0]  ;;  %v5884_v63 = vld [vmem:[%s9345_s1 + $0x4f4] sm:$0xf]  ;;  %v5850_v16 = vld [vmem:[%s9345_s1 + $0x3e4] sm:$0xf] }
 0x10f   :  { %3456 = vmatpush.bf16.msra.mxu3 %v4173_v61  ;;  %v4146_v61 = vld [vmem:[%s9345_s1 + $0x2a8] sm:$0xf0]  ;;  %v4085_v3 = vor.u32 %v5794_v53, %v4082_v55  ;;  %v5852_v53 = vld [vmem:[%s9345_s1 + $0x3f4] sm:$0xf]  ;;  %v5882_v28 = vld [vmem:[%s9345_s1 + $0x4e4] sm:$0xf] }
 0x110   :  { %3418 = vmatpush.bf16.msra.mxu0 %v3973_v9  ;;  %v3946_v9 = vld [vmem:[%s9345_s1 + $0x118] sm:$0xf0]  ;;  %v4434_v29 = vld [vmem:[%s9345_s1 + $0x4e8] sm:$0xf0] }
 0x111   :  { %3431 = vmatpush.bf16.msra.mxu1 %v4037_v12  ;;  %v4149_v12 = vor.u32 %v5810_v6, %v4146_v61  ;;  %v3949_v23 = vor.u32 %v5760_v4, %v3946_v9  ;;  %v3205_v55 = vpop.f32.mrf.mxu3  ;;  %v5868_v6 = vld [vmem:[%s9345_s1 + $0x474] sm:$0xf]  ;;  %v4378_v61 = vld [vmem:[%s9345_s1 + $0x478] sm:$0xf0]  ;;  %v4253_v4 = vor.u32 %v5836_v51, %v4250_v52  ;;  %v4317_v9 = vor.u32 %v5852_v53, %v4314_v60  ;;  %v4226_v60 = vld [vmem:[%s9345_s1 + $0x348] sm:$0xf0] }
 0x112   :  { %3444 = vmatpush.bf16.msra.mxu2 %v4101_v44  ;;  %v4010_v44 = vld [vmem:[%s9345_s1 + $0x198] sm:$0xf0]  ;;  %v5880_v51 = vld [vmem:[%s9345_s1 + $0x4d4] sm:$0xf] }
 0x113   :  { %3457 = vmatpush.bf16.msra.mxu3 %v4165_v58  ;;  %v4138_v58 = vld [vmem:[%s9345_s1 + $0x298] sm:$0xf0]  ;;  %v4013_v59 = vor.u32 %v5776_v49, %v4010_v44  ;;  %v4381_v49 = vor.u32 %v5868_v6, %v4378_v61  ;;  %v4242_v44 = vld [vmem:[%s9345_s1 + $0x368] sm:$0xf0]  ;;  %v5862_v6 = vld [vmem:[%s9345_s1 + $0x444] sm:$0xf] }
 0x114   :  { %3419 = vmatpush.bf16.msra.mxu0 %v3965_v40  ;;  %v4002_v40 = vld [vmem:[%s9345_s1 + $0x188] sm:$0xf0] }
 0x115   :  { %3432 = vmatpush.bf16.msra.mxu1 %v4029_v42  ;;  %v5790_v42 = vld [vmem:[%s9345_s1 + $0x204] sm:$0xf]  ;;  %v4005_v20 = vor.u32 %v5774_v34, %v4002_v40  ;;  %v5832_v40 = vld [vmem:[%s9345_s1 + $0x354] sm:$0xf]  ;;  %v4354_v61 = vld [vmem:[%s9345_s1 + $0x448] sm:$0xf0] }
 0x116   :  { %3445 = vmatpush.bf16.msra.mxu2 %v4093_v45  ;;  %v4141_v45 = vor.u32 %v5808_v54, %v4138_v58  ;;  %v4306_v54 = vld [vmem:[%s9345_s1 + $0x3e8] sm:$0xf0]  ;;  %v5866_v58 = vld [vmem:[%s9345_s1 + $0x464] sm:$0xf] }
 0x117   :  { %3458 = vmatpush.bf16.msra.mxu3 %v4157_v50  ;;  %v3192_v50 = vpop.f32.mrf.mxu2 }
 0x118   :  { %3420 = vmatpush.bf16.msra.mxu0 %v3957_v62  ;;  %v4069_v62 = vor.u32 %v5790_v42, %v4066_v46  ;;  %v4234_v42 = vld [vmem:[%s9345_s1 + $0x358] sm:$0xf0]  ;;  %v4437_v46 = vor.u32 %v5882_v28, %v4434_v29  ;;  %v5876_v28 = vld [vmem:[%s9345_s1 + $0x4b4] sm:$0xf] }
 0x119   :  { %3433 = vmatpush.bf16.msra.mxu1 %v4021_v2  ;;  %v4442_v2 = vld [vmem:[%s9345_s1 + $0x4f8] sm:$0xf0]  ;;  %v4237_v52 = vor.u32 %v5832_v40, %v4234_v42  ;;  %v5826_v40 = vld [vmem:[%s9345_s1 + $0x324] sm:$0xf]  ;;  %v4210_v42 = vld [vmem:[%s9345_s1 + $0x328] sm:$0xf0] }
 0x11a   :  { %3446 = vmatpush.bf16.msra.mxu2 %v4085_v3  ;;  %v4133_v3 = vor.u32 %v5806_v47, %v4130_v48  ;;  %v4445_v17 = vor.u32 %v5884_v63, %v4442_v2  ;;  %v4298_v47 = vld [vmem:[%s9345_s1 + $0x3d8] sm:$0xf0]  ;;  %v5864_v48 = vld [vmem:[%s9345_s1 + $0x454] sm:$0xf]  ;;  %v4418_v63 = vld [vmem:[%s9345_s1 + $0x4c8] sm:$0xf0] }
 0x11b   :  { %3459 = vmatpush.bf16.msra.mxu3 %v4149_v12  ;;  %v5834_v12 = vld [vmem:[%s9345_s1 + $0x364] sm:$0xf]  ;;  %v4362_v50 = vld [vmem:[%s9345_s1 + $0x458] sm:$0xf0] }
 0x11c   :  { %3421 = vmatpush.bf16.msra.mxu0 %v3949_v23  ;;  %v4370_v23 = vld [vmem:[%s9345_s1 + $0x468] sm:$0xf0]  ;;  %v4365_v55 = vor.u32 %v5864_v48, %v4362_v50  ;;  %v4410_v29 = vld [vmem:[%s9345_s1 + $0x4b8] sm:$0xf0]  ;;  %v5858_v50 = vld [vmem:[%s9345_s1 + $0x424] sm:$0xf] }
 0x11d   :  { %3434 = vmatpush.bf16.msra.mxu1 %v4013_v59  ;;  %v4245_v59 = vor.u32 %v5834_v12, %v4242_v44  ;;  %v4373_v34 = vor.u32 %v5866_v58, %v4370_v23  ;;  %v5828_v12 = vld [vmem:[%s9345_s1 + $0x334] sm:$0xf]  ;;  %v4218_v44 = vld [vmem:[%s9345_s1 + $0x338] sm:$0xf0]  ;;  %v4274_v48 = vld [vmem:[%s9345_s1 + $0x3a8] sm:$0xf0] }
 0x11e   :  { %3447 = vmatpush.bf16.msra.mxu2 %v4077_v33  ;;  %v4309_v33 = vor.u32 %v5850_v16, %v4306_v54  ;;  %v5844_v16 = vld [vmem:[%s9345_s1 + $0x3b4] sm:$0xf]  ;;  %v4282_v54 = vld [vmem:[%s9345_s1 + $0x3b8] sm:$0xf0] }
 0x11f   :  { %3460 = vmatpush.bf16.msra.mxu3 %v4141_v45  ;;  %v5848_v45 = vld [vmem:[%s9345_s1 + $0x3d4] sm:$0xf]  ;;  %v4346_v23 = vld [vmem:[%s9345_s1 + $0x438] sm:$0xf0] }
 0x120   :  { %3422 = vmatpush.bf16.msra.mxu0 %v3941_v56  ;;  %v4301_v53 = vor.u32 %v5848_v45, %v4298_v47  ;;  %v5830_v56 = vld [vmem:[%s9345_s1 + $0x344] sm:$0xf]  ;;  %v5860_v58 = vld [vmem:[%s9345_s1 + $0x434] sm:$0xf] }
 0x121   :  { %3435 = vmatpush.bf16.msra.mxu1 %v4005_v20  ;;  %v3216_v20 = vpop.f32.mrf.mxu0  ;;  %v5842_v45 = vld [vmem:[%s9345_s1 + $0x3a4] sm:$0xf] }
 0x122   :  { %3448 = vmatpush.bf16.msra.mxu2 %v4069_v62  ;;  %v5878_v62 = vld [vmem:[%s9345_s1 + $0x4c4] sm:$0xf]  ;;  %v3217_v2 = vadd.f32 %v3216_v20, %v8089_v0  ;;  %v4202_v20 = vld [vmem:[%s9345_s1 + $0x318] sm:$0xf0] }
 0x123   :  { %3461 = vmatpush.bf16.msra.mxu3 %v4133_v3  ;;  %3423 = vmatmul.bf16.vlgmr.msra.gmra.mxu0 %v6529_v5  ;;  %v5846_v5 = vld [vmem:[%s9345_s1 + $0x3c4] sm:$0xf]  ;;  %v4229_v3 = vor.u32 %v5830_v56, %v4226_v60  ;;  %v4421_v0 = vor.u32 %v5878_v62, %v4418_v63  ;;  %v4213_v60 = vor.u32 %v5826_v40, %v4210_v42  ;;  %v5840_v62 = vld [vmem:[%s9345_s1 + $0x394] sm:$0xf]  ;;  %v4506_v42 = vld [vmem:[%s9345_s1 + $0x578] sm:$0xf0] }
 0x124   :  { %3467 = vmatpush.bf16.msrb.mxu0 %v4253_v4  ;;  %3436 = vmatmul.bf16.vlgmr.msra.gmra.mxu1 %v6558_v19  ;;  %v4290_v19 = vld [vmem:[%s9345_s1 + $0x3c8] sm:$0xf0]  ;;  %v3229_v4 = vpop.f32.mrf.mxu1  ;;  %v5900_v40 = vld [vmem:[%s9345_s1 + $0x574] sm:$0xf] }
 0x125   :  { %3480 = vmatpush.bf16.msrb.mxu1 %v4317_v9  ;;  %3449 = vmatmul.bf16.vlgmr.msra.gmra.mxu2 %v6714_v38  ;;  %v4426_v38 = vld [vmem:[%s9345_s1 + $0x4d8] sm:$0xf0]  ;;  %v4293_v9 = vor.u32 %v5846_v5, %v4290_v19  ;;  %v4277_v19 = vor.u32 %v5842_v45, %v4274_v48  ;;  %v5916_v45 = vld [vmem:[%s9345_s1 + $0x5f4] sm:$0xf] }
 0x126   :  { %3493 = vmatpush.bf16.msrb.mxu2 %v4381_v49  ;;  %3462 = vmatmul.bf16.vlgmr.msra.gmra.mxu3 %v6718_v41  ;;  %v4429_v41 = vor.u32 %v5880_v51, %v4426_v38  ;;  %v4357_v49 = vor.u32 %v5862_v6, %v4354_v61  ;;  %v4338_v51 = vld [vmem:[%s9345_s1 + $0x428] sm:$0xf0]  ;;  %v5824_v61 = vld [vmem:[%s9345_s1 + $0x314] sm:$0xf]  ;;  %v4570_v48 = vld [vmem:[%s9345_s1 + $0x5f8] sm:$0xf0] }
 0x127   :  { %3506 = vmatpush.bf16.msrb.mxu3 %v4445_v17  ;;  %v3230_v17 = vadd.f32 %v3229_v4, %v3217_v2  ;;  %v4341_v6 = vor.u32 %v5858_v50, %v4338_v51  ;;  %v4266_v2 = vld [vmem:[%s9345_s1 + $0x398] sm:$0xf0]  ;;  %v5932_v50 = vld [vmem:[%s9345_s1 + $0x674] sm:$0xf] }
 0x128   :  { %3468 = vmatpush.bf16.msrb.mxu0 %v4245_v59  ;;  %v4221_v59 = vor.u32 %v5828_v12, %v4218_v44  ;;  %v3242_v47 = vpop.f32.mrf.mxu2  ;;  %v4330_v4 = vld [vmem:[%s9345_s1 + $0x418] sm:$0xf0]  ;;  %v4205_v12 = vor.u32 %v5824_v61, %v4202_v20  ;;  %v5822_v44 = vld [vmem:[%s9345_s1 + $0x304] sm:$0xf]  ;;  %v4498_v61 = vld [vmem:[%s9345_s1 + $0x568] sm:$0xf0] }
 0x129   :  { %3481 = vmatpush.bf16.msrb.mxu1 %v4309_v33  ;;  %v4285_v33 = vor.u32 %v5844_v16, %v4282_v54  ;;  %v3243_v38 = vadd.f32 %v3242_v47, %v3230_v17  ;;  %v3218_v56 = vpop.f32.mrf.mxu0  ;;  %v4194_v16 = vld [vmem:[%s9345_s1 + $0x308] sm:$0xf0]  ;;  %v5838_v54 = vld [vmem:[%s9345_s1 + $0x384] sm:$0xf]  ;;  %v4634_v51 = vld [vmem:[%s9345_s1 + $0x678] sm:$0xf0] }
 0x12a   :  { %3494 = vmatpush.bf16.msrb.mxu2 %v4373_v34  ;;  %v4349_v34 = vor.u32 %v5860_v58, %v4346_v23  ;;  %v4258_v58 = vld [vmem:[%s9345_s1 + $0x388] sm:$0xf0]  ;;  %v5854_v23 = vld [vmem:[%s9345_s1 + $0x404] sm:$0xf]  ;;  %v4197_v47 = vor.u32 %v5822_v44, %v4194_v16  ;;  %v5896_v16 = vld [vmem:[%s9345_s1 + $0x554] sm:$0xf] }
 0x12b   :  { %3507 = vmatpush.bf16.msrb.mxu3 %v4437_v46  ;;  %v4413_v46 = vor.u32 %v5876_v28, %v4410_v29  ;;  %v4322_v29 = vld [vmem:[%s9345_s1 + $0x408] sm:$0xf0]  ;;  %v5914_v20 = vld [vmem:[%s9345_s1 + $0x5e4] sm:$0xf] }
 0x12c   :  { %3469 = vmatpush.bf16.msrb.mxu0 %v4237_v52  ;;  %v3255_v52 = vpop.f32.mrf.mxu3  ;;  %v3231_v5 = vpop.f32.mrf.mxu1 }
 0x12d   :  { %3482 = vmatpush.bf16.msrb.mxu1 %v4301_v53  ;;  %v5874_v53 = vld [vmem:[%s9345_s1 + $0x4a4] sm:$0xf]  ;;  %v4573_v5 = vor.u32 %v5916_v45, %v4570_v48 }
 0x12e   :  { %3495 = vmatpush.bf16.msrb.mxu2 %v4365_v55  ;;  %v4402_v55 = vld [vmem:[%s9345_s1 + $0x4a8] sm:$0xf0]  ;;  %v5926_v45 = vld [vmem:[%s9345_s1 + $0x644] sm:$0xf] }
 0x12f   :  { %3508 = vmatpush.bf16.msrb.mxu3 %v4429_v41  ;;  %v8288_v41 = vadd.f32 %v3255_v52, %v3243_v38  ;;  %v4405_v63 = vor.u32 %v5874_v53, %v4402_v55  ;;  %v4261_v38 = vor.u32 %v5838_v54, %v4258_v58  ;;  %v4325_v52 = vor.u32 %v5854_v23, %v4322_v29  ;;  %v5948_v53 = vld [vmem:[%s9345_s1 + $0x6f4] sm:$0xf]  ;;  %v4698_v55 = vld [vmem:[%s9345_s1 + $0x6f8] sm:$0xf0]  ;;  %v5942_v48 = vld [vmem:[%s9345_s1 + $0x6c4] sm:$0xf] }
 0x130   :  { %3470 = vmatpush.bf16.msrb.mxu0 %v4229_v3  ;;  %v5856_v3 = vld [vmem:[%s9345_s1 + $0x414] sm:$0xf]  ;;  %v4554_v58 = vld [vmem:[%s9345_s1 + $0x5d8] sm:$0xf0] }
 0x131   :  { %3483 = vmatpush.bf16.msrb.mxu1 %v4293_v9  ;;  %v5872_v9 = vld [vmem:[%s9345_s1 + $0x494] sm:$0xf]  ;;  %v4333_v17 = vor.u32 %v5856_v3, %v4330_v4  ;;  %v4626_v3 = vld [vmem:[%s9345_s1 + $0x668] sm:$0xf0]  ;;  %v5946_v4 = vld [vmem:[%s9345_s1 + $0x6e4] sm:$0xf] }
 0x132   :  { %3496 = vmatpush.bf16.msrb.mxu2 %v4357_v49  ;;  %v4394_v49 = vld [vmem:[%s9345_s1 + $0x498] sm:$0xf0]  ;;  %v5928_v23 = vld [vmem:[%s9345_s1 + $0x654] sm:$0xf] }
 0x133   :  { %3509 = vmatpush.bf16.msrb.mxu3 %v4421_v0  ;;  %v4269_v0 = vor.u32 %v5840_v62, %v4266_v2  ;;  %v4397_v28 = vor.u32 %v5872_v9, %v4394_v49  ;;  %v4701_v62 = vor.u32 %v5948_v53, %v4698_v55  ;;  %v5930_v2 = vld [vmem:[%s9345_s1 + $0x664] sm:$0xf]  ;;  %v4690_v9 = vld [vmem:[%s9345_s1 + $0x6e8] sm:$0xf0]  ;;  %v4682_v29 = vld [vmem:[%s9345_s1 + $0x6d8] sm:$0xf0] }
 0x134   :  { %3471 = vmatpush.bf16.msrb.mxu0 %v4221_v59  ;;  %v5870_v59 = vld [vmem:[%s9345_s1 + $0x484] sm:$0xf]  ;;  %v4629_v44 = vor.u32 %v5930_v2, %v4626_v3  ;;  %v4693_v54 = vor.u32 %v5946_v4, %v4690_v9 }
 0x135   :  { %3484 = vmatpush.bf16.msrb.mxu1 %v4285_v33  ;;  %v4386_v33 = vld [vmem:[%s9345_s1 + $0x488] sm:$0xf0]  ;;  %v5890_v9 = vld [vmem:[%s9345_s1 + $0x524] sm:$0xf] }
 0x136   :  { %3497 = vmatpush.bf16.msrb.mxu2 %v4349_v34  ;;  %v3244_v34 = vpop.f32.mrf.mxu2  ;;  %v4389_v56 = vor.u32 %v5870_v59, %v4386_v33 }
 0x137   :  { %3510 = vmatpush.bf16.msrb.mxu3 %v4413_v46  ;;  %v3257_v46 = vpop.f32.mrf.mxu3 }
 0x138   :  { %3472 = vmatpush.bf16.msrb.mxu0 %v4213_v60  ;;  %v4509_v60 = vor.u32 %v5900_v40, %v4506_v42  ;;  %v5910_v40 = vld [vmem:[%s9345_s1 + $0x5c4] sm:$0xf]  ;;  %v4546_v42 = vld [vmem:[%s9345_s1 + $0x5c8] sm:$0xf0] }
 0x139   :  { %3485 = vmatpush.bf16.msrb.mxu1 %v4277_v19  ;;  %v4637_v19 = vor.u32 %v5932_v50, %v4634_v51  ;;  %v4610_v46 = vld [vmem:[%s9345_s1 + $0x648] sm:$0xf0]  ;;  %v4549_v53 = vor.u32 %v5910_v40, %v4546_v42  ;;  %v5888_v40 = vld [vmem:[%s9345_s1 + $0x514] sm:$0xf] }
 0x13a   :  { %3498 = vmatpush.bf16.msrb.mxu2 %v4341_v6  ;;  %v5898_v6 = vld [vmem:[%s9345_s1 + $0x564] sm:$0xf]  ;;  %v4674_v50 = vld [vmem:[%s9345_s1 + $0x6c8] sm:$0xf0]  ;;  %v4613_v55 = vor.u32 %v5926_v45, %v4610_v46  ;;  %v5904_v42 = vld [vmem:[%s9345_s1 + $0x594] sm:$0xf] }
 0x13b   :  { %3511 = vmatpush.bf16.msrb.mxu3 %v4405_v63  ;;  %v4562_v63 = vld [vmem:[%s9345_s1 + $0x5e8] sm:$0xf0]  ;;  %v4501_v49 = vor.u32 %v5898_v6, %v4498_v61  ;;  %v4538_v6 = vld [vmem:[%s9345_s1 + $0x5b8] sm:$0xf0]  ;;  %v5924_v61 = vld [vmem:[%s9345_s1 + $0x634] sm:$0xf] }
 0x13c   :  { %3473 = vmatpush.bf16.msrb.mxu0 %v4205_v12  ;;  %v4565_v12 = vor.u32 %v5914_v20, %v4562_v63  ;;  %v4602_v20 = vld [vmem:[%s9345_s1 + $0x638] sm:$0xf0] }
 0x13d   :  { %3486 = vmatpush.bf16.msrb.mxu1 %v4269_v0  ;;  %v4490_v0 = vld [vmem:[%s9345_s1 + $0x558] sm:$0xf0]  ;;  %v4605_v4 = vor.u32 %v5924_v61, %v4602_v20  ;;  %v5934_v61 = vld [vmem:[%s9345_s1 + $0x684] sm:$0xf]  ;;  %v4642_v20 = vld [vmem:[%s9345_s1 + $0x688] sm:$0xf0] }
 0x13e   :  { %3499 = vmatpush.bf16.msrb.mxu2 %v4333_v17  ;;  %v5912_v17 = vld [vmem:[%s9345_s1 + $0x5d4] sm:$0xf]  ;;  %v4493_v59 = vor.u32 %v5896_v16, %v4490_v0  ;;  %v4666_v63 = vld [vmem:[%s9345_s1 + $0x6b8] sm:$0xf0]  ;;  %v4530_v0 = vld [vmem:[%s9345_s1 + $0x5a8] sm:$0xf0] }
 0x13f   :  { %3512 = vmatpush.bf16.msrb.mxu3 %v4397_v28  ;;  %v4618_v28 = vld [vmem:[%s9345_s1 + $0x658] sm:$0xf0]  ;;  %v4557_v33 = vor.u32 %v5912_v17, %v4554_v58  ;;  %v5922_v17 = vld [vmem:[%s9345_s1 + $0x624] sm:$0xf] }
 0x140   :  { %3474 = vmatpush.bf16.msrb.mxu0 %v4197_v47  ;;  %v4621_v34 = vor.u32 %v5928_v23, %v4618_v28  ;;  %v3268_v47 = vpop.f32.mrf.mxu0  ;;  %v5938_v28 = vld [vmem:[%s9345_s1 + $0x6a4] sm:$0xf]  ;;  %v4522_v46 = vld [vmem:[%s9345_s1 + $0x598] sm:$0xf0] }
 0x141   :  { %3487 = vmatpush.bf16.msrb.mxu1 %v4261_v38  ;;  %v3269_v51 = vadd.f32 %v3268_v47, %v8288_v41  ;;  %v4677_v41 = vor.u32 %v5942_v48, %v4674_v50  ;;  %v5920_v47 = vld [vmem:[%s9345_s1 + $0x614] sm:$0xf]  ;;  %v4586_v48 = vld [vmem:[%s9345_s1 + $0x618] sm:$0xf0] }
 0x142   :  { %3500 = vmatpush.bf16.msrb.mxu2 %v4325_v52  ;;  %v3281_v52 = vpop.f32.mrf.mxu1  ;;  %v5936_v50 = vld [vmem:[%s9345_s1 + $0x694] sm:$0xf] }
 0x143   :  { %3513 = vmatpush.bf16.msrb.mxu3 %v4389_v56  ;;  %3475 = vmatmul.bf16.vlgmr.msrb.gmra.mxu0 %v6706_v35  ;;  %v5944_v35 = vld [vmem:[%s9345_s1 + $0x6d4] sm:$0xf] }
 0x144   :  { %3519 = vmatpush.bf16.msra.mxu0 %v4509_v60  ;;  %3488 = vmatmul.bf16.vlgmr.msrb.gmra.mxu1 %v6716_v39  ;;  %v5894_v39 = vld [vmem:[%s9345_s1 + $0x544] sm:$0xf]  ;;  %v5892_v56 = vld [vmem:[%s9345_s1 + $0x534] sm:$0xf]  ;;  %v4474_v60 = vld [vmem:[%s9345_s1 + $0x538] sm:$0xf0] }
 0x145   :  { %3532 = vmatpush.bf16.msra.mxu1 %v4573_v5  ;;  %3501 = vmatmul.bf16.vlgmr.msrb.gmra.mxu2 %v6910_v22  ;;  %v4482_v22 = vld [vmem:[%s9345_s1 + $0x548] sm:$0xf0]  ;;  %v5908_v5 = vld [vmem:[%s9345_s1 + $0x5b4] sm:$0xf]  ;;  %v4477_v2 = vor.u32 %v5892_v56, %v4474_v60  ;;  %v4589_v56 = vor.u32 %v5920_v47, %v4586_v48  ;;  %v5902_v60 = vld [vmem:[%s9345_s1 + $0x584] sm:$0xf] }
 0x146   :  { %3545 = vmatpush.bf16.msra.mxu2 %v4637_v19  ;;  %3514 = vmatmul.bf16.vlgmr.msrb.gmra.mxu3 %v6923_v27  ;;  %v4685_v27 = vor.u32 %v5944_v35, %v4682_v29  ;;  %v4485_v38 = vor.u32 %v5894_v39, %v4482_v22  ;;  %v3282_v19 = vadd.f32 %v3281_v52, %v3269_v51  ;;  %v4658_v35 = vld [vmem:[%s9345_s1 + $0x6a8] sm:$0xf0]  ;;  %v4650_v51 = vld [vmem:[%s9345_s1 + $0x698] sm:$0xf0]  ;;  %v5886_v52 = vld [vmem:[%s9345_s1 + $0x504] sm:$0xf] }
 0x147   :  { %3558 = vmatpush.bf16.msra.mxu3 %v4701_v62  ;;  %v5940_v62 = vld [vmem:[%s9345_s1 + $0x6b4] sm:$0xf]  ;;  %v4541_v3 = vor.u32 %v5908_v5, %v4538_v6  ;;  %v4661_v45 = vor.u32 %v5938_v28, %v4658_v35  ;;  %v4514_v5 = vld [vmem:[%s9345_s1 + $0x588] sm:$0xf0] }
 0x148   :  { %3520 = vmatpush.bf16.msra.mxu0 %v4501_v49  ;;  %v4466_v49 = vld [vmem:[%s9345_s1 + $0x528] sm:$0xf0]  ;;  %v3294_v16 = vpop.f32.mrf.mxu2  ;;  %v3270_v29 = vpop.f32.mrf.mxu0 }
 0x149   :  { %3533 = vmatpush.bf16.msra.mxu1 %v4565_v12  ;;  %v5906_v12 = vld [vmem:[%s9345_s1 + $0x5a4] sm:$0xf]  ;;  %v3295_v58 = vadd.f32 %v3294_v16, %v3282_v19  ;;  %v3307_v23 = vpop.f32.mrf.mxu3  ;;  %v4653_v19 = vor.u32 %v5936_v50, %v4650_v51  ;;  %v4578_v6 = vld [vmem:[%s9345_s1 + $0x608] sm:$0xf0]  ;;  %v4517_v16 = vor.u32 %v5902_v60, %v4514_v5  ;;  %v5960_v50 = vld [vmem:[%s9345_s1 + $0x754] sm:$0xf] }
 0x14a   :  { %3546 = vmatpush.bf16.msra.mxu2 %v4629_v44  ;;  %v4669_v44 = vor.u32 %v5940_v62, %v4666_v63  ;;  %v4533_v39 = vor.u32 %v5906_v12, %v4530_v0  ;;  %v5964_v63 = vld [vmem:[%s9345_s1 + $0x774] sm:$0xf]  ;;  %v5962_v29 = vld [vmem:[%s9345_s1 + $0x764] sm:$0xf]  ;;  %v4746_v51 = vld [vmem:[%s9345_s1 + $0x758] sm:$0xf0] }
 0x14b   :  { %3559 = vmatpush.bf16.msra.mxu3 %v4693_v54  ;;  %v4594_v54 = vld [vmem:[%s9345_s1 + $0x628] sm:$0xf0]  ;;  %v5996_v12 = vld [vmem:[%s9345_s1 + $0x874] sm:$0xf]  ;;  %v4938_v60 = vld [vmem:[%s9345_s1 + $0x8d8] sm:$0xf0]  ;;  %v4749_v5 = vor.u32 %v5960_v50, %v4746_v51 }
 0x14c   :  { %3521 = vmatpush.bf16.msra.mxu0 %v4493_v59  ;;  %v4469_v59 = vor.u32 %v5890_v9, %v4466_v49  ;;  %v4597_v22 = vor.u32 %v5922_v17, %v4594_v54  ;;  %v4826_v49 = vld [vmem:[%s9345_s1 + $0x7f8] sm:$0xf0]  ;;  %v6012_v17 = vld [vmem:[%s9345_s1 + $0x8f4] sm:$0xf] }
 0x14d   :  { %3534 = vmatpush.bf16.msra.mxu1 %v4557_v33  ;;  %v3283_v33 = vpop.f32.mrf.mxu1  ;;  %v4954_v54 = vld [vmem:[%s9345_s1 + $0x8f8] sm:$0xf0] }
 0x14e   :  { %3547 = vmatpush.bf16.msra.mxu2 %v4621_v34  ;;  %v8487_v34 = vadd.f32 %v3307_v23, %v3295_v58  ;;  %v4645_v58 = vor.u32 %v5934_v61, %v4642_v20  ;;  %v5978_v33 = vld [vmem:[%s9345_s1 + $0x7e4] sm:$0xf]  ;;  %v4802_v61 = vld [vmem:[%s9345_s1 + $0x7c8] sm:$0xf0] }
 0x14f   :  { %3560 = vmatpush.bf16.msra.mxu3 %v4685_v27  ;;  %v4458_v27 = vld [vmem:[%s9345_s1 + $0x518] sm:$0xf0]  ;;  %v5990_v20 = vld [vmem:[%s9345_s1 + $0x844] sm:$0xf] }
 0x150   :  { %3522 = vmatpush.bf16.msra.mxu0 %v4485_v38  ;;  %v4461_v38 = vor.u32 %v5888_v40, %v4458_v27  ;;  %v3296_v62 = vpop.f32.mrf.mxu2  ;;  %v5994_v40 = vld [vmem:[%s9345_s1 + $0x864] sm:$0xf]  ;;  %v4882_v27 = vld [vmem:[%s9345_s1 + $0x868] sm:$0xf0] }
 0x151   :  { %3535 = vmatpush.bf16.msra.mxu1 %v4549_v53  ;;  %v4450_v53 = vld [vmem:[%s9345_s1 + $0x508] sm:$0xf0]  ;;  %v4885_v48 = vor.u32 %v5994_v40, %v4882_v27  ;;  %v5970_v27 = vld [vmem:[%s9345_s1 + $0x7a4] sm:$0xf] }
 0x152   :  { %3548 = vmatpush.bf16.msra.mxu2 %v4613_v55  ;;  %v4525_v55 = vor.u32 %v5904_v42, %v4522_v46  ;;  %v4453_v9 = vor.u32 %v5886_v52, %v4450_v53  ;;  %v6010_v42 = vld [vmem:[%s9345_s1 + $0x8e4] sm:$0xf]  ;;  %v4810_v53 = vld [vmem:[%s9345_s1 + $0x7d8] sm:$0xf0]  ;;  %v4866_v62 = vld [vmem:[%s9345_s1 + $0x848] sm:$0xf0] }
 0x153   :  { %3561 = vmatpush.bf16.msra.mxu3 %v4677_v41  ;;  %v5918_v41 = vld [vmem:[%s9345_s1 + $0x604] sm:$0xf]  ;;  %v4722_v40 = vld [vmem:[%s9345_s1 + $0x728] sm:$0xf0] }
 0x154   :  { %3523 = vmatpush.bf16.msra.mxu0 %v4477_v2  ;;  %v4762_v2 = vld [vmem:[%s9345_s1 + $0x778] sm:$0xf0]  ;;  %v4581_v0 = vor.u32 %v5918_v41, %v4578_v6  ;;  %v5974_v6 = vld [vmem:[%s9345_s1 + $0x7c4] sm:$0xf] }
 0x155   :  { %3536 = vmatpush.bf16.msra.mxu1 %v4541_v3  ;;  %v5980_v3 = vld [vmem:[%s9345_s1 + $0x7f4] sm:$0xf]  ;;  %v4765_v23 = vor.u32 %v5964_v63, %v4762_v2  ;;  %v6006_v2 = vld [vmem:[%s9345_s1 + $0x8c4] sm:$0xf] }
 0x156   :  { %3549 = vmatpush.bf16.msra.mxu2 %v4605_v4  ;;  %v3309_v4 = vpop.f32.mrf.mxu3  ;;  %v4829_v28 = vor.u32 %v5980_v3, %v4826_v49  ;;  %v4930_v3 = vld [vmem:[%s9345_s1 + $0x8c8] sm:$0xf0] }
 0x157   :  { %3562 = vmatpush.bf16.msra.mxu3 %v4669_v44  ;;  %v4890_v44 = vld [vmem:[%s9345_s1 + $0x878] sm:$0xf0] }
 0x158   :  { %3524 = vmatpush.bf16.msra.mxu0 %v4469_v59  ;;  %v4893_v35 = vor.u32 %v5996_v12, %v4890_v44  ;;  %v4754_v59 = vld [vmem:[%s9345_s1 + $0x768] sm:$0xf0]  ;;  %v4805_v12 = vor.u32 %v5974_v6, %v4802_v61  ;;  %v4869_v44 = vor.u32 %v5990_v20, %v4866_v62  ;;  %v4778_v6 = vld [vmem:[%s9345_s1 + $0x798] sm:$0xf0]  ;;  %v6000_v20 = vld [vmem:[%s9345_s1 + $0x894] sm:$0xf] }
 0x159   :  { %3537 = vmatpush.bf16.msra.mxu1 %v4533_v39  ;;  %v4957_v39 = vor.u32 %v6012_v17, %v4954_v54  ;;  %v4757_v46 = vor.u32 %v5962_v29, %v4754_v59  ;;  %v5972_v17 = vld [vmem:[%s9345_s1 + $0x7b4] sm:$0xf]  ;;  %v4922_v29 = vld [vmem:[%s9345_s1 + $0x8b8] sm:$0xf0] }
 0x15a   :  { %3550 = vmatpush.bf16.msra.mxu2 %v4597_v22  ;;  %v4818_v22 = vld [vmem:[%s9345_s1 + $0x7e8] sm:$0xf0]  ;;  %v4842_v61 = vld [vmem:[%s9345_s1 + $0x818] sm:$0xf0] }
 0x15b   :  { %3563 = vmatpush.bf16.msra.mxu3 %v4661_v45  ;;  %v4946_v45 = vld [vmem:[%s9345_s1 + $0x8e8] sm:$0xf0]  ;;  %v4821_v47 = vor.u32 %v5978_v33, %v4818_v22  ;;  %v5954_v22 = vld [vmem:[%s9345_s1 + $0x724] sm:$0xf]  ;;  %v4906_v62 = vld [vmem:[%s9345_s1 + $0x898] sm:$0xf0] }
 0x15c   :  { %3525 = vmatpush.bf16.msra.mxu0 %v4461_v38  ;;  %v5976_v38 = vld [vmem:[%s9345_s1 + $0x7d4] sm:$0xf]  ;;  %v4949_v52 = vor.u32 %v6010_v42, %v4946_v45 }
 0x15d   :  { %3538 = vmatpush.bf16.msra.mxu1 %v4525_v55  ;;  %v5992_v55 = vld [vmem:[%s9345_s1 + $0x854] sm:$0xf]  ;;  %v4813_v41 = vor.u32 %v5976_v38, %v4810_v53  ;;  %v6002_v38 = vld [vmem:[%s9345_s1 + $0x8a4] sm:$0xf] }
 0x15e   :  { %3551 = vmatpush.bf16.msra.mxu2 %v4589_v56  ;;  %v4874_v56 = vld [vmem:[%s9345_s1 + $0x858] sm:$0xf0] }
 0x15f   :  { %3564 = vmatpush.bf16.msra.mxu3 %v4653_v19  ;;  %v4877_v19 = vor.u32 %v5992_v55, %v4874_v56  ;;  %v4725_v55 = vor.u32 %v5954_v22, %v4722_v40 }
 0x160   :  { %3526 = vmatpush.bf16.msra.mxu0 %v4453_v9  ;;  %v3320_v63 = vpop.f32.mrf.mxu0 }
 0x161   :  { %3539 = vmatpush.bf16.msra.mxu1 %v4517_v16  ;;  %v3321_v4 = vadd.f32 %v3320_v63, %v8487_v34  ;;  %v3333_v49 = vpop.f32.mrf.mxu1  ;;  %v5956_v16 = vld [vmem:[%s9345_s1 + $0x734] sm:$0xf]  ;;  %v4933_v34 = vor.u32 %v6006_v2, %v4930_v3  ;;  %v5950_v2 = vld [vmem:[%s9345_s1 + $0x704] sm:$0xf]  ;;  %v4706_v3 = vld [vmem:[%s9345_s1 + $0x708] sm:$0xf0] }
 0x162   :  { %3552 = vmatpush.bf16.msra.mxu2 %v4581_v0  ;;  %v4730_v0 = vld [vmem:[%s9345_s1 + $0x738] sm:$0xf0] }
 0x163   :  { %3565 = vmatpush.bf16.msra.mxu3 %v4645_v58  ;;  %3527 = vmatmul.bf16.vlgmr.msra.gmra.mxu0 %v6921_v26  ;;  %v6008_v26 = vld [vmem:[%s9345_s1 + $0x8d4] sm:$0xf]  ;;  %v3334_v54 = vadd.f32 %v3333_v49, %v3321_v4  ;;  %v4794_v58 = vld [vmem:[%s9345_s1 + $0x7b8] sm:$0xf0]  ;;  %v4733_v59 = vor.u32 %v5956_v16, %v4730_v0  ;;  %v5966_v49 = vld [vmem:[%s9345_s1 + $0x784] sm:$0xf]  ;;  %v4909_v16 = vor.u32 %v6000_v20, %v4906_v62 }
 0x164   :  { %3571 = vmatpush.bf16.msrb.mxu0 %v4765_v23  ;;  %3540 = vmatmul.bf16.vlgmr.msra.gmra.mxu1 %v6931_v30  ;;  %v5958_v30 = vld [vmem:[%s9345_s1 + $0x744] sm:$0xf]  ;;  %v5988_v23 = vld [vmem:[%s9345_s1 + $0x834] sm:$0xf]  ;;  %v4797_v33 = vor.u32 %v5972_v17, %v4794_v58  ;;  %v4834_v0 = vld [vmem:[%s9345_s1 + $0x808] sm:$0xf0] }
 0x165   :  { %3584 = vmatpush.bf16.msrb.mxu1 %v4829_v28  ;;  %3553 = vmatmul.bf16.vlgmr.msra.gmra.mxu2 %v7118_v18  ;;  %v4738_v18 = vld [vmem:[%s9345_s1 + $0x748] sm:$0xf0]  ;;  %v4858_v28 = vld [vmem:[%s9345_s1 + $0x838] sm:$0xf0]  ;;  %v5998_v17 = vld [vmem:[%s9345_s1 + $0x884] sm:$0xf] }
 0x166   :  { %3597 = vmatpush.bf16.msrb.mxu2 %v4893_v35  ;;  %3566 = vmatmul.bf16.vlgmr.msra.gmra.mxu3 %v7131_v25  ;;  %v4941_v25 = vor.u32 %v6008_v26, %v4938_v60  ;;  %v4741_v9 = vor.u32 %v5958_v30, %v4738_v18  ;;  %v6004_v35 = vld [vmem:[%s9345_s1 + $0x8b4] sm:$0xf]  ;;  %v5066_v20 = vld [vmem:[%s9345_s1 + $0x9d8] sm:$0xf0] }
 0x167   :  { %3610 = vmatpush.bf16.msrb.mxu3 %v4957_v39  ;;  %v4861_v39 = vor.u32 %v5988_v23, %v4858_v28  ;;  %v4925_v42 = vor.u32 %v6004_v35, %v4922_v29  ;;  %v5968_v30 = vld [vmem:[%s9345_s1 + $0x794] sm:$0xf]  ;;  %v5018_v23 = vld [vmem:[%s9345_s1 + $0x978] sm:$0xf0]  ;;  %v4709_v29 = vor.u32 %v5950_v2, %v4706_v3 }
 0x168   :  { %3572 = vmatpush.bf16.msrb.mxu0 %v4757_v46  ;;  %v3346_v45 = vpop.f32.mrf.mxu2  ;;  %v4786_v46 = vld [vmem:[%s9345_s1 + $0x7a8] sm:$0xf0]  ;;  %v3322_v53 = vpop.f32.mrf.mxu0  ;;  %v4781_v4 = vor.u32 %v5968_v30, %v4778_v6  ;;  %v6028_v58 = vld [vmem:[%s9345_s1 + $0x974] sm:$0xf]  ;;  %v5002_v6 = vld [vmem:[%s9345_s1 + $0x958] sm:$0xf0] }
 0x169   :  { %3585 = vmatpush.bf16.msrb.mxu1 %v4821_v47  ;;  %v5986_v47 = vld [vmem:[%s9345_s1 + $0x824] sm:$0xf]  ;;  %v3347_v50 = vadd.f32 %v3346_v45, %v3334_v54  ;;  %v3359_v51 = vpop.f32.mrf.mxu3  ;;  %v3335_v56 = vpop.f32.mrf.mxu1  ;;  %v4789_v60 = vor.u32 %v5970_v27, %v4786_v46  ;;  %v6044_v28 = vld [vmem:[%s9345_s1 + $0x9f4] sm:$0xf]  ;;  %v5021_v46 = vor.u32 %v6028_v58, %v5018_v23  ;;  %v5074_v53 = vld [vmem:[%s9345_s1 + $0x9e8] sm:$0xf0] }
 0x16a   :  { %3598 = vmatpush.bf16.msrb.mxu2 %v4885_v48  ;;  %v4850_v48 = vld [vmem:[%s9345_s1 + $0x828] sm:$0xf0]  ;;  %v6076_v27 = vld [vmem:[%s9345_s1 + $0xaf4] sm:$0xf]  ;;  %v5194_v2 = vld [vmem:[%s9345_s1 + $0xad8] sm:$0xf0] }
 0x16b   :  { %3611 = vmatpush.bf16.msrb.mxu3 %v4949_v52  ;;  %v4914_v52 = vld [vmem:[%s9345_s1 + $0x8a8] sm:$0xf0]  ;;  %v8686_v26 = vadd.f32 %v3359_v51, %v3347_v50  ;;  %v6026_v50 = vld [vmem:[%s9345_s1 + $0x964] sm:$0xf]  ;;  %v6056_v62 = vld [vmem:[%s9345_s1 + $0xa54] sm:$0xf] }
 0x16c   :  { %3573 = vmatpush.bf16.msrb.mxu0 %v4749_v5  ;;  %v4853_v5 = vor.u32 %v5986_v47, %v4850_v48  ;;  %v4917_v18 = vor.u32 %v6002_v38, %v4914_v52  ;;  %v5010_v51 = vld [vmem:[%s9345_s1 + $0x968] sm:$0xf0]  ;;  %v6042_v38 = vld [vmem:[%s9345_s1 + $0x9e4] sm:$0xf] }
 0x16d   :  { %3586 = vmatpush.bf16.msrb.mxu1 %v4813_v41  ;;  %v5952_v41 = vld [vmem:[%s9345_s1 + $0x714] sm:$0xf]  ;;  %v5138_v56 = vld [vmem:[%s9345_s1 + $0xa68] sm:$0xf0] }
 0x16e   :  { %3599 = vmatpush.bf16.msrb.mxu2 %v4877_v19  ;;  %v4714_v19 = vld [vmem:[%s9345_s1 + $0x718] sm:$0xf0] }
 0x16f   :  { %3612 = vmatpush.bf16.msrb.mxu3 %v4941_v25  ;;  %v5984_v25 = vld [vmem:[%s9345_s1 + $0x814] sm:$0xf]  ;;  %v4717_v63 = vor.u32 %v5952_v41, %v4714_v19  ;;  %v5013_v41 = vor.u32 %v6026_v50, %v5010_v51  ;;  %v5077_v19 = vor.u32 %v6042_v38, %v5074_v53  ;;  %v6018_v38 = vld [vmem:[%s9345_s1 + $0x924] sm:$0xf] }
 0x170   :  { %3574 = vmatpush.bf16.msrb.mxu0 %v4741_v9  ;;  %v4845_v9 = vor.u32 %v5984_v25, %v4842_v61  ;;  %v3348_v54 = vpop.f32.mrf.mxu2  ;;  %v6040_v25 = vld [vmem:[%s9345_s1 + $0x9d4] sm:$0xf]  ;;  %v6034_v53 = vld [vmem:[%s9345_s1 + $0x9a4] sm:$0xf] }
 0x171   :  { %3587 = vmatpush.bf16.msrb.mxu1 %v4805_v12  ;;  %v4770_v12 = vld [vmem:[%s9345_s1 + $0x788] sm:$0xf0]  ;;  %v3361_v35 = vpop.f32.mrf.mxu3 }
 0x172   :  { %3600 = vmatpush.bf16.msrb.mxu2 %v4869_v44  ;;  %v5982_v44 = vld [vmem:[%s9345_s1 + $0x804] sm:$0xf]  ;;  %v4773_v22 = vor.u32 %v5966_v49, %v4770_v12  ;;  %v5058_v12 = vld [vmem:[%s9345_s1 + $0x9c8] sm:$0xf0] }
 0x173   :  { %3613 = vmatpush.bf16.msrb.mxu3 %v4933_v34  ;;  %v4898_v34 = vld [vmem:[%s9345_s1 + $0x888] sm:$0xf0]  ;;  %v4837_v40 = vor.u32 %v5982_v44, %v4834_v0  ;;  %v6038_v49 = vld [vmem:[%s9345_s1 + $0x9c4] sm:$0xf] }
 0x174   :  { %3575 = vmatpush.bf16.msrb.mxu0 %v4733_v59  ;;  %v5082_v59 = vld [vmem:[%s9345_s1 + $0x9f8] sm:$0xf0]  ;;  %v4901_v45 = vor.u32 %v5998_v17, %v4898_v34  ;;  %v6054_v44 = vld [vmem:[%s9345_s1 + $0xa44] sm:$0xf]  ;;  %v5186_v34 = vld [vmem:[%s9345_s1 + $0xac8] sm:$0xf0] }
 0x175   :  { %3588 = vmatpush.bf16.msrb.mxu1 %v4797_v33  ;;  %v6060_v33 = vld [vmem:[%s9345_s1 + $0xa74] sm:$0xf]  ;;  %v5085_v47 = vor.u32 %v6044_v28, %v5082_v59  ;;  %v6070_v17 = vld [vmem:[%s9345_s1 + $0xac4] sm:$0xf]  ;;  %v5061_v28 = vor.u32 %v6038_v49, %v5058_v12  ;;  %v4986_v59 = vld [vmem:[%s9345_s1 + $0x938] sm:$0xf0] }
 0x176   :  { %3601 = vmatpush.bf16.msrb.mxu2 %v4861_v39  ;;  %v5146_v39 = vld [vmem:[%s9345_s1 + $0xa78] sm:$0xf0] }
 0x177   :  { %3614 = vmatpush.bf16.msrb.mxu3 %v4925_v42  ;;  %v5210_v42 = vld [vmem:[%s9345_s1 + $0xaf8] sm:$0xf0]  ;;  %v5149_v48 = vor.u32 %v6060_v33, %v5146_v39  ;;  %v6036_v33 = vld [vmem:[%s9345_s1 + $0x9b4] sm:$0xf] }
 0x178   :  { %3576 = vmatpush.bf16.msrb.mxu0 %v4725_v55  ;;  %v5213_v52 = vor.u32 %v6076_v27, %v5210_v42  ;;  %v6058_v55 = vld [vmem:[%s9345_s1 + $0xa64] sm:$0xf]  ;;  %v5114_v27 = vld [vmem:[%s9345_s1 + $0xa38] sm:$0xf0]  ;;  %v6068_v42 = vld [vmem:[%s9345_s1 + $0xab4] sm:$0xf] }
 0x179   :  { %3589 = vmatpush.bf16.msrb.mxu1 %v4789_v60  ;;  %v6074_v60 = vld [vmem:[%s9345_s1 + $0xae4] sm:$0xf]  ;;  %v5141_v30 = vor.u32 %v6058_v55, %v5138_v56  ;;  %v5042_v56 = vld [vmem:[%s9345_s1 + $0x9a8] sm:$0xf0]  ;;  %v5098_v49 = vld [vmem:[%s9345_s1 + $0xa18] sm:$0xf0] }
 0x17a   :  { %3602 = vmatpush.bf16.msrb.mxu2 %v4853_v5  ;;  %v5202_v5 = vld [vmem:[%s9345_s1 + $0xae8] sm:$0xf0]  ;;  %v5162_v12 = vld [vmem:[%s9345_s1 + $0xa98] sm:$0xf0] }
 0x17b   :  { %3615 = vmatpush.bf16.msrb.mxu3 %v4917_v18  ;;  %v6024_v18 = vld [vmem:[%s9345_s1 + $0x954] sm:$0xf]  ;;  %v5205_v61 = vor.u32 %v6074_v60, %v5202_v5  ;;  %v6050_v60 = vld [vmem:[%s9345_s1 + $0xa24] sm:$0xf]  ;;  %v5106_v5 = vld [vmem:[%s9345_s1 + $0xa28] sm:$0xf0] }
 0x17c   :  { %3577 = vmatpush.bf16.msrb.mxu0 %v4717_v63  ;;  %v5130_v63 = vld [vmem:[%s9345_s1 + $0xa58] sm:$0xf0]  ;;  %v5005_v3 = vor.u32 %v6024_v18, %v5002_v6 }
 0x17d   :  { %3590 = vmatpush.bf16.msrb.mxu1 %v4781_v4  ;;  %v5069_v4 = vor.u32 %v6040_v25, %v5066_v20 }
 0x17e   :  { %3603 = vmatpush.bf16.msrb.mxu2 %v4845_v9  ;;  %v5133_v9 = vor.u32 %v6056_v62, %v5130_v63  ;;  %v5045_v62 = vor.u32 %v6034_v53, %v5042_v56  ;;  %v5109_v63 = vor.u32 %v6050_v60, %v5106_v5  ;;  %v6090_v60 = vld [vmem:[%s9345_s1 + $0xb64] sm:$0xf]  ;;  %v5266_v5 = vld [vmem:[%s9345_s1 + $0xb68] sm:$0xf0] }
 0x17f   :  { %3616 = vmatpush.bf16.msrb.mxu3 %v4909_v16  ;;  %v5122_v16 = vld [vmem:[%s9345_s1 + $0xa48] sm:$0xf0] }
 0x180   :  { %3578 = vmatpush.bf16.msrb.mxu0 %v4709_v29  ;;  %v3372_v0 = vpop.f32.mrf.mxu0  ;;  %v5125_v35 = vor.u32 %v6054_v44, %v5122_v16  ;;  %v6020_v29 = vld [vmem:[%s9345_s1 + $0x934] sm:$0xf]  ;;  %v6014_v16 = vld [vmem:[%s9345_s1 + $0x904] sm:$0xf] }
 0x181   :  { %3591 = vmatpush.bf16.msrb.mxu1 %v4773_v22  ;;  %v3373_v54 = vadd.f32 %v3372_v0, %v8686_v26  ;;  %v3385_v23 = vpop.f32.mrf.mxu1  ;;  %v5189_v26 = vor.u32 %v6070_v17, %v5186_v34  ;;  %v5050_v22 = vld [vmem:[%s9345_s1 + $0x9b8] sm:$0xf0]  ;;  %v4962_v0 = vld [vmem:[%s9345_s1 + $0x908] sm:$0xf0] }
 0x182   :  { %3604 = vmatpush.bf16.msrb.mxu2 %v4837_v40  ;;  %v6052_v40 = vld [vmem:[%s9345_s1 + $0xa34] sm:$0xf]  ;;  %v5053_v50 = vor.u32 %v6036_v33, %v5050_v22  ;;  %v5274_v22 = vld [vmem:[%s9345_s1 + $0xb78] sm:$0xf0] }
 0x183   :  { %3617 = vmatpush.bf16.msrb.mxu3 %v4901_v45  ;;  %3579 = vmatmul.bf16.vlgmr.msrb.gmra.mxu0 %v7129_v24  ;;  %v6072_v24 = vld [vmem:[%s9345_s1 + $0xad4] sm:$0xf]  ;;  %v8846_v39 = vadd.f32 %v3385_v23, %v3373_v54  ;;  %v5178_v45 = vld [vmem:[%s9345_s1 + $0xab8] sm:$0xf0]  ;;  %v5117_v51 = vor.u32 %v6052_v40, %v5114_v27  ;;  %v6030_v54 = vld [vmem:[%s9345_s1 + $0x984] sm:$0xf] }
 0x184   :  { %3623 = vmatpush.bf16.msra.mxu0 %v5021_v46  ;;  %3592 = vmatmul.bf16.vlgmr.msrb.gmra.mxu1 %v7139_v31  ;;  %v6022_v31 = vld [vmem:[%s9345_s1 + $0x944] sm:$0xf]  ;;  %v6207_v46 = vld [vmem:[%s9346_s2] sm:$0x3]  ;;  %v5181_v55 = vor.u32 %v6068_v42, %v5178_v45  ;;  %v6108_v40 = vld [vmem:[%s9345_s1 + $0xbf4] sm:$0xf]  ;;  %v4965_v42 = vor.u32 %v6014_v16, %v4962_v0 }
 0x185   :  { %3636 = vmatpush.bf16.msra.mxu1 %v5085_v47  ;;  %3605 = vmatmul.bf16.vlgmr.msrb.gmra.mxu2 %v7331_v32  ;;  %v4994_v32 = vld [vmem:[%s9345_s1 + $0x948] sm:$0xf0]  ;;  %v2996_v47 = vperm.slane %v6207_v46, 1  ;;  %v6046_v23 = vld [vmem:[%s9345_s1 + $0xa04] sm:$0xf] }
 0x186   :  { %3649 = vmatpush.bf16.msra.mxu2 %v5149_v48  ;;  %3618 = vmatmul.bf16.vlgmr.msrb.gmra.mxu3 %v7344_v37  ;;  %v5197_v37 = vor.u32 %v6072_v24, %v5194_v2  ;;  %v4997_v58 = vor.u32 %v6022_v31, %v4994_v32  ;;  %v4989_v48 = vor.u32 %v6020_v29, %v4986_v59  ;;  %v6016_v24 = vld [vmem:[%s9345_s1 + $0x914] sm:$0xf]  ;;  %v4970_v2 = vld [vmem:[%s9345_s1 + $0x918] sm:$0xf0]  ;;  %v6062_v29 = vld [vmem:[%s9345_s1 + $0xa84] sm:$0xf] }
 0x187   :  { %3662 = vmatpush.bf16.msra.mxu3 %v5213_v52  ;;  %v4978_v52 = vld [vmem:[%s9345_s1 + $0x928] sm:$0xf0]  ;;  %v5034_v31 = vld [vmem:[%s9345_s1 + $0x998] sm:$0xf0]  ;;  %v6048_v32 = vld [vmem:[%s9345_s1 + $0xa14] sm:$0xf]  ;;  %v4973_v44 = vor.u32 %v6016_v24, %v4970_v2 }
 0x188   :  { %3624 = vmatpush.bf16.msra.mxu0 %v5013_v41  ;;  %v3398_v41 = vpop.f32.mrf.mxu2  ;;  %v3374_v25 = vpop.f32.mrf.mxu0  ;;  %v5101_v34 = vor.u32 %v6048_v32, %v5098_v49  ;;  %v5154_v59 = vld [vmem:[%s9345_s1 + $0xa88] sm:$0xf0]  ;;  %v5338_v45 = vld [vmem:[%s9345_s1 + $0xbf8] sm:$0xf0]  ;;  %v6124_v46 = vld [vmem:[%s9345_s1 + $0xc74] sm:$0xf] }
 0x189   :  { %3637 = vmatpush.bf16.msra.mxu1 %v5077_v19  ;;  %v6066_v19 = vld [vmem:[%s9345_s1 + $0xaa4] sm:$0xf]  ;;  %v3399_v18 = vadd.f32 %v3398_v41, %v2996_v47  ;;  %v3411_v6 = vpop.f32.mrf.mxu3  ;;  %v3387_v20 = vpop.f32.mrf.mxu1  ;;  %v5402_v47 = vld [vmem:[%s9345_s1 + $0xc78] sm:$0xf0]  ;;  %v6088_v24 = vld [vmem:[%s9345_s1 + $0xb54] sm:$0xf] }
 0x18a   :  { %3650 = vmatpush.bf16.msra.mxu2 %v5141_v30  ;;  %v5170_v30 = vld [vmem:[%s9345_s1 + $0xaa8] sm:$0xf0]  ;;  %v5405_v56 = vor.u32 %v6124_v46, %v5402_v47  ;;  %v6106_v41 = vld [vmem:[%s9345_s1 + $0xbe4] sm:$0xf]  ;;  %v5269_v20 = vor.u32 %v6090_v60, %v5266_v5  ;;  %v5258_v2 = vld [vmem:[%s9345_s1 + $0xb58] sm:$0xf0] }
 0x18b   :  { %3663 = vmatpush.bf16.msra.mxu3 %v5205_v61  ;;  %v4981_v61 = vor.u32 %v6018_v38, %v4978_v52  ;;  %v5466_v38 = vld [vmem:[%s9345_s1 + $0xcf8] sm:$0xf0]  ;;  %v5157_v52 = vor.u32 %v6062_v29, %v5154_v59  ;;  %v6138_v25 = vld [vmem:[%s9345_s1 + $0xce4] sm:$0xf]  ;;  %v6120_v32 = vld [vmem:[%s9345_s1 + $0xc54] sm:$0xf] }
 0x18c   :  { %3625 = vmatpush.bf16.msra.mxu0 %v5005_v3  ;;  %v6032_v3 = vld [vmem:[%s9345_s1 + $0x994] sm:$0xf]  ;;  %v5386_v49 = vld [vmem:[%s9345_s1 + $0xc58] sm:$0xf0]  ;;  %v6102_v0 = vld [vmem:[%s9345_s1 + $0xbc4] sm:$0xf] }
 0x18d   :  { %3638 = vmatpush.bf16.msra.mxu1 %v5069_v4  ;;  %v8899_v4 = vadd.f32 %v3411_v6, %v3399_v18  ;;  %v5037_v17 = vor.u32 %v6032_v3, %v5034_v31  ;;  %v6122_v18 = vld [vmem:[%s9345_s1 + $0xc64] sm:$0xf]  ;;  %v5394_v6 = vld [vmem:[%s9345_s1 + $0xc68] sm:$0xf0]  ;;  %v6104_v3 = vld [vmem:[%s9345_s1 + $0xbd4] sm:$0xf]  ;;  %v5389_v16 = vor.u32 %v6120_v32, %v5386_v49 }
 0x18e   :  { %3651 = vmatpush.bf16.msra.mxu2 %v5133_v9  ;;  %v5173_v9 = vor.u32 %v6066_v19, %v5170_v30  ;;  %v5330_v30 = vld [vmem:[%s9345_s1 + $0xbe8] sm:$0xf0]  ;;  %v5322_v31 = vld [vmem:[%s9345_s1 + $0xbd8] sm:$0xf0]  ;;  %v6116_v46 = vld [vmem:[%s9345_s1 + $0xc34] sm:$0xf] }
 0x18f   :  { %3664 = vmatpush.bf16.msra.mxu3 %v5197_v37  ;;  %v6064_v37 = vld [vmem:[%s9345_s1 + $0xa94] sm:$0xf]  ;;  %v5370_v47 = vld [vmem:[%s9345_s1 + $0xc38] sm:$0xf0] }
 0x190   :  { %3626 = vmatpush.bf16.msra.mxu0 %v4997_v58  ;;  %v5026_v58 = vld [vmem:[%s9345_s1 + $0x988] sm:$0xf0]  ;;  %v3400_v33 = vpop.f32.mrf.mxu2 }
 0x191   :  { %3639 = vmatpush.bf16.msra.mxu1 %v5061_v28  ;;  %v5165_v28 = vor.u32 %v6064_v37, %v5162_v12  ;;  %v3413_v27 = vpop.f32.mrf.mxu3  ;;  %v5450_v37 = vld [vmem:[%s9345_s1 + $0xcd8] sm:$0xf0]  ;;  %v5261_v12 = vor.u32 %v6088_v24, %v5258_v2  ;;  %v6084_v33 = vld [vmem:[%s9345_s1 + $0xb34] sm:$0xf] }
 0x192   :  { %3652 = vmatpush.bf16.msra.mxu2 %v5125_v35  ;;  %v5090_v35 = vld [vmem:[%s9345_s1 + $0xa08] sm:$0xf0] }
 0x193   :  { %3665 = vmatpush.bf16.msra.mxu3 %v5189_v26  ;;  %v6092_v26 = vld [vmem:[%s9345_s1 + $0xb74] sm:$0xf] }
 0x194   :  { %3627 = vmatpush.bf16.msra.mxu0 %v4989_v48  ;;  %v5029_v48 = vor.u32 %v6030_v54, %v5026_v58  ;;  %v5277_v53 = vor.u32 %v6092_v26, %v5274_v22  ;;  %v5378_v54 = vld [vmem:[%s9345_s1 + $0xc48] sm:$0xf0]  ;;  %v6134_v58 = vld [vmem:[%s9345_s1 + $0xcc4] sm:$0xf]  ;;  %v5242_v26 = vld [vmem:[%s9345_s1 + $0xb38] sm:$0xf0] }
 0x195   :  { %3640 = vmatpush.bf16.msra.mxu1 %v5053_v50  ;;  %v5093_v50 = vor.u32 %v6046_v23, %v5090_v35  ;;  %v5442_v23 = vld [vmem:[%s9345_s1 + $0xcc8] sm:$0xf0]  ;;  %v6100_v22 = vld [vmem:[%s9345_s1 + $0xbb4] sm:$0xf] }
 0x196   :  { %3653 = vmatpush.bf16.msra.mxu2 %v5117_v51  ;;  %v6140_v51 = vld [vmem:[%s9345_s1 + $0xcf4] sm:$0xf] }
 0x197   :  { %3666 = vmatpush.bf16.msra.mxu3 %v5181_v55  ;;  %v5341_v55 = vor.u32 %v6108_v40, %v5338_v45  ;;  %v5469_v19 = vor.u32 %v6140_v51, %v5466_v38  ;;  %v5306_v45 = vld [vmem:[%s9345_s1 + $0xbb8] sm:$0xf0]  ;;  %v5245_v51 = vor.u32 %v6084_v33, %v5242_v26  ;;  %v6156_v26 = vld [vmem:[%s9345_s1 + $0xd74] sm:$0xf] }
 0x198   :  { %3628 = vmatpush.bf16.msra.mxu0 %v4981_v61  ;;  %v5458_v61 = vld [vmem:[%s9345_s1 + $0xce8] sm:$0xf0]  ;;  %v5309_v38 = vor.u32 %v6100_v22, %v5306_v45  ;;  %v5530_v22 = vld [vmem:[%s9345_s1 + $0xd78] sm:$0xf0]  ;;  %v6188_v45 = vld [vmem:[%s9345_s1 + $0xe74] sm:$0xf] }
 0x199   :  { %3641 = vmatpush.bf16.msra.mxu1 %v5045_v62  ;;  %v5333_v62 = vor.u32 %v6106_v41, %v5330_v30  ;;  %v5298_v41 = vld [vmem:[%s9345_s1 + $0xba8] sm:$0xf0] }
 0x19a   :  { %3654 = vmatpush.bf16.msra.mxu2 %v5109_v63  ;;  %v5397_v63 = vor.u32 %v6122_v18, %v5394_v6  ;;  %v5362_v30 = vld [vmem:[%s9345_s1 + $0xc28] sm:$0xf0] }
 0x19b   :  { %3667 = vmatpush.bf16.msra.mxu3 %v5173_v9  ;;  %v5461_v9 = vor.u32 %v6138_v25, %v5458_v61  ;;  %v6130_v25 = vld [vmem:[%s9345_s1 + $0xca4] sm:$0xf]  ;;  %v5426_v61 = vld [vmem:[%s9345_s1 + $0xca8] sm:$0xf0] }
 0x19c   :  { %3629 = vmatpush.bf16.msra.mxu0 %v4973_v44  ;;  %v5325_v44 = vor.u32 %v6104_v3, %v5322_v31  ;;  %v6080_v3 = vld [vmem:[%s9345_s1 + $0xb14] sm:$0xf]  ;;  %v5429_v49 = vor.u32 %v6130_v25, %v5426_v61 }
 0x19d   :  { %3642 = vmatpush.bf16.msra.mxu1 %v5037_v17  ;;  %v5314_v17 = vld [vmem:[%s9345_s1 + $0xbc8] sm:$0xf0]  ;;  %v6096_v31 = vld [vmem:[%s9345_s1 + $0xb94] sm:$0xf] }
 0x19e   :  { %3655 = vmatpush.bf16.msra.mxu2 %v5101_v34  ;;  %v6118_v34 = vld [vmem:[%s9345_s1 + $0xc44] sm:$0xf]  ;;  %v5317_v29 = vor.u32 %v6102_v0, %v5314_v17  ;;  %v5218_v0 = vld [vmem:[%s9345_s1 + $0xb08] sm:$0xf0] }
 0x19f   :  { %3668 = vmatpush.bf16.msra.mxu3 %v5165_v28  ;;  %v5381_v59 = vor.u32 %v6118_v34, %v5378_v54  ;;  %v6094_v34 = vld [vmem:[%s9345_s1 + $0xb84] sm:$0xf]  ;;  %v5282_v54 = vld [vmem:[%s9345_s1 + $0xb88] sm:$0xf0] }
 0x1a0   :  { %3630 = vmatpush.bf16.msra.mxu0 %v4965_v42  ;;  %v3424_v35 = vpop.f32.mrf.mxu0  ;;  %v5445_v42 = vor.u32 %v6134_v58, %v5442_v23  ;;  %v6110_v58 = vld [vmem:[%s9345_s1 + $0xc04] sm:$0xf] }
 0x1a1   :  { %3643 = vmatpush.bf16.msra.mxu1 %v5029_v48  ;;  %v3425_v40 = vadd.f32 %v3424_v35, %v8899_v4  ;;  %v3437_v27 = vpop.f32.mrf.mxu1  ;;  %v6132_v48 = vld [vmem:[%s9345_s1 + $0xcb4] sm:$0xf]  ;;  %v5434_v4 = vld [vmem:[%s9345_s1 + $0xcb8] sm:$0xf0]  ;;  %v5346_v35 = vld [vmem:[%s9345_s1 + $0xc08] sm:$0xf0] }
 0x1a2   :  { %3656 = vmatpush.bf16.msra.mxu2 %v5093_v50  ;;  %v5437_v5 = vor.u32 %v6132_v48, %v5434_v4  ;;  %v5349_v48 = vor.u32 %v6110_v58, %v5346_v35  ;;  %v6204_v4 = vld [vmem:[%s9345_s1 + $0xef4] sm:$0xf] }
 0x1a3   :  { %3669 = vmatpush.bf16.msra.mxu3 %v5157_v52  ;;  %3631 = vmatmul.bf16.vlgmr.msra.gmra.mxu0 %v7342_v36  ;;  %v6136_v36 = vld [vmem:[%s9345_s1 + $0xcd4] sm:$0xf]  ;;  %v3438_v50 = vadd.f32 %v3437_v27, %v3425_v40  ;;  %v5373_v52 = vor.u32 %v6116_v46, %v5370_v47  ;;  %v5658_v46 = vld [vmem:[%s9345_s1 + $0xe78] sm:$0xf0]  ;;  %v5285_v47 = vor.u32 %v6094_v34, %v5282_v54 }
 0x1a4   :  { %3675 = vmatpush.bf16.msrb.mxu0 %v5277_v53  ;;  %3644 = vmatmul.bf16.vlgmr.msra.gmra.mxu1 %v7352_v43  ;;  %v6086_v43 = vld [vmem:[%s9345_s1 + $0xb44] sm:$0xf]  ;;  %v6172_v40 = vld [vmem:[%s9345_s1 + $0xdf4] sm:$0xf] }
 0x1a5   :  { %3688 = vmatpush.bf16.msrb.mxu1 %v5341_v55  ;;  %3657 = vmatmul.bf16.vlgmr.msra.gmra.mxu2 %v7544_v7  ;;  %v5250_v7 = vld [vmem:[%s9345_s1 + $0xb48] sm:$0xf0]  ;;  %v6082_v53 = vld [vmem:[%s9345_s1 + $0xb24] sm:$0xf]  ;;  %v6148_v35 = vld [vmem:[%s9345_s1 + $0xd34] sm:$0xf] }
 0x1a6   :  { %3701 = vmatpush.bf16.msrb.mxu2 %v5405_v56  ;;  %3670 = vmatmul.bf16.vlgmr.msra.gmra.mxu3 %v7557_v11  ;;  %v5453_v11 = vor.u32 %v6136_v36, %v5450_v37  ;;  %v5253_v28 = vor.u32 %v6086_v43, %v5250_v7  ;;  %v5234_v55 = vld [vmem:[%s9345_s1 + $0xb28] sm:$0xf0]  ;;  %v6098_v56 = vld [vmem:[%s9345_s1 + $0xba4] sm:$0xf]  ;;  %v5290_v36 = vld [vmem:[%s9345_s1 + $0xb98] sm:$0xf0] }
 0x1a7   :  { %3714 = vmatpush.bf16.msrb.mxu3 %v5469_v19  ;;  %v6114_v19 = vld [vmem:[%s9345_s1 + $0xc24] sm:$0xf]  ;;  %v5301_v24 = vor.u32 %v6098_v56, %v5298_v41  ;;  %v6112_v37 = vld [vmem:[%s9345_s1 + $0xc14] sm:$0xf]  ;;  %v5522_v56 = vld [vmem:[%s9345_s1 + $0xd68] sm:$0xf0] }
 0x1a8   :  { %3676 = vmatpush.bf16.msrb.mxu0 %v5269_v20  ;;  %v3450_v60 = vpop.f32.mrf.mxu2  ;;  %v5237_v20 = vor.u32 %v6082_v53, %v5234_v55  ;;  %v5365_v2 = vor.u32 %v6114_v19, %v5362_v30  ;;  %v6078_v7 = vld [vmem:[%s9345_s1 + $0xb04] sm:$0xf]  ;;  %v5661_v53 = vor.u32 %v6188_v45, %v5658_v46  ;;  %v5586_v41 = vld [vmem:[%s9345_s1 + $0xde8] sm:$0xf0] }
 0x1a9   :  { %3689 = vmatpush.bf16.msrb.mxu1 %v5333_v62  ;;  %v3451_v18 = vadd.f32 %v3450_v60, %v3438_v50  ;;  %v3463_v6 = vpop.f32.mrf.mxu3  ;;  %v3439_v32 = vpop.f32.mrf.mxu1  ;;  %v5221_v27 = vor.u32 %v6078_v7, %v5218_v0  ;;  %v5722_v50 = vld [vmem:[%s9345_s1 + $0xef8] sm:$0xf0]  ;;  %v6154_v55 = vld [vmem:[%s9345_s1 + $0xd64] sm:$0xf]  ;;  %v5650_v30 = vld [vmem:[%s9345_s1 + $0xe68] sm:$0xf0] }
 0x1aa   :  { %3702 = vmatpush.bf16.msrb.mxu2 %v5397_v63  ;;  %v3426_v63 = vpop.f32.mrf.mxu0  ;;  %v6170_v60 = vld [vmem:[%s9345_s1 + $0xde4] sm:$0xf]  ;;  %v5525_v25 = vor.u32 %v6154_v55, %v5522_v56  ;;  %v5642_v32 = vld [vmem:[%s9345_s1 + $0xe58] sm:$0xf0]  ;;  %v5634_v7 = vld [vmem:[%s9345_s1 + $0xe48] sm:$0xf0] }
 0x1ab   :  { %3715 = vmatpush.bf16.msrb.mxu3 %v5461_v9  ;;  %v9089_v62 = vadd.f32 %v3463_v6, %v3451_v18  ;;  %v5226_v9 = vld [vmem:[%s9345_s1 + $0xb18] sm:$0xf0]  ;;  %v6186_v19 = vld [vmem:[%s9345_s1 + $0xe64] sm:$0xf]  ;;  %v5714_v6 = vld [vmem:[%s9345_s1 + $0xee8] sm:$0xf0]  ;;  %v5589_v61 = vor.u32 %v6170_v60, %v5586_v41 }
 0x1ac   :  { %3677 = vmatpush.bf16.msrb.mxu0 %v5261_v12  ;;  %v5354_v12 = vld [vmem:[%s9345_s1 + $0xc18] sm:$0xf0]  ;;  %v5229_v43 = vor.u32 %v6080_v3, %v5226_v9  ;;  %v6202_v18 = vld [vmem:[%s9345_s1 + $0xee4] sm:$0xf]  ;;  %v6152_v63 = vld [vmem:[%s9345_s1 + $0xd54] sm:$0xf] }
 0x1ad   :  { %3690 = vmatpush.bf16.msrb.mxu1 %v5325_v44  ;;  %v6128_v44 = vld [vmem:[%s9345_s1 + $0xc94] sm:$0xf]  ;;  %v5357_v17 = vor.u32 %v6112_v37, %v5354_v12  ;;  %v5717_v3 = vor.u32 %v6202_v18, %v5714_v6  ;;  %v5578_v9 = vld [vmem:[%s9345_s1 + $0xdd8] sm:$0xf0]  ;;  %v5618_v55 = vld [vmem:[%s9345_s1 + $0xe28] sm:$0xf0] }
 0x1ae   :  { %3703 = vmatpush.bf16.msrb.mxu2 %v5389_v16  ;;  %v5418_v16 = vld [vmem:[%s9345_s1 + $0xc98] sm:$0xf0]  ;;  %v5682_v41 = vld [vmem:[%s9345_s1 + $0xea8] sm:$0xf0] }
 0x1af   :  { %3716 = vmatpush.bf16.msrb.mxu3 %v5453_v11  ;;  %v5293_v11 = vor.u32 %v6096_v31, %v5290_v36  ;;  %v6184_v31 = vld [vmem:[%s9345_s1 + $0xe54] sm:$0xf] }
 0x1b0   :  { %3678 = vmatpush.bf16.msrb.mxu0 %v5253_v28  ;;  %v3452_v23 = vpop.f32.mrf.mxu2  ;;  %v5421_v28 = vor.u32 %v6128_v44, %v5418_v16  ;;  %v5645_v12 = vor.u32 %v6184_v31, %v5642_v32  ;;  %v6166_v44 = vld [vmem:[%s9345_s1 + $0xdc4] sm:$0xf]  ;;  %v5570_v16 = vld [vmem:[%s9345_s1 + $0xdc8] sm:$0xf0]  ;;  %v5610_v31 = vld [vmem:[%s9345_s1 + $0xe18] sm:$0xf0] }
 0x1b1   :  { %3691 = vmatpush.bf16.msrb.mxu1 %v5317_v29  ;;  %v6126_v29 = vld [vmem:[%s9345_s1 + $0xc84] sm:$0xf]  ;;  %v3465_v33 = vpop.f32.mrf.mxu3  ;;  %v5573_v23 = vor.u32 %v6166_v44, %v5570_v16  ;;  %v6192_v32 = vld [vmem:[%s9345_s1 + $0xe94] sm:$0xf] }
 0x1b2   :  { %3704 = vmatpush.bf16.msrb.mxu2 %v5381_v59  ;;  %v5410_v59 = vld [vmem:[%s9345_s1 + $0xc88] sm:$0xf0]  ;;  %v6174_v16 = vld [vmem:[%s9345_s1 + $0xe04] sm:$0xf] }
 0x1b3   :  { %3717 = vmatpush.bf16.msrb.mxu3 %v5445_v42  ;;  %v5594_v42 = vld [vmem:[%s9345_s1 + $0xdf8] sm:$0xf0] }
 0x1b4   :  { %3679 = vmatpush.bf16.msrb.mxu0 %v5245_v51  ;;  %v5413_v51 = vor.u32 %v6126_v29, %v5410_v59  ;;  %v5498_v29 = vld [vmem:[%s9345_s1 + $0xd38] sm:$0xf0]  ;;  %v6164_v59 = vld [vmem:[%s9345_s1 + $0xdb4] sm:$0xf] }
 0x1b5   :  { %3692 = vmatpush.bf16.msrb.mxu1 %v5309_v38  ;;  %v5533_v38 = vor.u32 %v6156_v26, %v5530_v22  ;;  %v5562_v26 = vld [vmem:[%s9345_s1 + $0xdb8] sm:$0xf0]  ;;  %v6180_v22 = vld [vmem:[%s9345_s1 + $0xe34] sm:$0xf]  ;;  %v5501_v45 = vor.u32 %v6148_v35, %v5498_v29 }
 0x1b6   :  { %3705 = vmatpush.bf16.msrb.mxu2 %v5373_v52  ;;  %v5597_v52 = vor.u32 %v6172_v40, %v5594_v42  ;;  %v5626_v40 = vld [vmem:[%s9345_s1 + $0xe38] sm:$0xf0]  ;;  %v5565_v46 = vor.u32 %v6164_v59, %v5562_v26 }
 0x1b7   :  { %3718 = vmatpush.bf16.msrb.mxu3 %v5437_v5  ;;  %v5725_v5 = vor.u32 %v6204_v4, %v5722_v50  ;;  %v5690_v42 = vld [vmem:[%s9345_s1 + $0xeb8] sm:$0xf0]  ;;  %v5490_v4 = vld [vmem:[%s9345_s1 + $0xd28] sm:$0xf0]  ;;  %v6162_v50 = vld [vmem:[%s9345_s1 + $0xda4] sm:$0xf] }
 0x1b8   :  { %3680 = vmatpush.bf16.msrb.mxu0 %v5237_v20  ;;  %v5653_v20 = vor.u32 %v6186_v19, %v5650_v30 }
 0x1b9   :  { %3693 = vmatpush.bf16.msrb.mxu1 %v5301_v24  ;;  %v5514_v24 = vld [vmem:[%s9345_s1 + $0xd58] sm:$0xf0] }
 0x1ba   :  { %3706 = vmatpush.bf16.msrb.mxu2 %v5365_v2  ;;  %v6168_v2 = vld [vmem:[%s9345_s1 + $0xdd4] sm:$0xf]  ;;  %v5517_v36 = vor.u32 %v6152_v63, %v5514_v24  ;;  %v5482_v63 = vld [vmem:[%s9345_s1 + $0xd18] sm:$0xf0] }
 0x1bb   :  { %3719 = vmatpush.bf16.msrb.mxu3 %v5429_v49  ;;  %v5706_v49 = vld [vmem:[%s9345_s1 + $0xed8] sm:$0xf0]  ;;  %v5581_v37 = vor.u32 %v6168_v2, %v5578_v9  ;;  %v6160_v24 = vld [vmem:[%s9345_s1 + $0xd94] sm:$0xf] }
 0x1bc   :  { %3681 = vmatpush.bf16.msrb.mxu0 %v5229_v43  ;;  %v6182_v43 = vld [vmem:[%s9345_s1 + $0xe44] sm:$0xf]  ;;  %v6176_v9 = vld [vmem:[%s9345_s1 + $0xe14] sm:$0xf] }
 0x1bd   :  { %3694 = vmatpush.bf16.msrb.mxu1 %v5293_v11  ;;  %v6198_v11 = vld [vmem:[%s9345_s1 + $0xec4] sm:$0xf] }
 0x1be   :  { %3707 = vmatpush.bf16.msrb.mxu2 %v5357_v17  ;;  %v5698_v17 = vld [vmem:[%s9345_s1 + $0xec8] sm:$0xf0] }
 0x1bf   :  { %3720 = vmatpush.bf16.msrb.mxu3 %v5421_v28  ;;  %v5637_v28 = vor.u32 %v6182_v43, %v5634_v7  ;;  %v5602_v43 = vld [vmem:[%s9345_s1 + $0xe08] sm:$0xf0] }
 0x1c0   :  { %3682 = vmatpush.bf16.msrb.mxu0 %v5221_v27  ;;  %v3476_v0 = vpop.f32.mrf.mxu0  ;;  %v6196_v27 = vld [vmem:[%s9345_s1 + $0xeb4] sm:$0xf] }
 0x1c1   :  { %3695 = vmatpush.bf16.msrb.mxu1 %v5285_v47  ;;  %v3477_v34 = vadd.f32 %v3476_v0, %v9089_v62  ;;  %v3489_v58 = vpop.f32.mrf.mxu1  ;;  %v5701_v62 = vor.u32 %v6198_v11, %v5698_v17  ;;  %v5629_v47 = vor.u32 %v6180_v22, %v5626_v40  ;;  %v6190_v0 = vld [vmem:[%s9345_s1 + $0xe84] sm:$0xf]  ;;  %v5666_v11 = vld [vmem:[%s9345_s1 + $0xe88] sm:$0xf0] }
 0x1c2   :  { %3708 = vmatpush.bf16.msrb.mxu2 %v5349_v48  ;;  %v6146_v48 = vld [vmem:[%s9345_s1 + $0xd24] sm:$0xf] }
 0x1c3   :  { %3721 = vmatpush.bf16.msrb.mxu3 %v5413_v51  ;;  %3683 = vmatmul.bf16.vlgmr.msrb.gmra.mxu0 %v7555_v10  ;;  %v6200_v10 = vld [vmem:[%s9345_s1 + $0xed4] sm:$0xf]  ;;  %v3490_v33 = vadd.f32 %v3489_v58, %v3477_v34  ;;  %v5693_v51 = vor.u32 %v6196_v27, %v5690_v42  ;;  %v5493_v30 = vor.u32 %v6146_v48, %v5490_v4 }
 0x1c4   :  { %3727 = vmatpush.bf16.msra.mxu0 %v5533_v38  ;;  %3696 = vmatmul.bf16.vlgmr.msrb.gmra.mxu1 %v7565_v14  ;;  %v6150_v14 = vld [vmem:[%s9345_s1 + $0xd44] sm:$0xf]  ;;  %v5605_v58 = vor.u32 %v6174_v16, %v5602_v43 }
 0x1c5   :  { %3740 = vmatpush.bf16.msra.mxu1 %v5597_v52  ;;  %3709 = vmatmul.bf16.vlgmr.msrb.gmra.mxu2 %v7760_v1  ;;  %v5506_v1 = vld [vmem:[%s9345_s1 + $0xd48] sm:$0xf0] }
 0x1c6   :  { %3753 = vmatpush.bf16.msra.mxu2 %v5661_v53  ;;  %3722 = vmatmul.bf16.vlgmr.msrb.gmra.mxu3 %v7773_v8  ;;  %v5709_v8 = vor.u32 %v6200_v10, %v5706_v49  ;;  %v5509_v54 = vor.u32 %v6150_v14, %v5506_v1  ;;  %v5554_v52 = vld [vmem:[%s9345_s1 + $0xda8] sm:$0xf0]  ;;  %v6178_v53 = vld [vmem:[%s9345_s1 + $0xe24] sm:$0xf]  ;;  %v5674_v10 = vld [vmem:[%s9345_s1 + $0xe98] sm:$0xf0] }
 0x1c7   :  { %3766 = vmatpush.bf16.msra.mxu3 %v5725_v5  ;;  %v6194_v5 = vld [vmem:[%s9345_s1 + $0xea4] sm:$0xf]  ;;  %v5474_v14 = vld [vmem:[%s9345_s1 + $0xd08] sm:$0xf0]  ;;  %v5677_v44 = vor.u32 %v6192_v32, %v5674_v10 }
 0x1c8   :  { %3728 = vmatpush.bf16.msra.mxu0 %v5525_v25  ;;  %v3502_v38 = vpop.f32.mrf.mxu2  ;;  %v3478_v19 = vpop.f32.mrf.mxu0  ;;  %v5557_v25 = vor.u32 %v6162_v50, %v5554_v52  ;;  %v5685_v2 = vor.u32 %v6194_v5, %v5682_v41  ;;  %v6158_v1 = vld [vmem:[%s9345_s1 + $0xd84] sm:$0xf] }
 0x1c9   :  { %3741 = vmatpush.bf16.msra.mxu1 %v5589_v61  ;;  %v3503_v56 = vadd.f32 %v3502_v38, %v3490_v33  ;;  %v3515_v60 = vpop.f32.mrf.mxu3  ;;  %v3491_v18 = vpop.f32.mrf.mxu1  ;;  %v5621_v61 = vor.u32 %v6178_v53, %v5618_v55 }
 0x1ca   :  { %3754 = vmatpush.bf16.msra.mxu2 %v5653_v20  ;;  %v6144_v20 = vld [vmem:[%s9345_s1 + $0xd14] sm:$0xf] }
 0x1cb   :  { %3767 = vmatpush.bf16.msra.mxu3 %v5717_v3  ;;  %v3516_v6 = vadd.f32 %v3515_v60, %v3503_v56  ;;  %v5546_v3 = vld [vmem:[%s9345_s1 + $0xd98] sm:$0xf0]  ;;  %v5485_v49 = vor.u32 %v6144_v20, %v5482_v63 }
 0x1cc   :  { %3729 = vmatpush.bf16.msra.mxu0 %v5517_v36  ;;  %v5549_v36 = vor.u32 %v6160_v24, %v5546_v3 }
 0x1cd   :  { %3742 = vmatpush.bf16.msra.mxu1 %v5581_v37  ;;  %v5613_v37 = vor.u32 %v6176_v9, %v5610_v31 }
 0x1ce   :  { %3755 = vmatpush.bf16.msra.mxu2 %v5645_v12  ;;  %v6142_v12 = vld [vmem:[%s9345_s1 + $0xd04] sm:$0xf] }
 0x1cf   :  { %3768 = vmatpush.bf16.msra.mxu3 %v5709_v8  ;;  %v5538_v8 = vld [vmem:[%s9345_s1 + $0xd88] sm:$0xf0]  ;;  %v5477_v34 = vor.u32 %v6142_v12, %v5474_v14  ;;  %s6234_s1 = smov [#allocation2]  }
 0x1d0   :  { %3730 = vmatpush.bf16.msra.mxu0 %v5509_v54  ;;  %v3504_v7 = vpop.f32.mrf.mxu2  ;;  %v5541_v54 = vor.u32 %v6158_v1, %v5538_v8  ;;  %s3795_s6 = sshll.u32 %s6234_s1, 4  ;;  %s3796_s6 = int_to_ptr.vmem [resolvable:$true] %s3795_s6 }
 0x1d1   :  { %3743 = vmatpush.bf16.msra.mxu1 %v5573_v23  ;;  %v3517_v17 = vpop.f32.mrf.mxu3  ;;  %v5669_v23 = vor.u32 %v6190_v0, %v5666_v11  ;;  %v3785_v0 = vlaneseq }
 0x1d2   :  { %3756 = vmatpush.bf16.msra.mxu2 %v5637_v28 }
 0x1d3   :  { %3769 = vmatpush.bf16.msra.mxu3 %v5701_v62  ;;  %vm3787_vm1 = vcmp.lt.s32.totalorder %v3785_v0, 160 }
 0x1d4   :  { %3731 = vmatpush.bf16.msra.mxu0 %v5501_v45 }
 0x1d5   :  { %3744 = vmatpush.bf16.msra.mxu1 %v5565_v46 }
 0x1d6   :  { %3757 = vmatpush.bf16.msra.mxu2 %v5629_v47 }
 0x1d7   :  { %3770 = vmatpush.bf16.msra.mxu3 %v5693_v51 }
 0x1d8   :  { %3732 = vmatpush.bf16.msra.mxu0 %v5493_v30 }
 0x1d9   :  { %3745 = vmatpush.bf16.msra.mxu1 %v5557_v25 }
 0x1da   :  { %3758 = vmatpush.bf16.msra.mxu2 %v5621_v61 }
 0x1db   :  { %3771 = vmatpush.bf16.msra.mxu3 %v5685_v2 }
 0x1dc   :  { %3733 = vmatpush.bf16.msra.mxu0 %v5485_v49 }
 0x1dd   :  { %3746 = vmatpush.bf16.msra.mxu1 %v5549_v36 }
 0x1de   :  { %3759 = vmatpush.bf16.msra.mxu2 %v5613_v37 }
 0x1df   :  { %3772 = vmatpush.bf16.msra.mxu3 %v5677_v44 }
 0x1e0   :  { %3734 = vmatpush.bf16.msra.mxu0 %v5477_v34  ;;  %v3528_v28 = vpop.f32.mrf.mxu0 }
 0x1e1   :  { %3747 = vmatpush.bf16.msra.mxu1 %v5541_v54  ;;  %v3529_v35 = vadd.f32 %v3528_v28, %v3516_v6  ;;  %v3541_v29 = vpop.f32.mrf.mxu1 }
 0x1e2   :  { %3760 = vmatpush.bf16.msra.mxu2 %v5605_v58 }
 0x1e3   :  { %3773 = vmatpush.bf16.msra.mxu3 %v5669_v23  ;;  %3735 = vmatmul.bf16.vlgmr.msra.gmra.mxu0 %v7771_v57  ;;  %v3542_v59 = vadd.f32 %v3541_v29, %v3529_v35 }
 0x1e4   :  { %3748 = vmatmul.bf16.vlgmr.msra.gmra.mxu1 %v7781_v13 }
 0x1e5   :  { %3761 = vmatmul.bf16.vlgmr.msra.gmra.mxu2 %v7969_v15 }
 0x1e6   :  { %3774 = vmatmul.bf16.vlgmr.msra.gmra.mxu3 %v7980_v21 }
 0x1e8   :  { %v3554_v62 = vpop.f32.mrf.mxu2  ;;  %v3530_v22 = vpop.f32.mrf.mxu0 }
 0x1e9   :  { %v3555_v33 = vadd.f32 %v3554_v62, %v3542_v59  ;;  %v3567_v26 = vpop.f32.mrf.mxu3  ;;  %v3543_v40 = vpop.f32.mrf.mxu1 }
 0x1eb   :  { %v3568_v27 = vadd.f32 %v3567_v26, %v3555_v33 }
 0x1f0   :  { %v3556_v42 = vpop.f32.mrf.mxu2 }
 0x1f1   :  { %v3569_v45 = vpop.f32.mrf.mxu3 }
 0x200   :  { %v3580_v46 = vpop.f32.mrf.mxu0 }
 0x201   :  { %v3581_v57 = vadd.f32 %v3580_v46, %v3568_v27  ;;  %v3593_v47 = vpop.f32.mrf.mxu1 }
 0x203   :  { %v3594_v13 = vadd.f32 %v3593_v47, %v3581_v57 }
 0x208   :  { %v3606_v48 = vpop.f32.mrf.mxu2  ;;  %v3582_v21 = vpop.f32.mrf.mxu0 }
 0x209   :  { %v3607_v15 = vadd.f32 %v3606_v48, %v3594_v13  ;;  %v3619_v4 = vpop.f32.mrf.mxu3  ;;  %v3595_v50 = vpop.f32.mrf.mxu1 }
 0x20b   :  { %v3620_v51 = vadd.f32 %v3619_v4, %v3607_v15 }
 0x210   :  { %v3608_v38 = vpop.f32.mrf.mxu2 }
 0x211   :  { %v3621_v52 = vpop.f32.mrf.mxu3 }
 0x220   :  { %v3632_v53 = vpop.f32.mrf.mxu0 }
 0x221   :  { %v3645_v55 = vpop.f32.mrf.mxu1  ;;  %v3633_v25 = vadd.f32 %v3632_v53, %v3620_v51 }
 0x223   :  { %v3646_v2 = vadd.f32 %v3645_v55, %v3633_v25 }
 0x228   :  { %v3658_v56 = vpop.f32.mrf.mxu2  ;;  %v3634_v5 = vpop.f32.mrf.mxu0 }
 0x229   :  { %v3671_v60 = vpop.f32.mrf.mxu3  ;;  %v3647_v41 = vpop.f32.mrf.mxu1  ;;  %v3659_v3 = vadd.f32 %v3658_v56, %v3646_v2 }
 0x22b   :  { %v3672_v32 = vadd.f32 %v3671_v60, %v3659_v3 }
 0x230   :  { %v3660_v19 = vpop.f32.mrf.mxu2 }
 0x231   :  { %v3673_v30 = vpop.f32.mrf.mxu3 }
 0x240   :  { %v3684_v18 = vpop.f32.mrf.mxu0 }
 0x241   :  { %v3697_v6 = vpop.f32.mrf.mxu1  ;;  %v3685_v10 = vadd.f32 %v3684_v18, %v3672_v32 }
 0x243   :  { %v3698_v49 = vadd.f32 %v3697_v6, %v3685_v10 }
 0x248   :  { %v3710_v61 = vpop.f32.mrf.mxu2  ;;  %v3686_v63 = vpop.f32.mrf.mxu0 }
 0x249   :  { %v3723_v20 = vpop.f32.mrf.mxu3  ;;  %v3699_v24 = vpop.f32.mrf.mxu1  ;;  %v3711_v36 = vadd.f32 %v3710_v61, %v3698_v49 }
 0x24b   :  { %v3724_v37 = vadd.f32 %v3723_v20, %v3711_v36 }
 0x250   :  { %v3712_v9 = vpop.f32.mrf.mxu2 }
 0x251   :  { %v3725_v31 = vpop.f32.mrf.mxu3 }
 0x260   :  { %v3736_v12 = vpop.f32.mrf.mxu0 }
 0x261   :  { %v3749_v14 = vpop.f32.mrf.mxu1  ;;  %v3737_v1 = vadd.f32 %v3736_v12, %v3724_v37 }
 0x263   :  { %v3750_v44 = vadd.f32 %v3749_v14, %v3737_v1 }
 0x268   :  { %v3762_v8 = vpop.f32.mrf.mxu2  ;;  %v3738_v7 = vpop.f32.mrf.mxu0 }
 0x269   :  { %v3763_v16 = vadd.f32 %v3762_v8, %v3750_v44  ;;  %v3775_v43 = vpop.f32.mrf.mxu3  ;;  %v3751_v11 = vpop.f32.mrf.mxu1 }
 0x26b   :  { %v3776_v17 = vadd.f32 %v3775_v43, %v3763_v16 }
 0x26d   :  { %v3781_v34 = vrot.slane %v3776_v17, 7 }
 0x26f   :  { %v3783_v54 = vsel %vm3782_vm0, %v8846_v39, %v3781_v34 }
 0x270   :  { %v3764_v58 = vpop.f32.mrf.mxu2  ;;  %3789 = vst.msk [vmem:[#allocation2] sm:$0x3] %vm3787_vm1, %v3783_v54 }
 0x271   :  { %v3777_v23 = vpop.f32.mrf.mxu3  ;;  %3800 = dma.vmem_to_hbm [thread:$0]  %s3796_s6, 32, %s3798_s9, [#allocation3]  }
 0x272   :  { %6232 = dma.done.wait [#allocation3], 32  }
 0x273   :  { %6233 = vsyncadd [#allocation3], 4294967264 }
 0x274   :  { %3805 = vsyncpa [#allocation3], 1 }

</bundles_post_ra>
